<compile_context>
chip_gen: v7x
topology: tpu7x:2x2x1
jax: 0.10.0
libtpu: 0.0.40
codegen_flags: <defaults>
</compile_context>

<pallas_src>
import functools
import math

import jax
import jax.numpy as jnp
from jax.experimental import pallas as pl
from jax.experimental.pallas import tpu as pltpu

_HI = jax.lax.Precision.HIGHEST
_LANES = 128


# ------------------------------ fused kernel ------------------------------- #

def _gilnet_kernel(x_ref, c_ref, o_ref, *, K, off):
    """Whole GILNet forward for TB batch samples, fully VMEM resident.

    x_ref : (TB*N, F*Cin0)   node-major input slab (samples stacked on sublanes)
    c_ref : (rows, 128)      packed constants slab (static (8,128)-aligned sections)
    o_ref : (TB*N3, h2)      fused-fc output
    """

    def sec(name):
        r0, h, w = off[name]                     # static python ints
        return c_ref[pl.ds(r0, h), pl.ds(0, w)]

    def dot(a, b):
        return jnp.dot(a, b, preferred_element_type=jnp.float32, precision=_HI)

    x0 = x_ref[...]                                           # (TB*N, F)

    # ---- gconv1 + ReLU: relu( sum_k T_k(L0) x0 W1_k + b1 ) --------------- #
    acc = dot(dot(sec("T1_0"), x0), sec("W1_0"))
    for k in range(1, K):
        acc = acc + dot(dot(sec(f"T1_{k}"), x0), sec(f"W1_{k}"))
    y1 = jnp.maximum(acc + sec("B1"), 0.0)                    # (TB*N, F*f1)

    # ---- pool1 folded into gconv2 basis (M_k = T_k(L2) @ P1, M_0 == P1) -- #
    acc = dot(dot(sec("M_0"), y1), sec("W2_0"))
    for k in range(1, K):
        acc = acc + dot(dot(sec(f"M_{k}"), y1), sec(f"W2_{k}"))
    y2 = jnp.maximum(acc + sec("B2"), 0.0)                    # (TB*N2, F*f2)

    # ---- pool2, then fc1∘fc2 collapsed into one affine ------------------- #
    y3 = dot(sec("P2"), y2)                                   # (TB*N3, F*f2)
    out = dot(y3, sec("WF")) + sec("BF")                      # (TB*N3, h2)
    # TODO(synk): reference forward contains debug `print(x.shape); exit()`
    # around the fc layers; omitted so the full pipeline actually runs.
    o_ref[...] = out.astype(o_ref.dtype)


# -------------------------- one-time layout prep --------------------------- #

def _gconv_block_weights(weight, bias, fin, fout, K, F):
    """torch weight (Fout, Fin*K) [col = fin*K + k] -> (K, F*Fin, F*Fout) block-diag."""
    wk = weight.reshape(fout, fin, K).transpose(2, 1, 0).astype(jnp.float32)  # (K,Fin,Fout)
    eye = jnp.eye(F, dtype=jnp.float32)
    wblk = jnp.einsum('fg,kio->kfigo', eye, wk).reshape(K, F * fin, F * fout)
    bblk = jnp.tile(bias.astype(jnp.float32), F).reshape(1, F * fout)
    return wblk, bblk


def _pool_matrix(n, p):
    """(n//p, n) matrix implementing AvgPool1d(kernel=p, stride=p) over nodes."""
    return jnp.kron(jnp.eye(n // p, dtype=jnp.float32),
                    jnp.full((1, p), 1.0 / p, dtype=jnp.float32))


def _cheb_polys(L, K):
    """[T_0(L) .. T_{K-1}(L)] dense, computed once at prep time (HIGHEST precision)."""
    Ts = [jnp.eye(L.shape[0], dtype=jnp.float32)]
    if K > 1:
        Ts.append(L.astype(jnp.float32))
    for _ in range(2, K):
        Ts.append(2.0 * jnp.matmul(L, Ts[-1], precision=_HI) - Ts[-2])
    return Ts


def _pack_constants(sections):
    """sections: [(name, 2-D array)] -> (slab (rows,128) f32, {name:(row0,h,w)}).

    Each section is zero-padded to a multiple of 8 rows and to 128 lanes so every
    static pl.ds slice inside the kernel is (8,128)-tile aligned.
    """
    offs, parts, r = {}, [], 0
    for name, a in sections:
        a = jnp.asarray(a, jnp.float32)
        h, w = a.shape
        assert w <= _LANES, (name, w)
        hp = ((h + 7) // 8) * 8
        blk = jnp.zeros((hp, _LANES), jnp.float32).at[:h, :w].set(a)
        parts.append(blk)
        offs[name] = (r, h, w)
        r += hp
    return jnp.concatenate(parts, axis=0), offs


def prepare_inputs(params, L_list, *, K, num_features, pooling_sizes, n_nodes,
                   tile_batch):
    """Hoist every parameter re-layout, Chebyshev basis, pool fold and fc fusion
    out of the per-forward hot path; pack everything into one padded slab."""
    F = num_features
    f1 = params["g1_b"].shape[0]
    f2 = params["g2_b"].shape[0]
    p1, p2 = pooling_sizes
    N, TB = n_nodes, tile_batch
    N2, N3 = N // p1, (N // p1) // p2
    eyeTB = jnp.eye(TB, dtype=jnp.float32)

    # Chebyshev bases (node-mixing matrices), pool1 folded into layer 2.
    T1 = _cheb_polys(L_list[0].astype(jnp.float32), K)                   # K x (N, N)
    P1 = _pool_matrix(N, p1)                                             # (N2, N)
    T2 = _cheb_polys(L_list[2].astype(jnp.float32), K)                   # K x (N2, N2)
    M = [jnp.matmul(Tk, P1, precision=_HI) for Tk in T2]                 # K x (N2, N)
    P2 = _pool_matrix(N2, p2)                                            # (N3, N2)

    # Block-diagonal (kron) gconv weights + tiled biases.
    w1, b1 = _gconv_block_weights(params["g1_w"], params["g1_b"], 1, f1, K, F)
    w2, b2 = _gconv_block_weights(params["g2_w"], params["g2_b"], f1, f2, K, F)

    # fc1 ∘ fc2 collapsed (exact: no activation between them in the module).
    wf = jnp.matmul(params["fc1_w"].T.astype(jnp.float32),
                    params["fc2_w"].T.astype(jnp.float32), precision=_HI)
    bf = (jnp.matmul(params["fc1_b"].astype(jnp.float32),
                     params["fc2_w"].T.astype(jnp.float32), precision=_HI)
          + params["fc2_b"].astype(jnp.float32)).reshape(1, -1)

    sections = []
    for k in range(K):
        sections.append((f"T1_{k}", jnp.kron(eyeTB, T1[k])))    # (TB*N,  TB*N)
    for k in range(K):
        sections.append((f"M_{k}", jnp.kron(eyeTB, M[k])))      # (TB*N2, TB*N)
    for k in range(K):
        sections.append((f"W1_{k}", w1[k]))                     # (F*1,  F*f1)
    for k in range(K):
        sections.append((f"W2_{k}", w2[k]))                     # (F*f1, F*f2)
    sections += [("P2", jnp.kron(eyeTB, P2)),                   # (TB*N3, TB*N2)
                 ("WF", wf), ("B1", b1), ("B2", b2), ("BF", bf)]

    slab, off = _pack_constants(sections)
    meta = dict(K=K, off=off, TB=TB, N=N, N3=N3, xcols=F * 1, h2=int(wf.shape[1]))
    return slab, meta


# --------------------------------- forward --------------------------------- #

def build_forward(meta, batch):
    """Returns a jitted forward:  x (B, N, F) -> (B, N3, h2)."""
    K, off = meta["K"], meta["off"]
    TB, N, N3 = meta["TB"], meta["N"], meta["N3"]
    xcols, h2 = meta["xcols"], meta["h2"]
    assert batch % TB == 0
    grid = (batch // TB,)
    kernel = functools.partial(_gilnet_kernel, K=K, off=off)

    @jax.jit
    def fwd(x, const_slab):
        xf = x.astype(jnp.float32).reshape(batch * N, xcols)   # sample-major node slab
        out = pl.pallas_call(
            kernel,
            out_shape=jax.ShapeDtypeStruct((batch * N3, h2), jnp.float32),
            grid_spec=pltpu.PrefetchScalarGridSpec(
                num_scalar_prefetch=0,
                grid=grid,
                in_specs=[
                    pl.BlockSpec((TB * N, xcols), lambda g: (g, 0)),     # x tile
                    pl.BlockSpec(const_slab.shape, lambda g: (0, 0)),    # pinned constants
                ],
                out_specs=pl.BlockSpec((TB * N3, h2), lambda g: (g, 0)),
            ),
            compiler_params=pltpu.CompilerParams(
                dimension_semantics=("parallel",)),
        )(xf, const_slab)
        return out.reshape(batch, N3, h2)

    return fwd


# ----------------------- pure-JAX reference (checking) ---------------------- #

def _ref_cheb_gconv(x, L, weight, bias, K):
    N, F, fin = x.shape
    fout = weight.shape[0]
    x0 = x.transpose(0, 2, 1).reshape(N, fin * F)
    xs = [x0]
    if K > 1:
        x1 = jnp.matmul(L, x0, precision=_HI)
        xs.append(x1)
        for _ in range(2, K):
            x2 = 2.0 * jnp.matmul(L, x1, precision=_HI) - x0
            xs.append(x2)
            x0, x1 = x1, x2
    xt = (jnp.stack(xs, 0).reshape(K, N, fin, F)
          .transpose(1, 3, 2, 0).reshape(N * F, fin * K))
    out = jnp.matmul(xt, weight.T, precision=_HI) + bias
    return out.reshape(N, F, fout)


def _ref_forward(params, x, L_list, *, K, pooling_sizes):
    x = x[:, :, None]
    x = jnp.maximum(_ref_cheb_gconv(x, L_list[0], params["g1_w"], params["g1_b"], K), 0.0)
    p = pooling_sizes[0]
    N, F, C = x.shape
    x = x.reshape(N // p, p, F, C).mean(axis=1)
    x = jnp.maximum(_ref_cheb_gconv(x, L_list[2], params["g2_w"], params["g2_b"], K), 0.0)
    p = pooling_sizes[1]
    N, F, C = x.shape
    x = x.reshape(N // p, p, F, C).mean(axis=1)
    x = x.reshape(x.shape[0], -1)
    x = jnp.matmul(x, params["fc1_w"].T, precision=_HI) + params["fc1_b"]
    x = jnp.matmul(x, params["fc2_w"].T, precision=_HI) + params["fc2_b"]
    return x


# ------------------------------- init helpers ------------------------------- #

def init_params(key, num_features, gconv_filter_sizes, receptive_field_k,
                fully_connected_sizes):
    """Deterministic init matching the torch shapes (kaiming-uniform-style bounds)."""
    def uni(k, shape, fan_in):
        bound = 1.0 / math.sqrt(fan_in)
        return jax.random.uniform(k, shape, jnp.float32, -bound, bound)

    K = receptive_field_k
    f0, f1, f2 = gconv_filter_sizes
    h1, h2 = fully_connected_sizes
    ks = jax.random.split(key, 8)
    return {
        "g1_w": uni(ks[0], (f1, f0 * K), f0 * K),
        "g1_b": uni(ks[1], (f1,), f0 * K),
        "g2_w": uni(ks[2], (f2, f1 * K), f1 * K),
        "g2_b": uni(ks[3], (f2,), f1 * K),
        "fc1_w": uni(ks[4], (h1, num_features * f1), num_features * f1),
        "fc1_b": uni(ks[5], (h1,), num_features * f1),
        "fc2_w": uni(ks[6], (h2, h1), h1),
        "fc2_b": uni(ks[7], (h2,), h1),
    }


def make_laplacian(key, n):
    a = jax.random.uniform(key, (n, n), jnp.float32)
    a = 0.5 * (a + a.T) * (1.0 - jnp.eye(n, dtype=jnp.float32))
    d = jnp.maximum(jnp.sum(a, axis=1), 1e-12)
    dinv = 1.0 / jnp.sqrt(d)
    return jnp.eye(n, dtype=jnp.float32) - dinv[:, None] * a * dinv[None, :]


# ----------------------------------- main ----------------------------------- #

if __name__ == "__main__":
    n_nodes = 16
    num_features = 8
    gconv_filter_sizes = [1, 8, 8]     # [1] == [2] so fc1 input dim matches the module
    receptive_field_k = 3
    pooling_sizes = [2, 2]
    fully_connected_sizes = [32, 4]
    batch = 16                          # B independent samples sharing the Laplacians
    tile_batch = 8                      # samples stacked per grid step (sublane M = 128)

    key = jax.random.PRNGKey(0)
    k_x, k_p, k_l0, k_l1, k_l2 = jax.random.split(key, 5)

    x = jax.random.normal(k_x, (batch, n_nodes, num_features), jnp.float32)
    # Coarsened Laplacian pyramid: GILNet uses only L[0] and L[2] (L[1] unused,
    # matching the reference module's indexing).
    L_list = [
        make_laplacian(k_l0, n_nodes),
        make_laplacian(k_l1, n_nodes // pooling_sizes[0]),
        make_laplacian(k_l2, n_nodes // pooling_sizes[0]),
    ]

    params = init_params(k_p, num_features, gconv_filter_sizes,
                         receptive_field_k, fully_connected_sizes)

    const_slab, meta = prepare_inputs(
        params, L_list, K=receptive_field_k, num_features=num_features,
        pooling_sizes=pooling_sizes, n_nodes=n_nodes, tile_batch=tile_batch)

    fwd = build_forward(meta, batch)
    out = jax.block_until_ready(fwd(x, const_slab))

    n_out = n_nodes // (pooling_sizes[0] * pooling_sizes[1])
    assert out.shape == (batch, n_out, fully_connected_sizes[1])
    assert bool(jnp.all(jnp.isfinite(out)))

    # correctness vs. a pure-JAX transcription of the PyTorch forward (per sample)
    ref = jax.vmap(lambda xb: _ref_forward(params, xb, L_list,
                                           K=receptive_field_k,
                                           pooling_sizes=pooling_sizes))(x)
    err = float(jnp.max(jnp.abs(out - ref)))
    tol = 1e-4 * (1.0 + float(jnp.max(jnp.abs(ref))))   # ~1e-4 relative (was 1e-2 abs)
    assert err < tol, f"mismatch vs reference: {err} (tol {tol})"

    print("KERNEL_OK")
</pallas_src>

<mosaic_0001>
module attributes {stable_mosaic.version = 11 : i64} {
  func.func @_gilnet_kernel(%arg0: i32, %arg1: memref<128x8xf32, #tpu.memory_space<vmem>>, %arg2: memref<912x128xf32, #tpu.memory_space<vmem>>, %arg3: memref<32x4xf32, #tpu.memory_space<vmem>>) attributes {dimension_semantics = [#tpu.dimension_semantics<parallel>], iteration_bounds = array<i64: 2>, scalar_prefetch = 0 : i64, scratch_operands = 0 : i64, tpu.core_type = #tpu.core_type<tc>, window_params = [{transform_indices = @transform_0, window_bounds = array<i64: 128, 8>}, {pipeline_mode = #tpu.pipeline_mode<synchronous>, transform_indices = @transform_1, window_bounds = array<i64: 912, 128>}, {transform_indices = @transform_2, window_bounds = array<i64: 32, 4>}]} {
    %c0 = arith.constant 0 : index
    %c0_0 = arith.constant 0 : index
    %0 = vector.load %arg1[%c0, %c0_0] : memref<128x8xf32, #tpu.memory_space<vmem>>, vector<128x8xf32>
    %c0_1 = arith.constant 0 : index
    %c0_2 = arith.constant 0 : index
    %1 = vector.load %arg2[%c0_1, %c0_2] : memref<912x128xf32, #tpu.memory_space<vmem>>, vector<128x128xf32>
    %cst = arith.constant dense<0.000000e+00> : vector<128x8xf32>
    %2 = tpu.matmul %1, %0, %cst {dimension_numbers = #tpu.dot_dimension_numbers<[1], [0], [0], [1], [0, 0, 1, 1], [], []>, precision = #tpu.contract_precision<fp32>} : vector<128x128xf32>, vector<128x8xf32>, vector<128x8xf32> -> vector<128x8xf32>
    %c576 = arith.constant 576 : index
    %c0_3 = arith.constant 0 : index
    %3 = vector.load %arg2[%c576, %c0_3] : memref<912x128xf32, #tpu.memory_space<vmem>>, vector<8x64xf32>
    %cst_4 = arith.constant dense<0.000000e+00> : vector<128x64xf32>
    %4 = tpu.matmul %2, %3, %cst_4 {dimension_numbers = #tpu.dot_dimension_numbers<[1], [0], [0], [1], [0, 0, 1, 1], [], []>, precision = #tpu.contract_precision<fp32>} : vector<128x8xf32>, vector<8x64xf32>, vector<128x64xf32> -> vector<128x64xf32>
    %c128 = arith.constant 128 : index
    %c0_5 = arith.constant 0 : index
    %5 = vector.load %arg2[%c128, %c0_5] : memref<912x128xf32, #tpu.memory_space<vmem>>, vector<128x128xf32>
    %cst_6 = arith.constant dense<0.000000e+00> : vector<128x8xf32>
    %6 = tpu.matmul %5, %0, %cst_6 {dimension_numbers = #tpu.dot_dimension_numbers<[1], [0], [0], [1], [0, 0, 1, 1], [], []>, precision = #tpu.contract_precision<fp32>} : vector<128x128xf32>, vector<128x8xf32>, vector<128x8xf32> -> vector<128x8xf32>
    %c584 = arith.constant 584 : index
    %c0_7 = arith.constant 0 : index
    %7 = vector.load %arg2[%c584, %c0_7] : memref<912x128xf32, #tpu.memory_space<vmem>>, vector<8x64xf32>
    %cst_8 = arith.constant dense<0.000000e+00> : vector<128x64xf32>
    %8 = tpu.matmul %6, %7, %cst_8 {dimension_numbers = #tpu.dot_dimension_numbers<[1], [0], [0], [1], [0, 0, 1, 1], [], []>, precision = #tpu.contract_precision<fp32>} : vector<128x8xf32>, vector<8x64xf32>, vector<128x64xf32> -> vector<128x64xf32>
    %9 = arith.addf %4, %8 : vector<128x64xf32>
    %c256 = arith.constant 256 : index
    %c0_9 = arith.constant 0 : index
    %10 = vector.load %arg2[%c256, %c0_9] : memref<912x128xf32, #tpu.memory_space<vmem>>, vector<128x128xf32>
    %cst_10 = arith.constant dense<0.000000e+00> : vector<128x8xf32>
    %11 = tpu.matmul %10, %0, %cst_10 {dimension_numbers = #tpu.dot_dimension_numbers<[1], [0], [0], [1], [0, 0, 1, 1], [], []>, precision = #tpu.contract_precision<fp32>} : vector<128x128xf32>, vector<128x8xf32>, vector<128x8xf32> -> vector<128x8xf32>
    %c592 = arith.constant 592 : index
    %c0_11 = arith.constant 0 : index
    %12 = vector.load %arg2[%c592, %c0_11] : memref<912x128xf32, #tpu.memory_space<vmem>>, vector<8x64xf32>
    %cst_12 = arith.constant dense<0.000000e+00> : vector<128x64xf32>
    %13 = tpu.matmul %11, %12, %cst_12 {dimension_numbers = #tpu.dot_dimension_numbers<[1], [0], [0], [1], [0, 0, 1, 1], [], []>, precision = #tpu.contract_precision<fp32>} : vector<128x8xf32>, vector<8x64xf32>, vector<128x64xf32> -> vector<128x64xf32>
    %14 = arith.addf %9, %13 : vector<128x64xf32>
    %c888 = arith.constant 888 : index
    %c0_13 = arith.constant 0 : index
    %15 = vector.load %arg2[%c888, %c0_13] : memref<912x128xf32, #tpu.memory_space<vmem>>, vector<1x64xf32>
    %16 = vector.broadcast %15 : vector<1x64xf32> to vector<128x64xf32>
    %17 = arith.addf %14, %16 : vector<128x64xf32>
    %cst_14 = arith.constant 0.000000e+00 : f32
    %18 = vector.broadcast %cst_14 : f32 to vector<128x64xf32>
    %19 = arith.maximumf %17, %18 : vector<128x64xf32>
    %c384 = arith.constant 384 : index
    %c0_15 = arith.constant 0 : index
    %20 = vector.load %arg2[%c384, %c0_15] : memref<912x128xf32, #tpu.memory_space<vmem>>, vector<64x128xf32>
    %cst_16 = arith.constant dense<0.000000e+00> : vector<64x64xf32>
    %21 = tpu.matmul %20, %19, %cst_16 {dimension_numbers = #tpu.dot_dimension_numbers<[1], [0], [0], [1], [0, 0, 1, 1], [], []>, precision = #tpu.contract_precision<fp32>} : vector<64x128xf32>, vector<128x64xf32>, vector<64x64xf32> -> vector<64x64xf32>
    %c600 = arith.constant 600 : index
    %c0_17 = arith.constant 0 : index
    %22 = vector.load %arg2[%c600, %c0_17] : memref<912x128xf32, #tpu.memory_space<vmem>>, vector<64x64xf32>
    %cst_18 = arith.constant dense<0.000000e+00> : vector<64x64xf32>
    %23 = tpu.matmul %21, %22, %cst_18 {dimension_numbers = #tpu.dot_dimension_numbers<[1], [0], [0], [1], [0, 0, 1, 1], [], []>, precision = #tpu.contract_precision<fp32>} : vector<64x64xf32>, vector<64x64xf32>, vector<64x64xf32> -> vector<64x64xf32>
    %c448 = arith.constant 448 : index
    %c0_19 = arith.constant 0 : index
    %24 = vector.load %arg2[%c448, %c0_19] : memref<912x128xf32, #tpu.memory_space<vmem>>, vector<64x128xf32>
    %cst_20 = arith.constant dense<0.000000e+00> : vector<64x64xf32>
    %25 = tpu.matmul %24, %19, %cst_20 {dimension_numbers = #tpu.dot_dimension_numbers<[1], [0], [0], [1], [0, 0, 1, 1], [], []>, precision = #tpu.contract_precision<fp32>} : vector<64x128xf32>, vector<128x64xf32>, vector<64x64xf32> -> vector<64x64xf32>
    %c664 = arith.constant 664 : index
    %c0_21 = arith.constant 0 : index
    %26 = vector.load %arg2[%c664, %c0_21] : memref<912x128xf32, #tpu.memory_space<vmem>>, vector<64x64xf32>
    %cst_22 = arith.constant dense<0.000000e+00> : vector<64x64xf32>
    %27 = tpu.matmul %25, %26, %cst_22 {dimension_numbers = #tpu.dot_dimension_numbers<[1], [0], [0], [1], [0, 0, 1, 1], [], []>, precision = #tpu.contract_precision<fp32>} : vector<64x64xf32>, vector<64x64xf32>, vector<64x64xf32> -> vector<64x64xf32>
    %28 = arith.addf %23, %27 : vector<64x64xf32>
    %c512 = arith.constant 512 : index
    %c0_23 = arith.constant 0 : index
    %29 = vector.load %arg2[%c512, %c0_23] : memref<912x128xf32, #tpu.memory_space<vmem>>, vector<64x128xf32>
    %cst_24 = arith.constant dense<0.000000e+00> : vector<64x64xf32>
    %30 = tpu.matmul %29, %19, %cst_24 {dimension_numbers = #tpu.dot_dimension_numbers<[1], [0], [0], [1], [0, 0, 1, 1], [], []>, precision = #tpu.contract_precision<fp32>} : vector<64x128xf32>, vector<128x64xf32>, vector<64x64xf32> -> vector<64x64xf32>
    %c728 = arith.constant 728 : index
    %c0_25 = arith.constant 0 : index
    %31 = vector.load %arg2[%c728, %c0_25] : memref<912x128xf32, #tpu.memory_space<vmem>>, vector<64x64xf32>
    %cst_26 = arith.constant dense<0.000000e+00> : vector<64x64xf32>
    %32 = tpu.matmul %30, %31, %cst_26 {dimension_numbers = #tpu.dot_dimension_numbers<[1], [0], [0], [1], [0, 0, 1, 1], [], []>, precision = #tpu.contract_precision<fp32>} : vector<64x64xf32>, vector<64x64xf32>, vector<64x64xf32> -> vector<64x64xf32>
    %33 = arith.addf %28, %32 : vector<64x64xf32>
    %c896 = arith.constant 896 : index
    %c0_27 = arith.constant 0 : index
    %34 = vector.load %arg2[%c896, %c0_27] : memref<912x128xf32, #tpu.memory_space<vmem>>, vector<1x64xf32>
    %35 = vector.broadcast %34 : vector<1x64xf32> to vector<64x64xf32>
    %36 = arith.addf %33, %35 : vector<64x64xf32>
    %cst_28 = arith.constant 0.000000e+00 : f32
    %37 = vector.broadcast %cst_28 : f32 to vector<64x64xf32>
    %38 = arith.maximumf %36, %37 : vector<64x64xf32>
    %c792 = arith.constant 792 : index
    %c0_29 = arith.constant 0 : index
    %39 = vector.load %arg2[%c792, %c0_29] : memref<912x128xf32, #tpu.memory_space<vmem>>, vector<32x64xf32>
    %cst_30 = arith.constant dense<0.000000e+00> : vector<32x64xf32>
    %40 = tpu.matmul %39, %38, %cst_30 {dimension_numbers = #tpu.dot_dimension_numbers<[1], [0], [0], [1], [0, 0, 1, 1], [], []>, precision = #tpu.contract_precision<fp32>} : vector<32x64xf32>, vector<64x64xf32>, vector<32x64xf32> -> vector<32x64xf32>
    %c824 = arith.constant 824 : index
    %c0_31 = arith.constant 0 : index
    %41 = vector.load %arg2[%c824, %c0_31] : memref<912x128xf32, #tpu.memory_space<vmem>>, vector<64x4xf32>
    %cst_32 = arith.constant dense<0.000000e+00> : vector<32x4xf32>
    %42 = tpu.matmul %40, %41, %cst_32 {dimension_numbers = #tpu.dot_dimension_numbers<[1], [0], [0], [1], [0, 0, 1, 1], [], []>, precision = #tpu.contract_precision<fp32>} : vector<32x64xf32>, vector<64x4xf32>, vector<32x4xf32> -> vector<32x4xf32>
    %c904 = arith.constant 904 : index
    %c0_33 = arith.constant 0 : index
    %43 = vector.load %arg2[%c904, %c0_33] : memref<912x128xf32, #tpu.memory_space<vmem>>, vector<1x4xf32>
    %44 = vector.broadcast %43 : vector<1x4xf32> to vector<32x4xf32>
    %45 = arith.addf %42, %44 : vector<32x4xf32>
    %c0_34 = arith.constant 0 : index
    %c0_35 = arith.constant 0 : index
    %46 = vector.load %arg3[%c0_34, %c0_35] : memref<32x4xf32, #tpu.memory_space<vmem>>, vector<32x4xf32>
    tpu.vector_store %arg3[%c0_34, %c0_35], %45 {strides = array<i32>} : memref<32x4xf32, #tpu.memory_space<vmem>>, vector<32x4xf32>,
    return
  }
  func.func @transform_0(%arg0: i32) -> (i32, i32) {
    %c0_i32 = arith.constant 0 : i32
    %c0_i32_0 = arith.constant 0 : i32
    return %arg0, %c0_i32 : i32, i32
  }
  func.func @transform_1(%arg0: i32) -> (i32, i32) {
    %c0_i32 = arith.constant 0 : i32
    %c0_i32_0 = arith.constant 0 : i32
    %c0_i32_1 = arith.constant 0 : i32
    return %c0_i32, %c0_i32_0 : i32, i32
  }
  func.func @transform_2(%arg0: i32) -> (i32, i32) {
    %c0_i32 = arith.constant 0 : i32
    %c0_i32_0 = arith.constant 0 : i32
    return %arg0, %c0_i32 : i32, i32
  }
}

</mosaic_0001>

<bundles_post_ra>
// kernel: fwd.1
= control target key start
LH: loop header
LB: loop body
LE: loop exit
PB: predicated region body
PF: predicated region fallthrough
CT: control target
= control target key end

     0   :  { %7 = vsyncpa [#allocation3], 0  ;;  %s21815_s9 = smov 0   ;;  %s25765_s0 = inlined_call_operand.vmem [shape: f32[256,8], index: 0, kind: input, shape index: {}]   ;;  %s25766_s1 = inlined_call_operand.hbm [shape: f32[912,128], index: 1, kind: input, shape index: {}]   ;;  %s25767_s2 = inlined_call_operand.vmem [shape: f32[64,4], index: 2, kind: output, shape index: {}]  }
   0x1 LB: > { %s21821_s10 = sadd.s32 4294967295, %s21795_s9   ;;  %p14496_p0 = scmp.ge.s32.totalorder %s21795_s9, 1  ;;  %s21795_s9 = sphi %s21815_s9, %s13_s9  }
   0x2   : > { %p91_p1 = scmp.lt.s32.totalorder %s21795_s9, 3  ;;  %s21797_s11 = smov [#allocation2]  }
   0x3   : > { %s103_s12 = sshll.u32 %s21797_s11, 4  ;;  %p25768_p3 = scmp.eq.s32.totalorder %s21821_s10, 0  ;;  %s104_s12 = int_to_ptr.vmem [resolvable:$true] %s103_s12 }
   0x4   : > { %p21825_p2 = pnand %p14496_p0, %p91_p1  ;;  %s21757_s17 = scalar_lea.hbm %s25766_s1, 14592 }
   0x5   : > { %p21758_p6 = scmp.ne.s32.totalorder %s25766_s1, %s21757_s17  ;;  %p21764_p10 = scmp.lt.u32.totalorder %s21757_s17, %s25766_s1 }
   0x6   : > { %s25997_s13 = scalar_select %p21825_p2, 1, 0 }
   0x7   : > { %p21740_p4 = pneg %p21825_p2 }
   0x9   : > { %p21834_p5 = pnand %p25768_p3, %p21740_p4 }
   0xb   : > { %p21759_p7 = pneg %p21834_p5 }
   0xd   : > { %p21760_p8 = pnand %p21759_p7, %p21758_p6 }
   0xf   : > { %p21761_p9 = pneg %p21760_p8 }
  0x11   : > { %p21766_p11 = pnand %p21764_p10, %p21761_p9 }
  0x13   : > { %21769 = shalt.err (!%p21766_p11)
}
  0x14   : > { %s21770_s22 = scalar_lea.vmem %s104_s12, 14592  ;;  %p21778_p1 = scmp.lt.s32.totalorder %s104_s12, %s104_s12 }
  0x15   : > { %p21771_p12 = scmp.ne.s32.totalorder %s104_s12, %s21770_s22  ;;  %p21779_p4 = scmp.lt.s32.totalorder %s21770_s22, %s21770_s22 }
  0x17   : > { %p21773_p13 = pnand %p21771_p12, %p21759_p7  ;;  %p21780_p3 = por %p21779_p4, %p21778_p1 }
  0x19   : > { %p21774_p0 = pneg %p21773_p13 }
  0x1b   : > { %p21781_p2 = pnand %p21780_p3, %p21774_p0 }
  0x1d   : > { %21784 = shalt.err (!%p21781_p2)
}
  0x1e   : > { %s21798_s23 = smov 128   ;;  %s21799_s24 = smov 8  }
  0x1f   : > { %21743 = dma.hbm_to_vmem [thread:$0]  (!%p21834_p5), %s25766_s1, 14592, %s104_s12, [#allocation3], %s21798_s23, %s21798_s23, %s21799_s24  }
  0x20   : > { %p25999_p6 = scmp.ne.s32.totalorder %s25997_s13, 0 }
  0x22   : > { %128 = sbr.rel (%p25999_p6) target bundleno = 2992 (0xbb0), region = 28 }
  0x29   : > { %p26000_p8 = scmp.eq.s32.totalorder %s21821_s10, 0 }
  0x2b   : > { %21790 = dma.done.wait (%p26000_p8), [#allocation3], 14592   ;;  %p26001_p7 = pmov %p26000_p8 }
  0x2c   : > { %s14501_s27 = sshll.u32 %s21821_s10, 4  ;;  %vm2784_vm0 = vcmask 64512   ;;  %vm9474_vm1 = vcmask 523264   ;;  %s14503_s4 = sshll.u32 %s21821_s10, 2  ;;  %vm14421_vm2 = vcmask 31744  }
  0x2d   : > { %21792 = vsyncadd (%p26001_p7), [#allocation3], 4294952704  ;;  %p151_p2 = scmp.lt.s32.totalorder %s14501_s27, 31  ;;  %p157_p3 = scmp.lt.s32.totalorder %s14503_s4, 7 }
  0x2f   : > { %s26330_s27 = smov (!%p151_p2, %s14501_s27), 31  ;;  %s26332_s4 = smov (!%p157_p3, %s14503_s4), 7 }
  0x30   : > { %s14502_s28 = sshll.u32 %s26330_s27, 3  ;;  %s14504_s5 = sshll.u32 %s26332_s4, 3 }
  0x31   : > { %s21864_s3 = scalar_lea.vmem %s25765_s0, %s14502_s28  ;;  %s160_s8 = scalar_lea.vmem %s25767_s2, %s14504_s5 }
  0x32   : > { %v162_v0 = vld [vmem:[%s21864_s3] sm:$0xff]  ;;  %v163_v1 = vld [vmem:[%s21864_s3 + $0x8] sm:$0xff]  ;;  %v164_v2 = vld [vmem:[%s21864_s3 + $0x10] sm:$0xff] }
  0x33   : > { %v195_v3 = vand.u32 4294901760, %v162_v0  ;;  %v198_v4 = vand.u32 4294901760, %v163_v1  ;;  %v165_v5 = vld [vmem:[%s21864_s3 + $0x18] sm:$0xff]  ;;  %v201_v6 = vand.u32 4294901760, %v164_v2  ;;  %v166_v7 = vld [vmem:[%s21864_s3 + $0x20] sm:$0xff]  ;;  %v167_v8 = vld [vmem:[%s21864_s3 + $0x28] sm:$0xff] }
  0x34   : > { %v204_v9 = vand.u32 4294901760, %v165_v5  ;;  %v207_v10 = vand.u32 4294901760, %v166_v7  ;;  %v210_v11 = vand.u32 4294901760, %v167_v8  ;;  %v168_v12 = vld [vmem:[%s21864_s3 + $0x30] sm:$0xff]  ;;  %v169_v13 = vld [vmem:[%s21864_s3 + $0x38] sm:$0xff]  ;;  %v170_v18 = vld [vmem:[%s21864_s3 + $0x40] sm:$0xff] }
  0x35   : > { %v21874_v14 = vpack.c.bf16 %v198_v4, %v195_v3  ;;  %v21876_v15 = vsub.f32 %v162_v0, %v195_v3  ;;  %v21878_v16 = vsub.f32 %v163_v1, %v198_v4  ;;  %v213_v17 = vand.u32 4294901760, %v168_v12  ;;  %v171_v26 = vld [vmem:[%s21864_s3 + $0x48] sm:$0xff]  ;;  %v172_v27 = vld [vmem:[%s21864_s3 + $0x50] sm:$0xff]  ;;  %v173_v36 = vld [vmem:[%s21864_s3 + $0x58] sm:$0xff] }
  0x36   : > { %v21881_v19 = vpack.c.bf16 %v204_v9, %v201_v6  ;;  %v216_v20 = vand.u32 4294901760, %v169_v13  ;;  %v21883_v21 = vsub.f32 %v164_v2, %v201_v6  ;;  %v21886_v22 = vpack.c.bf16 %v210_v11, %v207_v10  ;;  %v174_v53 = vld [vmem:[%s21864_s3 + $0x60] sm:$0xff]  ;;  %v175_v57 = vld [vmem:[%s21864_s3 + $0x68] sm:$0xff]  ;;  %v21939_v58 = vld [vmem:[%s21864_s3 + $0x70] sm:$0xff] }
  0x37   : > { %19293 = vmatprep.subr.bf16.mxu1 %v21874_v14  ;;  %v25788_v23 = vand.u32 4294901760, %v21876_v15  ;;  %v25787_v24 = vand.u32 4294901760, %v21878_v16  ;;  %v21890_v25 = vsub.f32 %v165_v5, %v204_v9  ;;  %v219_v30 = vand.u32 4294901760, %v170_v18  ;;  %v21957_v3 = vld [vmem:[%s21864_s3 + $0x78] sm:$0xff]  ;;  %v178_v4 = vld [vmem:[#allocation2] sm:$0xff]  ;;  %v179_v9 = vld [vmem:[#allocation2 + $0x8] sm:$0xff] }
  0x38   : > { %26002 = vst [vmem:[#allocation5_spill] sm:$0xff] %v21881_v19  ;;  %19295 = vmatpush3.bf16.msra.mxu1 %v21874_v14  ;;  %v21895_v28 = vpack.c.bf16 %v216_v20, %v213_v17  ;;  %v25785_v29 = vand.u32 4294901760, %v21883_v21  ;;  %v21898_v31 = vsub.f32 %v166_v7, %v207_v10  ;;  %v21908_v35 = vsub.f32 %v167_v8, %v210_v11 }
  0x39   : > { %19297 = vmatprep.subr.bf16.mxu1 %v21881_v19  ;;  %v439_v32 = vsub.f32 %v21876_v15, %v25788_v23  ;;  %v446_v33 = vsub.f32 %v21878_v16, %v25787_v24  ;;  %v25784_v34 = vand.u32 4294901760, %v21890_v25  ;;  %v222_v38 = vand.u32 4294901760, %v171_v26  ;;  %v188_v24 = vld [vmem:[#allocation2 + $0x50] sm:$0xff]  ;;  %v189_v23 = vld [vmem:[#allocation2 + $0x58] sm:$0xff] }
  0x3a   : > { %v453_v37 = vsub.f32 %v21883_v21, %v25785_v29  ;;  %v25782_v39 = vand.u32 4294901760, %v21898_v31  ;;  %v225_v40 = vand.u32 4294901760, %v172_v27  ;;  %v25781_v44 = vand.u32 4294901760, %v21908_v35 }
  0x3b   : > { %v440_v41 = vand.u32 4294901760, %v439_v32  ;;  %v447_v42 = vand.u32 4294901760, %v446_v33  ;;  %v460_v43 = vsub.f32 %v21890_v25, %v25784_v34  ;;  %v228_v47 = vand.u32 4294901760, %v173_v36 }
  0x3c   : > { %19299 = vmatpush3.bf16.msra.mxu1 %v21881_v19  ;;  %v454_v45 = vand.u32 4294901760, %v453_v37  ;;  %v467_v46 = vsub.f32 %v21898_v31, %v25782_v39  ;;  %v21923_v48 = vsub.f32 %v168_v12, %v213_v17  ;;  %v474_v51 = vsub.f32 %v21908_v35, %v25781_v44 }
  0x3d   : > { %19301 = vmatprep.subr.bf16.mxu1 %v21886_v22  ;;  %v21926_v49 = vpack.c.bf16 %v447_v42, %v440_v41  ;;  %v461_v50 = vand.u32 4294901760, %v460_v43  ;;  %v21931_v52 = vsub.f32 %v169_v13, %v216_v20  ;;  %v21934_v54 = vpack.c.bf16 %v222_v38, %v219_v30  ;;  %v180_v41 = vld [vmem:[#allocation2 + $0x10] sm:$0xff] }
  0x3e   : > { %v468_v55 = vand.u32 4294901760, %v467_v46  ;;  %v25780_v56 = vand.u32 4294901760, %v21923_v48  ;;  %v475_v60 = vand.u32 4294901760, %v474_v51  ;;  %v21944_v61 = vpack.c.bf16 %v228_v47, %v225_v40 }
  0x3f   : > { %26003 = vst [vmem:[#allocation6_spill] sm:$0xff] %v21926_v49  ;;  %19325 = vmatprep.subr.bf16.mxu0 %v21926_v49  ;;  %v21942_v59 = vpack.c.bf16 %v461_v50, %v454_v45  ;;  %v25779_v62 = vand.u32 4294901760, %v21931_v52  ;;  %v231_v0 = vand.u32 4294901760, %v174_v53  ;;  %v21952_v1 = vsub.f32 %v170_v18, %v219_v30 }
  0x40   : > { %19303 = vmatpush3.bf16.msra.mxu1 %v21886_v22  ;;  %19327 = vmatpush3.bf16.msra.mxu0 %v21926_v49  ;;  %v481_v63 = vsub.f32 %v21923_v48, %v25780_v56  ;;  %v21954_v2 = vsub.f32 %v171_v26, %v222_v38  ;;  %v21961_v5 = vpack.c.bf16 %v475_v60, %v468_v55  ;;  %v234_v7 = vand.u32 4294901760, %v175_v57  ;;  %v181_v55 = vld [vmem:[#allocation2 + $0x18] sm:$0xff] }
  0x41   : > { %26004 = vst [vmem:[#allocation7_spill] sm:$0xff] %v21942_v59  ;;  %19305 = vmatprep.subr.bf16.mxu1 %v21895_v28  ;;  %19329 = vmatprep.subr.bf16.mxu0 %v21942_v59  ;;  %v488_v6 = vsub.f32 %v21931_v52, %v25779_v62  ;;  %v237_v8 = vand.u32 4294901760, %v21939_v58  ;;  %v25776_v11 = vand.u32 4294901760, %v21952_v1  ;;  %v21969_v13 = vsub.f32 %v172_v27, %v225_v40 }
  0x42   : > { %26005 = vst [vmem:[#allocation8_spill] sm:$0xff] %v21961_v5  ;;  %v482_v10 = vand.u32 4294901760, %v481_v63  ;;  %v25775_v12 = vand.u32 4294901760, %v21954_v2  ;;  %v240_v18 = vand.u32 4294901760, %v21957_v3  ;;  %v21972_v20 = vsub.f32 %v173_v36, %v228_v47 }
  0x43   : > { %v489_v17 = vand.u32 4294901760, %v488_v6  ;;  %v21974_v26 = vand.u32 4294901760, %v178_v4  ;;  %v495_v30 = vsub.f32 %v21952_v1, %v25776_v11  ;;  %v25774_v32 = vand.u32 4294901760, %v21969_v13 }
  0x44   : > { %19307 = vmatpush3.bf16.msra.mxu1 %v21895_v28  ;;  %19331 = vmatpush3.bf16.msra.mxu0 %v21942_v59  ;;  %v502_v27 = vsub.f32 %v21954_v2, %v25775_v12  ;;  %v21985_v33 = vand.u32 4294901760, %v179_v9  ;;  %v25772_v37 = vand.u32 4294901760, %v21972_v20  ;;  %v21995_v40 = vsub.f32 %v174_v53, %v231_v0  ;;  %v185_v12 = vld [vmem:[#allocation2 + $0x38] sm:$0xff] }
  0x45   : > { %26006 = vst [vmem:[#allocation9_spill] sm:$0xff] %v21974_v26  ;;  %19309 = vmatprep.subr.bf16.mxu1 %v21934_v54  ;;  %19333 = vmatprep.subr.bf16.mxu0 %v21961_v5  ;;  %v21989_v36 = vpack.c.bf16 %v489_v17, %v482_v10  ;;  %v21993_v38 = vsub.f32 %v178_v4, %v21974_v26  ;;  %v496_v42 = vand.u32 4294901760, %v495_v30  ;;  %v22017_v6 = vand.u32 4294901760, %v180_v41 }
  0x46   : > { %26007 = vst [vmem:[#allocation10_spill] sm:$0xff] %v21985_v33  ;;  %v503_v43 = vand.u32 4294901760, %v502_v27  ;;  %v509_v45 = vsub.f32 %v21969_v13, %v25774_v32  ;;  %v22001_v46 = vsub.f32 %v179_v9, %v21985_v33  ;;  %16344 = vmatprep.mubr.f32.mxu0 %v21974_v26  ;;  %v516_v47 = vsub.f32 %v21972_v20, %v25772_v37 }
  0x47   : > { %26008 = vst [vmem:[#allocation11_spill] sm:$0xff] %v21989_v36  ;;  %v25770_v50 = vand.u32 4294901760, %v21993_v38  ;;  %v25771_v51 = vand.u32 4294901760, %v21995_v40  ;;  %v22009_v53 = vsub.f32 %v175_v57, %v234_v7  ;;  %v22013_v60 = vpack.c.bf16 %v234_v7, %v231_v0  ;;  %26011 = vst [vmem:[#allocation14_spill] sm:$0xff] %v22017_v6 }
  0x48   : > { %26009 = vst [vmem:[#allocation12_spill] sm:$0xff] %v22001_v46  ;;  %19311 = vmatpush3.bf16.msra.mxu1 %v21934_v54  ;;  %19335 = vmatpush3.bf16.msra.mxu0 %v21961_v5  ;;  %v22015_v63 = vpack.c.bf16 %v503_v43, %v496_v42  ;;  %v510_v4 = vand.u32 4294901760, %v509_v45  ;;  %v517_v9 = vand.u32 4294901760, %v516_v47  ;;  %v25777_v7 = vand.u32 4294901760, %v22001_v46  ;;  %v182_v42 = vld [vmem:[#allocation2 + $0x20] sm:$0xff]  ;;  %v183_v43 = vld [vmem:[#allocation2 + $0x28] sm:$0xff] }
  0x49   : > { %19313 = vmatprep.subr.bf16.mxu1 %v21944_v61  ;;  %19337 = vmatprep.subr.bf16.mxu0 %v21989_v36  ;;  %v278_v57 = vsub.f32 %v21993_v38, %v25770_v50  ;;  %v523_v10 = vsub.f32 %v21995_v40, %v25771_v51  ;;  %v25773_v0 = vand.u32 4294901760, %v22009_v53  ;;  %v22030_v17 = vsub.f32 %v180_v41, %v22017_v6 }
  0x4a   : > { %26010 = vst [vmem:[#allocation13_spill] sm:$0xff] %v22015_v63  ;;  %v22032_v30 = vand.u32 4294901760, %v181_v55  ;;  %v22035_v27 = vsub.f32 %v21939_v58, %v237_v8  ;;  %v22037_v45 = vpack.c.bf16 %v240_v18, %v237_v8  ;;  %v22039_v47 = vpack.c.bf16 %v517_v9, %v510_v4 }
  0x4b   : > { %26012 = vst [vmem:[#allocation15_spill] sm:$0xff] %v22030_v17  ;;  %v279_v50 = vand.u32 4294901760, %v278_v57  ;;  %v530_v51 = vsub.f32 %v22009_v53, %v25773_v0  ;;  %v524_v41 = vand.u32 4294901760, %v523_v10  ;;  %v25783_v37 = vand.u32 4294901760, %v22030_v17  ;;  %v184_v10 = vld [vmem:[#allocation2 + $0x30] sm:$0xff] }
  0x4c   : > { %26013 = vst [vmem:[#allocation16_spill] sm:$0xff] %v22032_v30  ;;  %26014 = vst [vmem:[#allocation17_spill] sm:$0xff] %v22039_v47  ;;  %19315 = vmatpush3.bf16.msra.mxu1 %v21944_v61  ;;  %19339 = vmatpush3.bf16.msra.mxu0 %v21989_v36  ;;  %v22048_v58 = vsub.f32 %v181_v55, %v22032_v30  ;;  %v25778_v8 = vand.u32 4294901760, %v22035_v27  ;;  %v22054_v9 = vsub.f32 %v21957_v3, %v240_v18  ;;  %v191_v36 = vld [vmem:[#allocation2 + $0x68] sm:$0xff] }
  0x4d   : > { %19317 = vmatprep.subr.bf16.mxu1 %v22013_v60  ;;  %19341 = vmatprep.subr.bf16.mxu0 %v22015_v63  ;;  %v531_v4 = vand.u32 4294901760, %v530_v51  ;;  %v22056_v57 = vand.u32 4294901760, %v182_v42  ;;  %v22058_v0 = vand.u32 4294901760, %v183_v43  ;;  %v288_v55 = vsub.f32 %v22001_v46, %v25777_v7  ;;  %v1483_v46 = vld [vmem:[#allocation2 + $0x90] sm:$0xff] }
  0x4e   : > { %26015 = vst [vmem:[#allocation18_spill] sm:$0xff] %v22048_v58  ;;  %16288 = vmatprep.mubr.f32.mxu1 %v279_v50  ;;  %v537_v32 = vsub.f32 %v22035_v27, %v25778_v8  ;;  %v25789_v51 = vand.u32 4294901760, %v22048_v58  ;;  %v25786_v3 = vand.u32 4294901760, %v22054_v9  ;;  %v186_v50 = vld [vmem:[#allocation2 + $0x40] sm:$0xff]  ;;  %v298_v8 = vsub.f32 %v22030_v17, %v25783_v37  ;;  %v1482_v17 = vld [vmem:[#allocation2 + $0x88] sm:$0xff] }
  0x4f   : > { %26016 = vst [vmem:[#allocation19_spill] sm:$0xff] %v22056_v57  ;;  %26017 = vst [vmem:[#allocation20_spill] sm:$0xff] %v22058_v0  ;;  %v22069_v18 = vsub.f32 %v182_v42, %v22056_v57  ;;  %v22072_v11 = vsub.f32 %v183_v43, %v22058_v0  ;;  %v22076_v7 = vpack.c.bf16 %v531_v4, %v524_v41  ;;  %v22081_v62 = vand.u32 4294901760, %v184_v10  ;;  %v187_v41 = vld [vmem:[#allocation2 + $0x48] sm:$0xff] }
  0x50   : > { %19319 = vmatpush3.bf16.msra.mxu1 %v22013_v60  ;;  %19343 = vmatpush3.bf16.msra.mxu0 %v22015_v63  ;;  %v538_v42 = vand.u32 4294901760, %v537_v32  ;;  %v544_v43 = vsub.f32 %v22054_v9, %v25786_v3  ;;  %v22089_v44 = vand.u32 4294901760, %v185_v12  ;;  %v289_v4 = vand.u32 4294901760, %v288_v55 }
  0x51   : > { %26018 = vst [vmem:[#allocation21_spill] sm:$0xff] %v22069_v18  ;;  %26019 = vst [vmem:[#allocation22_spill] sm:$0xff] %v22072_v11  ;;  %19321 = vmatprep.subr.bf16.mxu1 %v22037_v45  ;;  %19345 = vmatprep.subr.bf16.mxu0 %v22039_v47  ;;  %v25800_v56 = vand.u32 4294901760, %v22069_v18  ;;  %v22092_v39 = vsub.f32 %v184_v10, %v22081_v62  ;;  %v22094_v37 = vand.u32 4294901760, %v186_v50  ;;  %v22108_v55 = vand.u32 4294901760, %v187_v41 }
  0x52   : > { %26020 = vst [vmem:[#allocation23_spill] sm:$0xff] %v22076_v7  ;;  %26021 = vst [vmem:[#allocation24_spill] sm:$0xff] %v22081_v62  ;;  %v308_v34 = vsub.f32 %v22048_v58, %v25789_v51  ;;  %v545_v32 = vand.u32 4294901760, %v544_v43  ;;  %v22101_v3 = vsub.f32 %v185_v12, %v22089_v44  ;;  %v299_v43 = vand.u32 4294901760, %v298_v8 }
  0x53   : > { %26022 = vst [vmem:[#allocation25_spill] sm:$0xff] %v22089_v44  ;;  %26023 = vst [vmem:[#allocation26_spill] sm:$0xff] %v22092_v39  ;;  %v22106_v10 = vsub.f32 %v186_v50, %v22094_v37  ;;  %v318_v12 = vsub.f32 %v22069_v18, %v25800_v56  ;;  %v25807_v29 = vand.u32 4294901760, %v22092_v39  ;;  %v22119_v26 = vsub.f32 %v187_v41, %v22108_v55 }
  0x54   : > { %26024 = vst [vmem:[#allocation27_spill] sm:$0xff] %v22094_v37  ;;  %26025 = vst [vmem:[#allocation28_spill] sm:$0xff] %v22101_v3  ;;  %19323 = vmatpush3.bf16.msra.mxu1 %v22037_v45  ;;  %19347 = vmatpush3.bf16.msra.mxu0 %v22039_v47  ;;  %v22112_v51 = vpack.c.bf16 %v545_v32, %v538_v42  ;;  %v22121_v50 = vand.u32 4294901760, %v188_v24  ;;  %v190_v47 = vld [vmem:[#allocation2 + $0x60] sm:$0xff]  ;;  %v309_v63 = vand.u32 4294901760, %v308_v34  ;;  %v26030_v58 = vand.u32 4294901760, %v22072_v11 }
  0x55   : > { %26026 = vst [vmem:[#allocation29_spill] sm:$0xff] %v22106_v10  ;;  %26027 = vst [vmem:[#allocation30_spill] sm:$0xff] %v22108_v55  ;;  %19349 = vmatprep.subr.bf16.mxu0 %v22076_v7  ;;  %19485 = vmatprep.subr.bf16.mxu1 %v21874_v14  ;;  %v22127_v32 = vand.u32 4294901760, %v189_v23  ;;  %v22133_v41 = vpack.c.bf16 %v21878_v16, %v21876_v15  ;;  %v319_v34 = vand.u32 4294901760, %v318_v12  ;;  %v22143_v42 = vand.u32 4294901760, %v190_v47 }
  0x56   : > { %26028 = vst [vmem:[#allocation31_spill] sm:$0xff] %v22112_v51  ;;  %26029 = vst [vmem:[#allocation32_spill] sm:$0xff] %v22121_v50  ;;  %v328_v8 = vsub.f32 %v22072_v11, %v26030_v58  ;;  %v338_v58 = vsub.f32 %v22092_v39, %v25807_v29  ;;  %v22141_v56 = vsub.f32 %v188_v24, %v22121_v50  ;;  %v22147_v11 = vand.u32 4294901760, %v191_v36  ;;  %v193_v39 = vld [vmem:[#allocation2 + $0x78] sm:$0xff] }
  0x57   : > { %16289 = vmatmul.mubr.f32.vlgmr.msra.gmra.mrb[0].mxu1 %v289_v4  ;;  %26031 = vst [vmem:[#allocation33_spill] sm:$0xff] %v22127_v32  ;;  %26032 = vst [vmem:[#allocation34_spill] sm:$0xff] %v22133_v41  ;;  %v192_v4 = vld [vmem:[#allocation2 + $0x70] sm:$0xff]  ;;  %v26035_v12 = vand.u32 4294901760, %v22101_v3  ;;  %v22153_v29 = vsub.f32 %v189_v23, %v22127_v32  ;;  %v26036_v24 = vand.u32 4294901760, %v22106_v10 }
  0x58   : > { %19351 = vmatpush3.bf16.msra.mxu0 %v22076_v7  ;;  %19487 = vmatpush3.bf16.msra.mxu1 %v21874_v14  ;;  %26033 = vst [vmem:[#allocation35_spill] sm:$0xff] %v22143_v42  ;;  %26034 = vst [vmem:[#allocation36_spill] sm:$0xff] %v22147_v11  ;;  %v22165_v23 = vand.u32 4294901760, %v192_v4 }
  0x59   : > { %16291 = vmatprep.mubr.f32.mxu1 %v299_v43  ;;  %19353 = vmatprep.subr.bf16.mxu0 %v22112_v51  ;;  %v329_v43 = vand.u32 4294901760, %v328_v8  ;;  %v348_v18 = vsub.f32 %v22101_v3, %v26035_v12  ;;  %v358_v7 = vsub.f32 %v22106_v10, %v26036_v24  ;;  %v22163_v12 = vsub.f32 %v190_v47, %v22143_v42 }
  0x5a   : > { %19489 = vmatprep.subr.bf16.mxu1 %v21881_v19  ;;  %26038 = vst [vmem:[#allocation38_spill] sm:$0xff] %v22165_v23  ;;  %v26040_v24 = vand.u32 4294901760, %v22119_v26  ;;  %v22176_v10 = vsub.f32 %v191_v36, %v22147_v11  ;;  %v22180_v3 = vand.u32 4294901760, %v193_v39  ;;  %v26042_v36 = vand.u32 4294901760, %v22141_v56 }
  0x5b   : > { %16292 = vmatmul.mubr.f32.gmra.mrb[2].mxu1 %v309_v63  ;;  %v339_v63 = vand.u32 4294901760, %v338_v58  ;;  %26037 = vst [vmem:[#allocation37_spill] sm:$0xff] %v22163_v12  ;;  %v1481_v58 = vld [vmem:[#allocation2 + $0x80] sm:$0xff]  ;;  %v349_v47 = vand.u32 4294901760, %v348_v18 }
  0x5c   : > { %19355 = vmatpush3.bf16.msra.mxu0 %v22112_v51  ;;  %19491 = vmatpush3.bf16.msra.mxu1 %v21881_v19  ;;  %v22170_v51 = vpack.c.bf16 %v21890_v25, %v21883_v21  ;;  %26041 = vst [vmem:[#allocation40_spill] sm:$0xff] %v22180_v3  ;;  %v359_v19 = vand.u32 4294901760, %v358_v7  ;;  %v22192_v8 = vand.u32 4294901760, %v1481_v58  ;;  %v22206_v18 = vsub.f32 %v193_v39, %v22180_v3 }
  0x5d   : > { %16294 = vmatprep.mubr.f32.mxu1 %v319_v34  ;;  %19357 = vmatprep.subr.bf16.mxu0 %v22133_v41  ;;  %v368_v34 = vsub.f32 %v22119_v26, %v26040_v24  ;;  %v22190_v24 = vsub.f32 %v192_v4, %v22165_v23 }
  0x5e   : > { %19493 = vmatprep.subr.bf16.mxu1 %v21886_v22  ;;  %26039 = vst [vmem:[#allocation39_spill] sm:$0xff] %v22170_v51  ;;  %26043 = vst [vmem:[#allocation41_spill] sm:$0xff] %v22192_v8 }
  0x5f   : > { %16295 = vmatmul.mubr.f32.gmra.mrb[4].mxu1 %v329_v43  ;;  %16345 = vmatmul.mubr.f32.vlgmr.msra.gmra.mrb[0].mxu0 %v21985_v33  ;;  %v378_v43 = vsub.f32 %v22141_v56, %v26042_v36  ;;  %v369_v7 = vand.u32 4294901760, %v368_v34  ;;  %v26045_v36 = vand.u32 4294901760, %v22153_v29  ;;  %26046 = vst [vmem:[#allocation43_spill] sm:$0xff] %v22206_v18  ;;  %v22208_v33 = vand.u32 4294901760, %v1482_v17  ;;  %v1484_v34 = vld [vmem:[#allocation2 + $0x98] sm:$0xff] }
  0x60   : > { %19359 = vmatpush3.bf16.msra.mxu0 %v22133_v41  ;;  %19495 = vmatpush3.bf16.msra.mxu1 %v21886_v22  ;;  %v22210_v41 = vand.u32 4294901760, %v1483_v46 }
  0x61   : > { %16297 = vmatprep.mubr.f32.mxu1 %v339_v63  ;;  %16347 = vmatprep.mubr.f32.mxu0 %v22017_v6  ;;  %v22198_v63 = vpack.c.bf16 %v21908_v35, %v21898_v31  ;;  %v388_v4 = vsub.f32 %v22153_v29, %v26045_v36  ;;  %26047 = vst [vmem:[#allocation44_spill] sm:$0xff] %v22208_v33  ;;  %v26049_v6 = vand.u32 4294901760, %v22163_v12 }
  0x62   : > { %19361 = vmatprep.subr.bf16.mxu0 %v22170_v51  ;;  %19497 = vmatprep.subr.bf16.mxu1 %v21895_v28  ;;  %26048 = vst [vmem:[#allocation45_spill] sm:$0xff] %v22210_v41 }
  0x63   : > { %26044 = vst [vmem:[#allocation42_spill] sm:$0xff] %v22198_v63  ;;  %16298 = vmatmul.mubr.f32.gmra.mrb[6].mxu1 %v349_v47  ;;  %16348 = vmatmul.mubr.f32.gmra.mrb[2].mxu0 %v22032_v30  ;;  %v379_v47 = vand.u32 4294901760, %v378_v43  ;;  %v398_v36 = vsub.f32 %v22163_v12, %v26049_v6  ;;  %v22220_v30 = vsub.f32 %v1481_v58, %v22192_v8  ;;  %v1485_v6 = vld [vmem:[#allocation2 + $0xa0] sm:$0xff]  ;;  %v389_v58 = vand.u32 4294901760, %v388_v4 }
  0x64   : > { %19363 = vmatpush3.bf16.msra.mxu0 %v22170_v51  ;;  %19499 = vmatpush3.bf16.msra.mxu1 %v21895_v28  ;;  %v22226_v51 = vpack.c.bf16 %v21931_v52, %v21923_v48  ;;  %v22236_v8 = vsub.f32 %v1482_v17, %v22208_v33  ;;  %v22239_v12 = vsub.f32 %v1483_v46, %v22210_v41  ;;  %v22248_v17 = vand.u32 4294901760, %v1485_v6  ;;  %v1487_v33 = vld [vmem:[#allocation2 + $0xb0] sm:$0xff] }
  0x65   : > { %16300 = vmatprep.mubr.f32.mxu1 %v359_v19  ;;  %16350 = vmatprep.mubr.f32.mxu0 %v22056_v57  ;;  %26050 = vst [vmem:[#allocation46_spill] sm:$0xff] %v22220_v30  ;;  %v26052_v19 = vand.u32 4294901760, %v22176_v10  ;;  %v22231_v57 = vand.u32 4294901760, %v1484_v34 }
  0x66   : > { %19365 = vmatprep.subr.bf16.mxu0 %v22198_v63  ;;  %19501 = vmatprep.subr.bf16.mxu1 %v21934_v54  ;;  %26051 = vst [vmem:[#allocation47_spill] sm:$0xff] %v22226_v51  ;;  %26054 = vst [vmem:[#allocation49_spill] sm:$0xff] %v22236_v8 }
  0x67   : > { %v408_v43 = vsub.f32 %v22176_v10, %v26052_v19  ;;  %26053 = vst [vmem:[#allocation48_spill] sm:$0xff] %v22231_v57  ;;  %16301 = vmatmul.mubr.f32.gmra.mrb[8].mxu1 %v369_v7  ;;  %16351 = vmatmul.mubr.f32.gmra.mrb[4].mxu0 %v22058_v0  ;;  %26055 = vst [vmem:[#allocation50_spill] sm:$0xff] %v22239_v12  ;;  %v1486_v19 = vld [vmem:[#allocation2 + $0xa8] sm:$0xff]  ;;  %v399_v7 = vand.u32 4294901760, %v398_v36  ;;  %v26056_v0 = vand.u32 4294901760, %v22190_v24 }
  0x68   : > { %19367 = vmatpush3.bf16.msra.mxu0 %v22198_v63  ;;  %19503 = vmatpush3.bf16.msra.mxu1 %v21934_v54  ;;  %26057 = vst [vmem:[#allocation51_spill] sm:$0xff] %v22248_v17  ;;  %v22257_v36 = vsub.f32 %v1484_v34, %v22231_v57  ;;  %v22265_v41 = vand.u32 4294901760, %v1486_v19  ;;  %v22269_v34 = vand.u32 4294901760, %v1487_v33  ;;  %v22282_v63 = vpack.c.bf16 %v21972_v20, %v21969_v13 }
  0x69   : > { %16303 = vmatprep.mubr.f32.mxu1 %v379_v47  ;;  %16353 = vmatprep.mubr.f32.mxu0 %v22081_v62  ;;  %v418_v4 = vsub.f32 %v22190_v24, %v26056_v0  ;;  %v409_v46 = vand.u32 4294901760, %v408_v43  ;;  %v22254_v47 = vpack.c.bf16 %v21954_v2, %v21952_v1  ;;  %v26059_v0 = vand.u32 4294901760, %v22206_v18  ;;  %v1488_v43 = vld [vmem:[#allocation2 + $0xb8] sm:$0xff] }
  0x6a   : > { %19369 = vmatprep.subr.bf16.mxu0 %v22226_v51  ;;  %19505 = vmatprep.subr.bf16.mxu1 %v21944_v61  ;;  %26060 = vst [vmem:[#allocation53_spill] sm:$0xff] %v22265_v41  ;;  %26061 = vst [vmem:[#allocation54_spill] sm:$0xff] %v22269_v34  ;;  %v22276_v62 = vsub.f32 %v1485_v6, %v22248_v17  ;;  %v26064_v6 = vand.u32 4294901760, %v22236_v8  ;;  %v22295_v57 = vsub.f32 %v1486_v19, %v22265_v41 }
  0x6b   : > { %26058 = vst [vmem:[#allocation52_spill] sm:$0xff] %v22254_v47  ;;  %16304 = vmatmul.mubr.f32.gmra.mrb[10].mxu1 %v389_v58  ;;  %16354 = vmatmul.mubr.f32.gmra.mrb[6].mxu0 %v22089_v44  ;;  %v428_v39 = vsub.f32 %v22206_v18, %v26059_v0  ;;  %v419_v58 = vand.u32 4294901760, %v418_v4  ;;  %v26062_v44 = vand.u32 4294901760, %v22220_v30  ;;  %26063 = vst [vmem:[#allocation55_spill] sm:$0xff] %v22282_v63  ;;  %v1489_v4 = vld [vmem:[#allocation2 + $0xc0] sm:$0xff]  ;;  %v26076_v41 = vand.u32 4294901760, %v21931_v52 }
  0x6c   : > { %19371 = vmatpush3.bf16.msra.mxu0 %v22226_v51  ;;  %19507 = vmatpush3.bf16.msra.mxu1 %v21944_v61  ;;  %v22285_v51 = vand.u32 4294901760, %v1488_v43 }
  0x6d   : > { %16306 = vmatprep.mubr.f32.mxu1 %v399_v7  ;;  %16356 = vmatprep.mubr.f32.mxu0 %v22094_v37  ;;  %v1581_v0 = vsub.f32 %v22220_v30, %v26062_v44  ;;  %v429_v44 = vand.u32 4294901760, %v428_v39  ;;  %v1591_v37 = vsub.f32 %v22236_v8, %v26064_v6  ;;  %v26065_v30 = vand.u32 4294901760, %v22239_v12  ;;  %v1490_v7 = vld [vmem:[#allocation2 + $0xc8] sm:$0xff] }
  0x6e   : > { %19373 = vmatprep.subr.bf16.mxu0 %v22254_v47  ;;  %19509 = vmatprep.subr.bf16.mxu1 %v22013_v60  ;;  %v22304_v39 = vsub.f32 %v1487_v33, %v22269_v34  ;;  %v26068_v33 = vand.u32 4294901760, %v22257_v36  ;;  %v26070_v8 = vand.u32 4294901760, %v21878_v16  ;;  %v22330_v18 = vand.u32 4294901760, %v1490_v7 }
  0x6f   : > { %16307 = vmatmul.mubr.f32.gmra.mrb[12].mxu1 %v409_v46  ;;  %16357 = vmatmul.mubr.f32.gmra.mrb[8].mxu0 %v22108_v55  ;;  %v1601_v17 = vsub.f32 %v22239_v12, %v26065_v30  ;;  %v22301_v46 = vpack.c.bf16 %v22009_v53, %v21995_v40  ;;  %v1582_v6 = vand.u32 4294901760, %v1581_v0  ;;  %v22309_v30 = vpack.c.bf16 %v22054_v9, %v22035_v27  ;;  %v1491_v0 = vld [vmem:[#allocation2 + $0xd0] sm:$0xff] }
  0x70   : > { %19375 = vmatpush3.bf16.msra.mxu0 %v22254_v47  ;;  %19511 = vmatpush3.bf16.msra.mxu1 %v22013_v60  ;;  %v22312_v55 = vand.u32 4294901760, %v1489_v4  ;;  %v1611_v12 = vsub.f32 %v22257_v36, %v26068_v33  ;;  %v1592_v19 = vand.u32 4294901760, %v1591_v37  ;;  %v26071_v16 = vand.u32 4294901760, %v21883_v21 }
  0x71   : > { %26066 = vst [vmem:[#allocation56_spill] sm:$0xff] %v22301_v46  ;;  %16309 = vmatprep.mubr.f32.mxu1 %v419_v58  ;;  %16359 = vmatprep.mubr.f32.mxu0 %v22121_v50  ;;  %26067 = vst [vmem:[#allocation57_spill] sm:$0xff] %v22309_v30  ;;  %v22320_v58 = vsub.f32 %v1488_v43, %v22285_v51  ;;  %v26069_v50 = vand.u32 4294901760, %v21876_v15  ;;  %v1602_v34 = vand.u32 4294901760, %v1601_v17  ;;  %v25880_v43 = vand.u32 4294901760, %v22304_v39  ;;  %v1492_v15 = vld [vmem:[#allocation2 + $0xd8] sm:$0xff] }
  0x72   : > { %19377 = vmatprep.subr.bf16.mxu0 %v22282_v63  ;;  %19513 = vmatprep.subr.bf16.mxu1 %v22037_v45  ;;  %v26073_v37 = vand.u32 4294901760, %v21898_v31  ;;  %v26074_v17 = vand.u32 4294901760, %v21908_v35  ;;  %v26075_v33 = vand.u32 4294901760, %v21923_v48  ;;  %v26077_v21 = vand.u32 4294901760, %v22276_v62 }
  0x73   : > { %v22326_v47 = vpack.c.bf16 %v26070_v8, %v26069_v50  ;;  %16310 = vmatmul.mubr.f32.gmra.mrb[14].mxu1 %v429_v44  ;;  %16360 = vmatmul.mubr.f32.gmra.mrb[10].mxu0 %v22127_v32  ;;  %v26072_v50 = vand.u32 4294901760, %v21890_v25  ;;  %v22360_v31 = vand.u32 4294901760, %v1491_v0  ;;  %v26078_v35 = vand.u32 4294901760, %v21952_v1 }
  0x74   : > { %19379 = vmatpush3.bf16.msra.mxu0 %v22282_v63  ;;  %19515 = vmatpush3.bf16.msra.mxu1 %v22037_v45  ;;  %v22345_v44 = vpack.c.bf16 %v26074_v17, %v26073_v37  ;;  %v22351_v32 = vpack.c.bf16 %v26076_v41, %v26075_v33  ;;  %v1621_v25 = vsub.f32 %v22276_v62, %v26077_v21  ;;  %v26079_v48 = vand.u32 4294901760, %v21954_v2 }
  0x75   : > { %v22339_v8 = vpack.c.bf16 %v26072_v50, %v26071_v16  ;;  %16362 = vmatprep.mubr.f32.mxu0 %v22143_v42  ;;  %16624 = vmatprep.mubr.f32.mxu1 %v1582_v6  ;;  %v22358_v16 = vsub.f32 %v1489_v4, %v22312_v55  ;;  %v1612_v52 = vand.u32 4294901760, %v1611_v12  ;;  %v25878_v41 = vand.u32 4294901760, %v22320_v58  ;;  %v1493_v6 = vld [vmem:[#allocation2 + $0xe0] sm:$0xff] }
  0x76   : > { %v22366_v50 = vpack.c.bf16 %v26079_v48, %v26078_v35  ;;  %19381 = vmatprep.subr.bf16.mxu0 %v22301_v46  ;;  %19517 = vmatprep.subr.bf16.mxu1 %v21926_v49  ;;  %v26080_v37 = vand.u32 4294901760, %v21969_v13  ;;  %v26081_v4 = vand.u32 4294901760, %v21972_v20  ;;  %v26082_v1 = vand.u32 4294901760, %v21995_v40 }
  0x77   : > { %v26083_v2 = vand.u32 4294901760, %v22009_v53  ;;  %16363 = vmatmul.mubr.f32.gmra.mrb[12].mxu0 %v22147_v11  ;;  %16625 = vmatmul.mubr.f32.vlgmr.msra.gmra.mrb[16].mxu1 %v1592_v19  ;;  %v26084_v12 = vand.u32 4294901760, %v22295_v57  ;;  %v22388_v35 = vsub.f32 %v1490_v7, %v22330_v18  ;;  %v22390_v13 = vand.u32 4294901760, %v1492_v15  ;;  %v1494_v19 = vld [vmem:[#allocation2 + $0xe8] sm:$0xff] }
  0x78   : > { %v22375_v17 = vpack.c.bf16 %v26081_v4, %v26080_v37  ;;  %v26085_v20 = vand.u32 4294901760, %v22035_v27  ;;  %v26086_v40 = vand.u32 4294901760, %v22054_v9  ;;  %19383 = vmatpush3.bf16.msra.mxu0 %v22301_v46  ;;  %19519 = vmatpush3.bf16.msra.mxu1 %v21926_v49  ;;  %v1641_v53 = vsub.f32 %v22304_v39, %v25880_v43  ;;  %v26092_v49 = vld [vmem:[#allocation11_spill] sm:$0xff] }
  0x79   : > { %v22381_v33 = vpack.c.bf16 %v26083_v2, %v26082_v1  ;;  %v1631_v21 = vsub.f32 %v22295_v57, %v26084_v12  ;;  %16365 = vmatprep.mubr.f32.mxu0 %v22165_v23  ;;  %16627 = vmatprep.mubr.f32.mxu1 %v1602_v34  ;;  %v1622_v7 = vand.u32 4294901760, %v1621_v25  ;;  %v25879_v37 = vand.u32 4294901760, %v22358_v16  ;;  %v1495_v1 = vld [vmem:[#allocation2 + $0xf0] sm:$0xff] }
  0x7a   : > { %v22396_v48 = vpack.c.bf16 %v26086_v40, %v26085_v20  ;;  %v22406_v27 = vsub.f32 %v1491_v0, %v22360_v31  ;;  %v22408_v9 = vand.u32 4294901760, %v1493_v6  ;;  %19385 = vmatprep.subr.bf16.mxu0 %v22309_v30  ;;  %19521 = vmatprep.subr.bf16.mxu1 %v21942_v59  ;;  %v1651_v4 = vsub.f32 %v22320_v58, %v25878_v41  ;;  %v1496_v20 = vld [vmem:[#allocation2 + $0xf8] sm:$0xff]  ;;  %v26088_v41 = vld [vmem:[#allocation12_spill] sm:$0xff] }
  0x7b   : > { %16366 = vmatmul.mubr.f32.gmra.mrb[14].mxu0 %v22180_v3  ;;  %16628 = vmatmul.mubr.f32.gmra.mrb[18].mxu1 %v1612_v52  ;;  %v1632_v34 = vand.u32 4294901760, %v1631_v21  ;;  %v25883_v25 = vand.u32 4294901760, %v22388_v35  ;;  %v22418_v0 = vsub.f32 %v1492_v15, %v22390_v13  ;;  %v22420_v2 = vand.u32 4294901760, %v1494_v19  ;;  %v26089_v21 = vld [vmem:[#allocation15_spill] sm:$0xff]  ;;  %v26093_v3 = vld [vmem:[#allocation18_spill] sm:$0xff] }
  0x7c   : > { %19387 = vmatpush3.bf16.msra.mxu0 %v22309_v30  ;;  %19523 = vmatpush3.bf16.msra.mxu1 %v21942_v59  ;;  %v1642_v12 = vand.u32 4294901760, %v1641_v53  ;;  %v1661_v52 = vsub.f32 %v22358_v16, %v25879_v37  ;;  %v22430_v15 = vsub.f32 %v1493_v6, %v22408_v9  ;;  %v22432_v40 = vand.u32 4294901760, %v1495_v1 }
  0x7d   : > { %16400 = vmatprep.mubr.f32.mxu0 %v21993_v38  ;;  %16630 = vmatprep.mubr.f32.mxu1 %v1622_v7  ;;  %v1652_v53 = vand.u32 4294901760, %v1651_v4  ;;  %v1671_v7 = vsub.f32 %v22388_v35, %v25883_v25  ;;  %v22442_v43 = vsub.f32 %v1494_v19, %v22420_v2  ;;  %v22444_v6 = vand.u32 4294901760, %v1496_v20  ;;  %v26091_v19 = vld [vmem:[#allocation5_spill] sm:$0xff] }
  0x7e   : > { %26087 = vst [vmem:[#allocation58_spill] sm:$0xff] %v22430_v15  ;;  %19389 = vmatprep.subr.bf16.mxu0 %v21874_v14  ;;  %19525 = vmatprep.subr.bf16.mxu1 %v21961_v5  ;;  %v1662_v4 = vand.u32 4294901760, %v1661_v52  ;;  %v22454_v37 = vsub.f32 %v1495_v1, %v22432_v40  ;;  %v26095_v1 = vld [vmem:[#allocation21_spill] sm:$0xff] }
  0x7f   : > { %16401 = vmatmul.mubr.f32.vlgmr.msra.gmra.mrb[0].mxu0 %v26088_v41  ;;  %16631 = vmatmul.mubr.f32.gmra.mrb[20].mxu1 %v1632_v34  ;;  %v26090_v34 = vand.u32 4294901760, %v22406_v27 }
  0x80   : > { %19391 = vmatpush3.bf16.msra.mxu0 %v21874_v14  ;;  %19527 = vmatpush3.bf16.msra.mxu1 %v21961_v5  ;;  %v1672_v5 = vand.u32 4294901760, %v1671_v7  ;;  %v25900_v11 = vand.u32 4294901760, %v22454_v37 }
  0x81   : > { %16403 = vmatprep.mubr.f32.mxu0 %v26089_v21  ;;  %16633 = vmatprep.mubr.f32.mxu1 %v1642_v12  ;;  %v1681_v59 = vsub.f32 %v22406_v27, %v26090_v34  ;;  %v26094_v12 = vand.u32 4294901760, %v22418_v0  ;;  %v22464_v34 = vsub.f32 %v1496_v20, %v22444_v6  ;;  %v26098_v20 = vld [vmem:[#allocation22_spill] sm:$0xff] }
  0x82   : > { %19393 = vmatprep.subr.bf16.mxu0 %v26091_v19  ;;  %19529 = vmatprep.subr.bf16.mxu1 %v26092_v49 }
  0x83   : > { %16404 = vmatmul.mubr.f32.gmra.mrb[2].mxu0 %v26093_v3  ;;  %16634 = vmatmul.mubr.f32.gmra.mrb[22].mxu1 %v1652_v53  ;;  %v1691_v52 = vsub.f32 %v22418_v0, %v26094_v12  ;;  %v1682_v25 = vand.u32 4294901760, %v1681_v59  ;;  %v26096_v53 = vand.u32 4294901760, %v22430_v15  ;;  %v26097_v12 = vld [vmem:[#allocation13_spill] sm:$0xff]  ;;  %v25901_v59 = vand.u32 4294901760, %v22464_v34 }
  0x84   : > { %19395 = vmatpush3.bf16.msra.mxu0 %v26091_v19  ;;  %19531 = vmatpush3.bf16.msra.mxu1 %v26092_v49  ;;  %v26099_v49 = vand.u32 4294901760, %v22442_v43 }
  0x85   : > { %16406 = vmatprep.mubr.f32.mxu0 %v26095_v1  ;;  %16636 = vmatprep.mubr.f32.mxu1 %v1662_v4  ;;  %v1701_v7 = vsub.f32 %v22430_v15, %v26096_v53  ;;  %v1692_v23 = vand.u32 4294901760, %v1691_v52  ;;  %v26100_v4 = vld [vmem:[#allocation26_spill] sm:$0xff]  ;;  %v1721_v15 = vsub.f32 %v22454_v37, %v25900_v11  ;;  %v26102_v52 = vld [vmem:[#allocation28_spill] sm:$0xff]  ;;  %v26104_v11 = vld [vmem:[#allocation23_spill] sm:$0xff] }
  0x86   : > { %19397 = vmatprep.subr.bf16.mxu0 %v21886_v22  ;;  %19533 = vmatprep.subr.bf16.mxu1 %v26097_v12  ;;  %v1711_v42 = vsub.f32 %v22442_v43, %v26099_v49 }
  0x87   : > { %16407 = vmatmul.mubr.f32.gmra.mrb[4].mxu0 %v26098_v20  ;;  %16637 = vmatmul.mubr.f32.gmra.mrb[24].mxu1 %v1672_v5  ;;  %v1702_v53 = vand.u32 4294901760, %v1701_v7  ;;  %v26101_v5 = vld [vmem:[#allocation17_spill] sm:$0xff]  ;;  %v1722_v7 = vand.u32 4294901760, %v1721_v15 }
  0x88   : > { %19399 = vmatpush3.bf16.msra.mxu0 %v21886_v22  ;;  %19535 = vmatpush3.bf16.msra.mxu1 %v26097_v12  ;;  %v1712_v49 = vand.u32 4294901760, %v1711_v42  ;;  %v1731_v12 = vsub.f32 %v22464_v34, %v25901_v59  ;;  %v26106_v15 = vld [vmem:[#allocation37_spill] sm:$0xff]  ;;  %v26112_v59 = vld [vmem:[#allocation43_spill] sm:$0xff] }
  0x89   : > { %16409 = vmatprep.mubr.f32.mxu0 %v26100_v4  ;;  %16639 = vmatprep.mubr.f32.mxu1 %v1682_v25  ;;  %v26103_v25 = vld [vmem:[#allocation29_spill] sm:$0xff] }
  0x8a   : > { %19401 = vmatprep.subr.bf16.mxu0 %v21895_v28  ;;  %19537 = vmatprep.subr.bf16.mxu1 %v26101_v5  ;;  %v1732_v42 = vand.u32 4294901760, %v1731_v12  ;;  %v26107_v12 = vld [vmem:[#allocation41_spill] sm:$0xff] }
  0x8b   : > { %16410 = vmatmul.mubr.f32.gmra.mrb[6].mxu0 %v26102_v52  ;;  %16640 = vmatmul.mubr.f32.gmra.mrb[26].mxu1 %v1692_v23  ;;  %v26105_v23 = vld [vmem:[#allocation31_spill] sm:$0xff] }
  0x8c   : > { %19403 = vmatpush3.bf16.msra.mxu0 %v21895_v28  ;;  %19539 = vmatpush3.bf16.msra.mxu1 %v26101_v5  ;;  %v26116_v5 = vld [vmem:[#allocation42_spill] sm:$0xff] }
  0x8d   : > { %16412 = vmatprep.mubr.f32.mxu0 %v26103_v25  ;;  %16642 = vmatprep.mubr.f32.mxu1 %v1702_v53  ;;  %v26108_v53 = vld [vmem:[#allocation34_spill] sm:$0xff] }
  0x8e   : > { %19405 = vmatprep.subr.bf16.mxu0 %v21934_v54  ;;  %19541 = vmatprep.subr.bf16.mxu1 %v26104_v11 }
  0x8f   : > { %16413 = vmatmul.mubr.f32.gmra.mrb[8].mxu0 %v22119_v26  ;;  %16643 = vmatmul.mubr.f32.gmra.mrb[28].mxu1 %v1712_v49  ;;  %v26109_v49 = vld [vmem:[#allocation44_spill] sm:$0xff] }
  0x90   : > { %19407 = vmatpush3.bf16.msra.mxu0 %v21934_v54  ;;  %19543 = vmatpush3.bf16.msra.mxu1 %v26104_v11  ;;  %v26114_v11 = vand.u32 4294901760, %v21993_v38  ;;  %v26120_v38 = vld [vmem:[#allocation54_spill] sm:$0xff] }
  0x91   : > { %16415 = vmatprep.mubr.f32.mxu0 %v22141_v56  ;;  %16645 = vmatprep.mubr.f32.mxu1 %v1722_v7  ;;  %v26110_v7 = vld [vmem:[#allocation45_spill] sm:$0xff] }
  0x92   : > { %19409 = vmatprep.subr.bf16.mxu0 %v21944_v61  ;;  %19545 = vmatprep.subr.bf16.mxu1 %v26105_v23 }
  0x93   : > { %16416 = vmatmul.mubr.f32.gmra.mrb[10].mxu0 %v22153_v29  ;;  %16646 = vmatmul.mubr.f32.gmra.mrb[30].mxu1 %v1732_v42  ;;  %v26111_v42 = vld [vmem:[#allocation39_spill] sm:$0xff] }
  0x94   : > { %19411 = vmatpush3.bf16.msra.mxu0 %v21944_v61  ;;  %19547 = vmatpush3.bf16.msra.mxu1 %v26105_v23  ;;  %v26113_v23 = vld [vmem:[#allocation48_spill] sm:$0xff] }
  0x95   : > { %16418 = vmatprep.mubr.f32.mxu0 %v26106_v15  ;;  %16680 = vmatprep.mubr.f32.mxu1 %v26107_v12 }
  0x96   : > { %19413 = vmatprep.subr.bf16.mxu0 %v22013_v60  ;;  %19549 = vmatprep.subr.bf16.mxu1 %v26108_v53 }
  0x97   : > { %16419 = vmatmul.mubr.f32.gmra.mrb[12].mxu0 %v22176_v10  ;;  %16681 = vmatmul.mubr.f32.vlgmr.msra.gmra.mrb[16].mxu1 %v26109_v49  ;;  %v26118_v49 = vld [vmem:[#allocation53_spill] sm:$0xff] }
  0x98   : > { %19415 = vmatpush3.bf16.msra.mxu0 %v22013_v60  ;;  %19551 = vmatpush3.bf16.msra.mxu1 %v26108_v53  ;;  %v26115_v53 = vld [vmem:[#allocation51_spill] sm:$0xff] }
  0x99   : > { %16421 = vmatprep.mubr.f32.mxu0 %v22190_v24  ;;  %16683 = vmatprep.mubr.f32.mxu1 %v26110_v7  ;;  %v26117_v7 = vand.u32 4294901760, %v26088_v41  ;;  %v26123_v41 = vand.u32 4294901760, %v26095_v1  ;;  %v26127_v1 = vand.u32 4294901760, %v26102_v52  ;;  %v26130_v52 = vand.u32 4294901760, %v22141_v56  ;;  %v26133_v56 = vld [vmem:[#allocation46_spill] sm:$0xff] }
  0x9a   : > { %19417 = vmatprep.subr.bf16.mxu0 %v22037_v45  ;;  %19553 = vmatprep.subr.bf16.mxu1 %v26111_v42 }
  0x9b   : > { %16422 = vmatmul.mubr.f32.gmra.mrb[14].mxu0 %v26112_v59  ;;  %16684 = vmatmul.mubr.f32.gmra.mrb[18].mxu1 %v26113_v23 }
  0x9c   : > { %19419 = vmatpush3.bf16.msra.mxu0 %v22037_v45  ;;  %19555 = vmatpush3.bf16.msra.mxu1 %v26111_v42  ;;  %v26119_v42 = vand.u32 4294901760, %v26089_v21  ;;  %v26124_v21 = vld [vmem:[#allocation52_spill] sm:$0xff] }
  0x9d   : > { %16456 = vmatprep.mubr.f32.mxu0 %v26114_v11  ;;  %16686 = vmatprep.mubr.f32.mxu1 %v26115_v53  ;;  %v26121_v11 = vld [vmem:[#allocation47_spill] sm:$0xff]  ;;  %v26122_v53 = vand.u32 4294901760, %v26093_v3  ;;  %v26126_v3 = vand.u32 4294901760, %v26100_v4  ;;  %v26129_v4 = vand.u32 4294901760, %v22119_v26  ;;  %v26132_v26 = vand.u32 4294901760, %v26106_v15  ;;  %v26137_v15 = vld [vmem:[#allocation50_spill] sm:$0xff] }
  0x9e   : > { %19421 = vmatprep.subr.bf16.mxu0 %v22326_v47  ;;  %19557 = vmatprep.subr.bf16.mxu1 %v26116_v5 }
  0x9f   : > { %16457 = vmatmul.mubr.f32.vlgmr.msra.gmra.mrb[0].mxu0 %v26117_v7  ;;  %16687 = vmatmul.mubr.f32.gmra.mrb[20].mxu1 %v26118_v49  ;;  %v26125_v7 = vand.u32 4294901760, %v26098_v20  ;;  %v26128_v20 = vand.u32 4294901760, %v26103_v25  ;;  %v26131_v25 = vand.u32 4294901760, %v22153_v29  ;;  %v26135_v29 = vld [vmem:[#allocation49_spill] sm:$0xff] }
  0xa0   : > { %19423 = vmatpush3.bf16.msra.mxu0 %v22326_v47  ;;  %19559 = vmatpush3.bf16.msra.mxu1 %v26116_v5 }
  0xa1   : > { %16459 = vmatprep.mubr.f32.mxu0 %v26119_v42  ;;  %16689 = vmatprep.mubr.f32.mxu1 %v26120_v38  ;;  %v26136_v42 = vand.u32 4294901760, %v22190_v24  ;;  %v26140_v24 = vld [vmem:[#allocation10_spill] sm:$0xff] }
  0xa2   : > { %19425 = vmatprep.subr.bf16.mxu0 %v22339_v8  ;;  %19561 = vmatprep.subr.bf16.mxu1 %v26121_v11 }
  0xa3   : > { %16460 = vmatmul.mubr.f32.gmra.mrb[2].mxu0 %v26122_v53  ;;  %16690 = vmatmul.mubr.f32.gmra.mrb[22].mxu1 %v22285_v51  ;;  %v26134_v53 = vand.u32 4294901760, %v22176_v10  ;;  %v26139_v10 = vld [vmem:[#allocation9_spill] sm:$0xff] }
  0xa4   : > { %19427 = vmatpush3.bf16.msra.mxu0 %v22339_v8  ;;  %19563 = vmatpush3.bf16.msra.mxu1 %v26121_v11  ;;  %v26157_v11 = vand.u32 4294901760, %v26137_v15 }
  0xa5   : > { %16462 = vmatprep.mubr.f32.mxu0 %v26123_v41  ;;  %16692 = vmatprep.mubr.f32.mxu1 %v22312_v55  ;;  %v26138_v41 = vand.u32 4294901760, %v26112_v59  ;;  %v26141_v59 = vld [vmem:[#allocation14_spill] sm:$0xff] }
  0xa6   : > { %19429 = vmatprep.subr.bf16.mxu0 %v22345_v44  ;;  %19565 = vmatprep.subr.bf16.mxu1 %v26124_v21 }
  0xa7   : > { %16463 = vmatmul.mubr.f32.gmra.mrb[4].mxu0 %v26125_v7  ;;  %16693 = vmatmul.mubr.f32.gmra.mrb[24].mxu1 %v22330_v18  ;;  %v26142_v7 = vld [vmem:[#allocation16_spill] sm:$0xff] }
  0xa8   : > { %19431 = vmatpush3.bf16.msra.mxu0 %v22345_v44  ;;  %19567 = vmatpush3.bf16.msra.mxu1 %v26124_v21  ;;  %v26156_v21 = vld [vmem:[#allocation38_spill] sm:$0xff] }
  0xa9   : > { %16465 = vmatprep.mubr.f32.mxu0 %v26126_v3  ;;  %16695 = vmatprep.mubr.f32.mxu1 %v22360_v31  ;;  %v26143_v3 = vld [vmem:[#allocation19_spill] sm:$0xff] }
  0xaa   : > { %19433 = vmatprep.subr.bf16.mxu0 %v22351_v32  ;;  %19569 = vmatprep.subr.bf16.mxu1 %v22282_v63 }
  0xab   : > { %16466 = vmatmul.mubr.f32.gmra.mrb[6].mxu0 %v26127_v1  ;;  %16696 = vmatmul.mubr.f32.gmra.mrb[26].mxu1 %v22390_v13  ;;  %v26144_v1 = vld [vmem:[#allocation20_spill] sm:$0xff] }
  0xac   : > { %19435 = vmatpush3.bf16.msra.mxu0 %v22351_v32  ;;  %19571 = vmatpush3.bf16.msra.mxu1 %v22282_v63  ;;  %v26155_v63 = vand.u32 4294901760, %v26135_v29 }
  0xad   : > { %16468 = vmatprep.mubr.f32.mxu0 %v26128_v20  ;;  %16698 = vmatprep.mubr.f32.mxu1 %v22408_v9  ;;  %v26145_v20 = vld [vmem:[#allocation24_spill] sm:$0xff] }
  0xae   : > { %19437 = vmatprep.subr.bf16.mxu0 %v22366_v50  ;;  %19573 = vmatprep.subr.bf16.mxu1 %v22301_v46 }
  0xaf   : > { %16469 = vmatmul.mubr.f32.gmra.mrb[8].mxu0 %v26129_v4  ;;  %16699 = vmatmul.mubr.f32.gmra.mrb[28].mxu1 %v22420_v2  ;;  %v26146_v4 = vld [vmem:[#allocation25_spill] sm:$0xff] }
  0xb0   : > { %19439 = vmatpush3.bf16.msra.mxu0 %v22366_v50  ;;  %19575 = vmatpush3.bf16.msra.mxu1 %v22301_v46  ;;  %v26154_v46 = vld [vmem:[#allocation36_spill] sm:$0xff] }
  0xb1   : > { %16471 = vmatprep.mubr.f32.mxu0 %v26130_v52  ;;  %16701 = vmatprep.mubr.f32.mxu1 %v22432_v40  ;;  %v26147_v52 = vld [vmem:[#allocation27_spill] sm:$0xff] }
  0xb2   : > { %19441 = vmatprep.subr.bf16.mxu0 %v22375_v17  ;;  %19577 = vmatprep.subr.bf16.mxu1 %v22309_v30 }
  0xb3   : > { %16472 = vmatmul.mubr.f32.gmra.mrb[10].mxu0 %v26131_v25  ;;  %16702 = vmatmul.mubr.f32.gmra.mrb[30].mxu1 %v22444_v6  ;;  %v26148_v25 = vld [vmem:[#allocation58_spill] sm:$0xff] }
  0xb4   : > { %19443 = vmatpush3.bf16.msra.mxu0 %v22375_v17  ;;  %19579 = vmatpush3.bf16.msra.mxu1 %v22309_v30  ;;  %v26153_v30 = vand.u32 4294901760, %v26133_v56 }
  0xb5   : > { %16474 = vmatprep.mubr.f32.mxu0 %v26132_v26  ;;  %16736 = vmatprep.mubr.f32.mxu1 %v26133_v56  ;;  %v26149_v26 = vld [vmem:[#allocation30_spill] sm:$0xff]  ;;  %v26159_v56 = vand.u32 4294901760, %v22257_v36 }
  0xb6   : > { %19445 = vmatprep.subr.bf16.mxu0 %v22381_v33  ;;  %19581 = vmatprep.subr.bf16.mxu1 %v21874_v14 }
  0xb7   : > { %16475 = vmatmul.mubr.f32.gmra.mrb[12].mxu0 %v26134_v53  ;;  %16737 = vmatmul.mubr.f32.vlgmr.msra.gmra.mrb[16].mxu1 %v26135_v29  ;;  %v26150_v53 = vld [vmem:[#allocation32_spill] sm:$0xff]  ;;  %v26171_v29 = vand.u32 4294901760, %v22464_v34 }
  0xb8   : > { %19447 = vmatpush3.bf16.msra.mxu0 %v22381_v33  ;;  %19583 = vmatpush3.bf16.msra.mxu1 %v21874_v14 }
  0xb9   : > { %16477 = vmatprep.mubr.f32.mxu0 %v26136_v42  ;;  %16739 = vmatprep.mubr.f32.mxu1 %v26137_v15  ;;  %v26151_v42 = vld [vmem:[#allocation33_spill] sm:$0xff] }
  0xba   : > { %19449 = vmatprep.subr.bf16.mxu0 %v22396_v48  ;;  %19585 = vmatprep.subr.bf16.mxu1 %v26091_v19  ;;  %v5065_v15 = vld [vmem:[#allocation2 + $0x110] sm:$0xff] }
  0xbb   : > { %16478 = vmatmul.mubr.f32.gmra.mrb[14].mxu0 %v26138_v41  ;;  %16740 = vmatmul.mubr.f32.gmra.mrb[18].mxu1 %v22257_v36  ;;  %v26152_v41 = vld [vmem:[#allocation35_spill] sm:$0xff]  ;;  %v26162_v36 = vand.u32 4294901760, %v22304_v39 }
  0xbc   : > { %19451 = vmatpush3.bf16.msra.mxu0 %v22396_v48  ;;  %19587 = vmatpush3.bf16.msra.mxu1 %v26091_v19 }
  0xbd   : > { %16512 = vmatprep.mubr.f32.mxu0 %v26139_v10  ;;  %16742 = vmatprep.mubr.f32.mxu1 %v22276_v62 }
  0xbe   : > { %19453 = vmatprep.subr.bf16.mxu0 %v21874_v14  ;;  %19589 = vmatprep.subr.bf16.mxu1 %v21886_v22 }
  0xbf   : > { %16513 = vmatmul.mubr.f32.vlgmr.msra.gmra.mrb[0].mxu0 %v26140_v24  ;;  %16743 = vmatmul.mubr.f32.gmra.mrb[20].mxu1 %v22295_v57 }
  0xc0   : > { %19455 = vmatpush3.bf16.msra.mxu0 %v21874_v14  ;;  %19591 = vmatpush3.bf16.msra.mxu1 %v21886_v22 }
  0xc1   : > { %16515 = vmatprep.mubr.f32.mxu0 %v26141_v59  ;;  %16745 = vmatprep.mubr.f32.mxu1 %v22304_v39  ;;  %v26165_v39 = vand.u32 4294901760, %v22388_v35 }
  0xc2   : > { %19457 = vmatprep.subr.bf16.mxu0 %v26091_v19  ;;  %19593 = vmatprep.subr.bf16.mxu1 %v21895_v28 }
  0xc3   : > { %16516 = vmatmul.mubr.f32.gmra.mrb[2].mxu0 %v26142_v7  ;;  %16746 = vmatmul.mubr.f32.gmra.mrb[22].mxu1 %v22320_v58 }
  0xc4   : > { %19459 = vmatpush3.bf16.msra.mxu0 %v26091_v19  ;;  %19595 = vmatpush3.bf16.msra.mxu1 %v21895_v28 }
  0xc5   : > { %16518 = vmatprep.mubr.f32.mxu0 %v26143_v3  ;;  %16748 = vmatprep.mubr.f32.mxu1 %v22358_v16 }
  0xc6   : > { %19461 = vmatprep.subr.bf16.mxu0 %v21886_v22  ;;  %19597 = vmatprep.subr.bf16.mxu1 %v21934_v54 }
  0xc7   : > { %16519 = vmatmul.mubr.f32.gmra.mrb[4].mxu0 %v26144_v1  ;;  %16749 = vmatmul.mubr.f32.gmra.mrb[24].mxu1 %v22388_v35  ;;  %v26168_v35 = vand.u32 4294901760, %v26148_v25 }
  0xc8   : > { %19463 = vmatpush3.bf16.msra.mxu0 %v21886_v22  ;;  %19599 = vmatpush3.bf16.msra.mxu1 %v21934_v54 }
  0xc9   : > { %16521 = vmatprep.mubr.f32.mxu0 %v26145_v20  ;;  %16751 = vmatprep.mubr.f32.mxu1 %v22406_v27 }
  0xca   : > { %19465 = vmatprep.subr.bf16.mxu0 %v21895_v28  ;;  %19601 = vmatprep.subr.bf16.mxu1 %v21944_v61 }
  0xcb   : > { %16522 = vmatmul.mubr.f32.gmra.mrb[6].mxu0 %v26146_v4  ;;  %16752 = vmatmul.mubr.f32.gmra.mrb[26].mxu1 %v22418_v0 }
  0xcc   : > { %19467 = vmatpush3.bf16.msra.mxu0 %v21895_v28  ;;  %19603 = vmatpush3.bf16.msra.mxu1 %v21944_v61 }
  0xcd   : > { %16524 = vmatprep.mubr.f32.mxu0 %v26147_v52  ;;  %16754 = vmatprep.mubr.f32.mxu1 %v26148_v25 }
  0xce   : > { %19469 = vmatprep.subr.bf16.mxu0 %v21934_v54  ;;  %19605 = vmatprep.subr.bf16.mxu1 %v22013_v60 }
  0xcf   : > { %16525 = vmatmul.mubr.f32.gmra.mrb[8].mxu0 %v26149_v26  ;;  %16755 = vmatmul.mubr.f32.gmra.mrb[28].mxu1 %v22442_v43 }
  0xd0   : > { %19471 = vmatpush3.bf16.msra.mxu0 %v21934_v54  ;;  %19607 = vmatpush3.bf16.msra.mxu1 %v22013_v60 }
  0xd1   : > { %16527 = vmatprep.mubr.f32.mxu0 %v26150_v53  ;;  %16757 = vmatprep.mubr.f32.mxu1 %v22454_v37 }
  0xd2   : > { %19473 = vmatprep.subr.bf16.mxu0 %v21944_v61  ;;  %19609 = vmatprep.subr.bf16.mxu1 %v22037_v45 }
  0xd3   : > { %16528 = vmatmul.mubr.f32.gmra.mrb[10].mxu0 %v26151_v42  ;;  %16758 = vmatmul.mubr.f32.gmra.mrb[30].mxu1 %v22464_v34  ;;  %v26174_v34 = vld [vmem:[#allocation51_spill] sm:$0xff] }
  0xd4   : > { %19475 = vmatpush3.bf16.msra.mxu0 %v21944_v61  ;;  %19611 = vmatpush3.bf16.msra.mxu1 %v22037_v45 }
  0xd5   : > { %16530 = vmatprep.mubr.f32.mxu0 %v26152_v41  ;;  %16792 = vmatprep.mubr.f32.mxu1 %v26153_v30  ;;  %v26158_v30 = vld [vmem:[#allocation40_spill] sm:$0xff] }
  0xd6   : > { %19477 = vmatprep.subr.bf16.mxu0 %v22013_v60  ;;  %19613 = vmatprep.subr.bf16.mxu1 %v22326_v47 }
  0xd7   : > { %16531 = vmatmul.mubr.f32.gmra.mrb[12].mxu0 %v26154_v46  ;;  %16793 = vmatmul.mubr.f32.vlgmr.msra.gmra.mrb[16].mxu1 %v26155_v63  ;;  %v26160_v63 = vand.u32 4294901760, %v22276_v62  ;;  %v26163_v62 = vand.u32 4294901760, %v22320_v58  ;;  %v26166_v58 = vand.u32 4294901760, %v22406_v27  ;;  %v26169_v27 = vand.u32 4294901760, %v22442_v43  ;;  %v26172_v43 = vld [vmem:[#allocation44_spill] sm:$0xff] }
  0xd8   : > { %19479 = vmatpush3.bf16.msra.mxu0 %v22013_v60  ;;  %19615 = vmatpush3.bf16.msra.mxu1 %v22326_v47 }
  0xd9   : > { %16533 = vmatprep.mubr.f32.mxu0 %v26156_v21  ;;  %16795 = vmatprep.mubr.f32.mxu1 %v26157_v11  ;;  %v26161_v11 = vand.u32 4294901760, %v22295_v57  ;;  %v26164_v57 = vand.u32 4294901760, %v22358_v16  ;;  %v26167_v16 = vand.u32 4294901760, %v22418_v0  ;;  %v26170_v0 = vand.u32 4294901760, %v22454_v37  ;;  %v26173_v37 = vld [vmem:[#allocation45_spill] sm:$0xff] }
  0xda   : > { %19481 = vmatprep.subr.bf16.mxu0 %v22037_v45  ;;  %19617 = vmatprep.subr.bf16.mxu1 %v22339_v8 }
  0xdb   : > { %16534 = vmatmul.mubr.f32.gmra.mrb[14].mxu0 %v26158_v30  ;;  %16796 = vmatmul.mubr.f32.gmra.mrb[18].mxu1 %v26159_v56 }
  0xdc   : > { %19483 = vmatpush3.bf16.msra.mxu0 %v22037_v45  ;;  %19619 = vmatpush3.bf16.msra.mxu1 %v22339_v8 }
  0xdd   : > { %16568 = vmatprep.mubr.f32.mxu0 %v26139_v10  ;;  %16798 = vmatprep.mubr.f32.mxu1 %v26160_v63  ;;  %v5066_v10 = vld [vmem:[#allocation2 + $0x118] sm:$0xff] }
  0xde   : > { %19621 = vmatprep.subr.bf16.mxu1 %v22345_v44 }
  0xdf   : > { %16569 = vmatmul.mubr.f32.vlgmr.msra.gmra.mrb[0].mxu0 %v26140_v24  ;;  %16799 = vmatmul.mubr.f32.gmra.mrb[20].mxu1 %v26161_v11  ;;  %v5067_v24 = vld [vmem:[#allocation2 + $0x120] sm:$0xff] }
  0xe0   : > { %19623 = vmatpush3.bf16.msra.mxu1 %v22345_v44  ;;  %16571 = vmatprep.mubr.f32.mxu0 %v26141_v59 }
  0xe1   : > { %16801 = vmatprep.mubr.f32.mxu1 %v26162_v36  ;;  %19625 = vmatprep.subr.bf16.mxu1 %v22351_v32 }
  0xe3   : > { %16572 = vmatmul.mubr.f32.gmra.mrb[2].mxu0 %v26142_v7  ;;  %16802 = vmatmul.mubr.f32.gmra.mrb[22].mxu1 %v26163_v62  ;;  %v5068_v7 = vld [vmem:[#allocation2 + $0x128] sm:$0xff] }
  0xe4   : > { %19627 = vmatpush3.bf16.msra.mxu1 %v22351_v32  ;;  %16574 = vmatprep.mubr.f32.mxu0 %v26143_v3 }
  0xe5   : > { %16804 = vmatprep.mubr.f32.mxu1 %v26164_v57  ;;  %19629 = vmatprep.subr.bf16.mxu1 %v22366_v50 }
  0xe7   : > { %16575 = vmatmul.mubr.f32.gmra.mrb[4].mxu0 %v26144_v1  ;;  %16805 = vmatmul.mubr.f32.gmra.mrb[24].mxu1 %v26165_v39  ;;  %v22793_v1 = vand.u32 4294901760, %v5067_v24 }
  0xe8   : > { %19631 = vmatpush3.bf16.msra.mxu1 %v22366_v50  ;;  %16577 = vmatprep.mubr.f32.mxu0 %v26145_v20  ;;  %v5069_v20 = vld [vmem:[#allocation2 + $0x130] sm:$0xff] }
  0xe9   : > { %16807 = vmatprep.mubr.f32.mxu1 %v26166_v58  ;;  %19633 = vmatprep.subr.bf16.mxu1 %v22375_v17 }
  0xeb   : > { %16578 = vmatmul.mubr.f32.gmra.mrb[6].mxu0 %v26146_v4  ;;  %16808 = vmatmul.mubr.f32.gmra.mrb[26].mxu1 %v26167_v16  ;;  %v22798_v4 = vand.u32 4294901760, %v5068_v7 }
  0xec   : > { %19635 = vmatpush3.bf16.msra.mxu1 %v22375_v17  ;;  %16580 = vmatprep.mubr.f32.mxu0 %v26147_v52 }
  0xed   : > { %16810 = vmatprep.mubr.f32.mxu1 %v26168_v35  ;;  %19637 = vmatprep.subr.bf16.mxu1 %v22381_v33  ;;  %v22822_v63 = vsub.f32 %v5068_v7, %v22798_v4  ;;  %v5072_v35 = vld [vmem:[#allocation2 + $0x148] sm:$0xff]  ;;  %v5074_v7 = vld [vmem:[#allocation2 + $0x158] sm:$0xff] }
  0xef   : > { %16581 = vmatmul.mubr.f32.gmra.mrb[8].mxu0 %v26149_v26  ;;  %16811 = vmatmul.mubr.f32.gmra.mrb[28].mxu1 %v26169_v27  ;;  %v22807_v26 = vand.u32 4294901760, %v5069_v20  ;;  %v5073_v27 = vld [vmem:[#allocation2 + $0x150] sm:$0xff] }
  0xf0   : > { %19639 = vmatpush3.bf16.msra.mxu1 %v22381_v33  ;;  %16583 = vmatprep.mubr.f32.mxu0 %v26150_v53  ;;  %v5070_v53 = vld [vmem:[#allocation2 + $0x138] sm:$0xff] }
  0xf1   : > { %16813 = vmatprep.mubr.f32.mxu1 %v26170_v0  ;;  %19641 = vmatprep.subr.bf16.mxu1 %v22396_v48  ;;  %v22834_v57 = vsub.f32 %v5069_v20, %v22807_v26  ;;  %v26181_v20 = vld [vmem:[#allocation6_spill] sm:$0xff] }
  0xf3   : > { %16584 = vmatmul.mubr.f32.gmra.mrb[10].mxu0 %v26151_v42  ;;  %16814 = vmatmul.mubr.f32.gmra.mrb[30].mxu1 %v26171_v29  ;;  %v25919_v29 = vand.u32 4294901760, %v22822_v63 }
  0xf4   : > { %19643 = vmatpush3.bf16.msra.mxu1 %v22396_v48  ;;  %16586 = vmatprep.mubr.f32.mxu0 %v26152_v41 }
  0xf5   : > { %16848 = vmatprep.mubr.f32.mxu1 %v26107_v12  ;;  %19645 = vmatprep.subr.bf16.mxu1 %v21874_v14 }
  0xf7   : > { %16587 = vmatmul.mubr.f32.gmra.mrb[12].mxu0 %v26154_v46  ;;  %16849 = vmatmul.mubr.f32.vlgmr.msra.gmra.mrb[16].mxu1 %v26172_v43  ;;  %v5063_v46 = vld [vmem:[#allocation2 + $0x100] sm:$0xff] }
  0xf8   : > { %19647 = vmatpush3.bf16.msra.mxu1 %v21874_v14  ;;  %16589 = vmatprep.mubr.f32.mxu0 %v26156_v21  ;;  %v5064_v21 = vld [vmem:[#allocation2 + $0x108] sm:$0xff] }
  0xf9   : > { %16851 = vmatprep.mubr.f32.mxu1 %v26173_v37  ;;  %19649 = vmatprep.subr.bf16.mxu1 %v26091_v19 }
  0xfb   : > { %16590 = vmatmul.mubr.f32.gmra.mrb[14].mxu0 %v26158_v30  ;;  %16852 = vmatmul.mubr.f32.gmra.mrb[18].mxu1 %v26113_v23  ;;  %v5071_v30 = vld [vmem:[#allocation2 + $0x140] sm:$0xff] }
  0xfc   : > { %19651 = vmatpush3.bf16.msra.mxu1 %v26091_v19  ;;  %16854 = vmatprep.mubr.f32.mxu1 %v26174_v34  ;;  %v22842_v16 = vand.u32 4294901760, %v5071_v30 }
  0xfd   : > { %19653 = vmatprep.subr.bf16.mxu1 %v21886_v22 }
  0xff   : > { %16855 = vmatmul.mubr.f32.gmra.mrb[20].mxu1 %v26118_v49 }
 0x100   : > { %19655 = vmatpush3.bf16.msra.mxu1 %v21886_v22  ;;  %16857 = vmatprep.mubr.f32.mxu1 %v26120_v38 }
 0x101   : > { %19657 = vmatprep.subr.bf16.mxu1 %v21895_v28 }
 0x103   : > { %16858 = vmatmul.mubr.f32.gmra.mrb[22].mxu1 %v22285_v51 }
 0x104   : > { %19659 = vmatpush3.bf16.msra.mxu1 %v21895_v28  ;;  %16860 = vmatprep.mubr.f32.mxu1 %v22312_v55 }
 0x105   : > { %19661 = vmatprep.subr.bf16.mxu1 %v21934_v54 }
 0x107   : > { %16861 = vmatmul.mubr.f32.gmra.mrb[24].mxu1 %v22330_v18 }
 0x108   : > { %19663 = vmatpush3.bf16.msra.mxu1 %v21934_v54  ;;  %16863 = vmatprep.mubr.f32.mxu1 %v22360_v31 }
 0x109   : > { %19665 = vmatprep.subr.bf16.mxu1 %v21944_v61 }
 0x10b   : > { %16864 = vmatmul.mubr.f32.gmra.mrb[26].mxu1 %v22390_v13 }
 0x10c   : > { %19667 = vmatpush3.bf16.msra.mxu1 %v21944_v61  ;;  %16866 = vmatprep.mubr.f32.mxu1 %v22408_v9 }
 0x10d   : > { %19669 = vmatprep.subr.bf16.mxu1 %v22013_v60 }
 0x10f   : > { %16867 = vmatmul.mubr.f32.gmra.mrb[28].mxu1 %v22420_v2 }
 0x110   : > { %19671 = vmatpush3.bf16.msra.mxu1 %v22013_v60  ;;  %16869 = vmatprep.mubr.f32.mxu1 %v22432_v40 }
 0x111   : > { %19673 = vmatprep.subr.bf16.mxu1 %v22037_v45 }
 0x113   : > { %16870 = vmatmul.mubr.f32.gmra.mrb[30].mxu1 %v22444_v6 }
 0x114   : > { %19675 = vmatpush3.bf16.msra.mxu1 %v22037_v45  ;;  %16904 = vmatprep.mubr.f32.mxu1 %v26107_v12  ;;  %v22767_v12 = vand.u32 4294901760, %v5063_v46 }
 0x115   : > { %19677 = vmatprep.subr.bf16.mxu1 %v21874_v14 }
 0x117   : > { %16905 = vmatmul.mubr.f32.vlgmr.msra.gmra.mrb[16].mxu1 %v26172_v43 }
 0x118   : > { %16907 = vmatprep.mubr.f32.mxu1 %v26173_v37  ;;  %19679 = vmatpush3.bf16.msra.mxu1 %v21874_v14 }
 0x119   : > { %19681 = vmatprep.subr.bf16.mxu1 %v26091_v19 }
 0x11b   : > { %16908 = vmatmul.mubr.f32.gmra.mrb[18].mxu1 %v26113_v23  ;;  %v22771_v23 = vand.u32 4294901760, %v5064_v21 }
 0x11c   : > { %16910 = vmatprep.mubr.f32.mxu1 %v26174_v34  ;;  %19683 = vmatpush3.bf16.msra.mxu1 %v26091_v19 }
 0x11d   : > { %19685 = vmatprep.subr.bf16.mxu1 %v21886_v22  ;;  %v22783_v59 = vsub.f32 %v5064_v21, %v22771_v23  ;;  %v22858_v21 = vand.u32 4294901760, %v5072_v35 }
 0x11f   : > { %16911 = vmatmul.mubr.f32.gmra.mrb[20].mxu1 %v26118_v49  ;;  %v22776_v49 = vsub.f32 %v5063_v46, %v22767_v12  ;;  %v25921_v46 = vand.u32 4294901760, %v22834_v57 }
 0x120   : > { %16913 = vmatprep.mubr.f32.mxu1 %v26120_v38  ;;  %19687 = vmatpush3.bf16.msra.mxu1 %v21886_v22  ;;  %v22778_v38 = vand.u32 4294901760, %v5065_v15 }
 0x121   : > { %19689 = vmatprep.subr.bf16.mxu1 %v21895_v28 }
 0x122   : > { %v22791_v3 = vsub.f32 %v5065_v15, %v22778_v38 }
 0x123   : > { %16914 = vmatmul.mubr.f32.gmra.mrb[22].mxu1 %v22285_v51  ;;  %v22785_v51 = vand.u32 4294901760, %v5066_v10 }
 0x124   : > { %16916 = vmatprep.mubr.f32.mxu1 %v22312_v55  ;;  %19691 = vmatpush3.bf16.msra.mxu1 %v21895_v28  ;;  %v25920_v55 = vand.u32 4294901760, %v22776_v49  ;;  %v25917_v41 = vand.u32 4294901760, %v22791_v3 }
 0x125   : > { %19693 = vmatprep.subr.bf16.mxu1 %v21934_v54  ;;  %v22805_v25 = vsub.f32 %v5066_v10, %v22785_v51 }
 0x126   : > { %v5163_v42 = vsub.f32 %v22776_v49, %v25920_v55  ;;  %v5183_v58 = vsub.f32 %v22791_v3, %v25917_v41  ;;  %v22884_v41 = vand.u32 4294901760, %v5074_v7 }
 0x127   : > { %16917 = vmatmul.mubr.f32.gmra.mrb[24].mxu1 %v22330_v18  ;;  %v25916_v62 = vand.u32 4294901760, %v22805_v25 }
 0x128   : > { %16919 = vmatprep.mubr.f32.mxu1 %v22360_v31  ;;  %19695 = vmatpush3.bf16.msra.mxu1 %v21934_v54  ;;  %v25918_v31 = vand.u32 4294901760, %v22783_v59  ;;  %v5164_v39 = vand.u32 4294901760, %v5163_v42  ;;  %v5184_v15 = vand.u32 4294901760, %v5183_v58 }
 0x129   : > { %19697 = vmatprep.subr.bf16.mxu1 %v21944_v61  ;;  %v5193_v34 = vsub.f32 %v22805_v25, %v25916_v62  ;;  %v22882_v62 = vsub.f32 %v5072_v35, %v22858_v21 }
 0x12a   : > { %v22796_v18 = vpop.f32.mrb[0].mxu1  ;;  %v5173_v36 = vsub.f32 %v22783_v59, %v25918_v31 }
 0x12b   : > { %26175 = vst [vmem:[#allocation12_spill] sm:$0xff] %v22796_v18  ;;  %v22800_v52 = vpop.f32.mrb[1].mxu1  ;;  %16920 = vmatmul.mubr.f32.gmra.mrb[26].mxu1 %v22390_v13  ;;  %v22816_v13 = vsub.f32 %v5067_v24, %v22793_v1  ;;  %v22865_v24 = vsub.f32 %v5071_v30, %v22842_v16  ;;  %v5223_v30 = vsub.f32 %v22834_v57, %v25921_v46  ;;  %v5077_v46 = vld [vmem:[#allocation2 + $0x170] sm:$0xff] }
 0x12c   : > { %26176 = vst [vmem:[#allocation15_spill] sm:$0xff] %v22800_v52  ;;  %16922 = vmatprep.mubr.f32.mxu1 %v22408_v9  ;;  %19699 = vmatpush3.bf16.msra.mxu1 %v21944_v61  ;;  %v22824_v9 = vand.u32 4294901760, %v5070_v53  ;;  %v5174_v37 = vand.u32 4294901760, %v5173_v36  ;;  %v5213_v36 = vsub.f32 %v22822_v63, %v25919_v29  ;;  %v22903_v29 = vsub.f32 %v5074_v7, %v22884_v41  ;;  %v26201_v18 = vld [vmem:[#allocation17_spill] sm:$0xff] }
 0x12d   : > { %19701 = vmatprep.subr.bf16.mxu1 %v22013_v60 }
 0x12e   : > { %v22819_v56 = vpop.f32.mrb[2].mxu1  ;;  %v5214_v35 = vand.u32 4294901760, %v5213_v36  ;;  %v26188_v36 = vand.u32 4294901760, %v22865_v24 }
 0x12f   : > { %26177 = vst [vmem:[#allocation5_spill] sm:$0xff] %v22819_v56  ;;  %v22826_v11 = vpop.f32.mrb[3].mxu1  ;;  %16923 = vmatmul.mubr.f32.gmra.mrb[28].mxu1 %v22420_v2  ;;  %v25915_v2 = vand.u32 4294901760, %v22816_v13 }
 0x130   : > { %26178 = vst [vmem:[#allocation18_spill] sm:$0xff] %v22826_v11  ;;  %16925 = vmatprep.mubr.f32.mxu1 %v22432_v40  ;;  %19703 = vmatpush3.bf16.msra.mxu1 %v22013_v60  ;;  %v22849_v40 = vsub.f32 %v5070_v53, %v22824_v9  ;;  %v5075_v53 = vld [vmem:[#allocation2 + $0x160] sm:$0xff] }
 0x131   : > { %19705 = vmatprep.subr.bf16.mxu1 %v22037_v45  ;;  %v5203_v10 = vsub.f32 %v22816_v13, %v25915_v2  ;;  %v5194_v2 = vand.u32 4294901760, %v5193_v34  ;;  %v5076_v34 = vld [vmem:[#allocation2 + $0x168] sm:$0xff] }
 0x132   : > { %v22845_v0 = vpop.f32.mrb[4].mxu1 }
 0x133   : > { %26179 = vst [vmem:[#allocation21_spill] sm:$0xff] %v22845_v0  ;;  %v22851_v43 = vpop.f32.mrb[5].mxu1  ;;  %16926 = vmatmul.mubr.f32.gmra.mrb[30].mxu1 %v22444_v6  ;;  %v22867_v6 = vand.u32 4294901760, %v5073_v27  ;;  %v5204_v31 = vand.u32 4294901760, %v5203_v10  ;;  %v5224_v10 = vand.u32 4294901760, %v5223_v30  ;;  %v5078_v30 = vld [vmem:[#allocation2 + $0x178] sm:$0xff] }
 0x134   : > { %26180 = vst [vmem:[#allocation22_spill] sm:$0xff] %v22851_v43  ;;  %19707 = vmatpush3.bf16.msra.mxu1 %v22037_v45  ;;  %17272 = vmatprep.mubr.f32.mxu1 %v5164_v39  ;;  %v26184_v39 = vld [vmem:[#allocation7_spill] sm:$0xff]  ;;  %v22905_v43 = vand.u32 4294901760, %v5076_v34 }
 0x135   : > { %19709 = vmatprep.subr.bf16.mxu1 %v26181_v20  ;;  %v22889_v55 = vsub.f32 %v5073_v27, %v22867_v6  ;;  %v26189_v27 = vld [vmem:[#allocation8_spill] sm:$0xff] }
 0x136   : > { %v22870_v42 = vpop.f32.mrb[6].mxu1 }
 0x137   : > { %26182 = vst [vmem:[#allocation26_spill] sm:$0xff] %v22870_v42  ;;  %v22876_v58 = vpop.f32.mrb[7].mxu1  ;;  %17273 = vmatmul.mubr.f32.vlgmr.msra.gmra.mrb[32].mxu1 %v5174_v37  ;;  %v22891_v37 = vand.u32 4294901760, %v5075_v53  ;;  %v26186_v42 = vand.u32 4294901760, %v22849_v40 }
 0x138   : > { %26183 = vst [vmem:[#allocation28_spill] sm:$0xff] %v22876_v58  ;;  %19711 = vmatpush3.bf16.msra.mxu1 %v26181_v20  ;;  %17275 = vmatprep.mubr.f32.mxu1 %v5184_v15 }
 0x139   : > { %19713 = vmatprep.subr.bf16.mxu1 %v26184_v39  ;;  %v5233_v20 = vsub.f32 %v22849_v40, %v26186_v42  ;;  %v22929_v42 = vand.u32 4294901760, %v5078_v30 }
 0x13a   : > { %v22894_v58 = vpop.f32.mrb[8].mxu1 }
 0x13b   : > { %26185 = vst [vmem:[#allocation29_spill] sm:$0xff] %v22894_v58  ;;  %v22899_v15 = vpop.f32.mrb[9].mxu1  ;;  %17276 = vmatmul.mubr.f32.gmra.mrb[34].mxu1 %v5194_v2  ;;  %v5243_v58 = vsub.f32 %v22865_v24, %v26188_v36  ;;  %v22915_v2 = vand.u32 4294901760, %v5077_v46  ;;  %v5234_v0 = vand.u32 4294901760, %v5233_v20  ;;  %v26193_v20 = vand.u32 4294901760, %v22889_v55 }
 0x13c   : > { %26187 = vst [vmem:[#allocation37_spill] sm:$0xff] %v22899_v15  ;;  %19715 = vmatpush3.bf16.msra.mxu1 %v26184_v39  ;;  %17278 = vmatprep.mubr.f32.mxu1 %v5204_v31  ;;  %v22913_v15 = vsub.f32 %v5075_v53, %v22891_v37  ;;  %v26192_v31 = vand.u32 4294901760, %v22882_v62  ;;  %v22927_v53 = vsub.f32 %v5076_v34, %v22905_v43 }
 0x13d   : > { %19717 = vmatprep.subr.bf16.mxu1 %v26189_v27  ;;  %v5244_v56 = vand.u32 4294901760, %v5243_v58 }
 0x13e   : > { %v22918_v7 = vpop.f32.mrb[10].mxu1  ;;  %v5253_v39 = vsub.f32 %v22882_v62, %v26192_v31  ;;  %v26194_v31 = vld [vmem:[#allocation11_spill] sm:$0xff] }
 0x13f   : > { %26190 = vst [vmem:[#allocation41_spill] sm:$0xff] %v22918_v7  ;;  %v22920_v11 = vpop.f32.mrb[11].mxu1  ;;  %17279 = vmatmul.mubr.f32.gmra.mrb[36].mxu1 %v5214_v35  ;;  %v25922_v35 = vand.u32 4294901760, %v22913_v15  ;;  %v22937_v7 = vsub.f32 %v5077_v46, %v22915_v2 }
 0x140   : > { %26191 = vst [vmem:[#allocation43_spill] sm:$0xff] %v22920_v11  ;;  %19719 = vmatpush3.bf16.msra.mxu1 %v26189_v27  ;;  %17281 = vmatprep.mubr.f32.mxu1 %v5224_v10  ;;  %v5263_v11 = vsub.f32 %v22889_v55, %v26193_v20  ;;  %v5254_v52 = vand.u32 4294901760, %v5253_v39  ;;  %v26197_v10 = vand.u32 4294901760, %v22903_v29  ;;  %v22949_v20 = vsub.f32 %v5078_v30, %v22929_v42  ;;  %v26198_v39 = vld [vmem:[#allocation13_spill] sm:$0xff] }
 0x141   : > { %19721 = vmatprep.subr.bf16.mxu1 %v26194_v31  ;;  %v26200_v30 = vand.u32 4294901760, %v22927_v53 }
 0x142   : > { %v22940_v36 = vpop.f32.mrb[12].mxu1  ;;  %v5273_v58 = vsub.f32 %v22903_v29, %v26197_v10  ;;  %v5264_v46 = vand.u32 4294901760, %v5263_v11 }
 0x143   : > { %26195 = vst [vmem:[#allocation48_spill] sm:$0xff] %v22940_v36  ;;  %v22942_v34 = vpop.f32.mrb[13].mxu1  ;;  %17282 = vmatmul.mubr.f32.gmra.mrb[38].mxu1 %v5234_v0  ;;  %v5283_v36 = vsub.f32 %v22913_v15, %v25922_v35  ;;  %v5302_v0 = vand.u32 4294901760, %v22937_v7 }
 0x144   : > { %26196 = vst [vmem:[#allocation42_spill] sm:$0xff] %v22942_v34  ;;  %19723 = vmatpush3.bf16.msra.mxu1 %v26194_v31  ;;  %17284 = vmatprep.mubr.f32.mxu1 %v5244_v56  ;;  %v5274_v27 = vand.u32 4294901760, %v5273_v58  ;;  %v5293_v31 = vsub.f32 %v22927_v53, %v26200_v30  ;;  %v5312_v56 = vand.u32 4294901760, %v22949_v20  ;;  %v26202_v30 = vld [vmem:[#allocation23_spill] sm:$0xff] }
 0x145   : > { %19725 = vmatprep.subr.bf16.mxu1 %v26198_v39  ;;  %v5284_v11 = vand.u32 4294901760, %v5283_v36  ;;  %v5303_v35 = vsub.f32 %v22937_v7, %v5302_v0 }
 0x146   : > { %v22957_v34 = vpop.f32.mrb[14].mxu1 }
 0x147   : > { %v22959_v10 = vpop.f32.mrb[15].mxu1  ;;  %17285 = vmatmul.mubr.f32.gmra.mrb[40].mxu1 %v5254_v52  ;;  %v5313_v52 = vsub.f32 %v22949_v20, %v5312_v56  ;;  %v5304_v58 = vand.u32 4294901760, %v5303_v35  ;;  %v26205_v35 = vld [vmem:[#allocation39_spill] sm:$0xff] }
 0x148   : > { %26199 = vst [vmem:[#allocation53_spill] sm:$0xff] %v22959_v10  ;;  %19727 = vmatpush3.bf16.msra.mxu1 %v26198_v39  ;;  %17287 = vmatprep.mubr.f32.mxu1 %v5264_v46  ;;  %v5294_v10 = vand.u32 4294901760, %v5293_v31  ;;  %v26203_v46 = vld [vmem:[#allocation31_spill] sm:$0xff]  ;;  %v2783_v39 = vld [vmem:[#allocation2 + $0x248] sm:$0xff] }
 0x149   : > { %19729 = vmatprep.subr.bf16.mxu1 %v26201_v18  ;;  %v5314_v36 = vand.u32 4294901760, %v5313_v52  ;;  %v26207_v31 = vld [vmem:[#allocation52_spill] sm:$0xff]  ;;  %v26210_v52 = vld [vmem:[#allocation57_spill] sm:$0xff] }
 0x14b   : > { %17288 = vmatmul.mubr.f32.gmra.mrb[42].mxu1 %v5274_v27  ;;  %v26204_v27 = vld [vmem:[#allocation34_spill] sm:$0xff] }
 0x14c   : > { %19731 = vmatpush3.bf16.msra.mxu1 %v26201_v18  ;;  %17290 = vmatprep.mubr.f32.mxu1 %v5284_v11  ;;  %v22980_v18 = vand.u32 4294901760, %v2783_v39  ;;  %v26208_v11 = vld [vmem:[#allocation55_spill] sm:$0xff] }
 0x14d   : > { %19733 = vmatprep.subr.bf16.mxu1 %v26202_v30 }
 0x14e   : > { %16928 = vmatprep.subr.mxu0 %v22980_v18 }
 0x14f   : > { %17291 = vmatmul.mubr.f32.gmra.mrb[44].mxu1 %v5294_v10  ;;  %16929 = vmatpush3.msra.mxu0 %v22980_v18  ;;  %v26206_v10 = vld [vmem:[#allocation47_spill] sm:$0xff] }
 0x150   : > { %19735 = vmatpush3.bf16.msra.mxu1 %v26202_v30  ;;  %17293 = vmatprep.mubr.f32.mxu1 %v5304_v58  ;;  %v23025_v58 = vsub.f32 %v2783_v39, %v22980_v18  ;;  %v26212_v39 = vand.u32 4294901760, %v22783_v59 }
 0x151   : > { %19737 = vmatprep.subr.bf16.mxu1 %v26203_v46 }
 0x152   : > { %v23029_v30 = vand.u32 4294901760, %v23025_v58 }
 0x153   : > { %17294 = vmatmul.mubr.f32.gmra.mrb[46].mxu1 %v5314_v36 }
 0x154   : > { %19739 = vmatpush3.bf16.msra.mxu1 %v26203_v46  ;;  %17328 = vmatprep.mubr.f32.mxu1 %v22767_v12  ;;  %v3063_v36 = vsub.f32 %v23025_v58, %v23029_v30 }
 0x155   : > { %19741 = vmatprep.subr.bf16.mxu1 %v26204_v27 }
 0x156   : > { %v23037_v46 = vand.u32 4294901760, %v3063_v36 }
 0x157   : > { %17329 = vmatmul.mubr.f32.vlgmr.msra.gmra.mrb[32].mxu1 %v22771_v23 }
 0x158   : > { %19743 = vmatpush3.bf16.msra.mxu1 %v26204_v27  ;;  %17331 = vmatprep.mubr.f32.mxu1 %v22778_v38  ;;  %v26211_v27 = vand.u32 4294901760, %v22776_v49 }
 0x159   : > { %19745 = vmatprep.subr.bf16.mxu1 %v26205_v35  ;;  %16954 = vmatprep.subr.mxu0 %v23037_v46 }
 0x15b   : > { %17332 = vmatmul.mubr.f32.gmra.mrb[34].mxu1 %v22785_v51 }
 0x15c   : > { %19747 = vmatpush3.bf16.msra.mxu1 %v26205_v35  ;;  %17334 = vmatprep.mubr.f32.mxu1 %v22793_v1  ;;  %v26213_v35 = vand.u32 4294901760, %v22791_v3 }
 0x15d   : > { %19749 = vmatprep.subr.bf16.mxu1 %v26116_v5 }
 0x15f   : > { %17335 = vmatmul.mubr.f32.gmra.mrb[36].mxu1 %v22798_v4 }
 0x160   : > { %19751 = vmatpush3.bf16.msra.mxu1 %v26116_v5  ;;  %17337 = vmatprep.mubr.f32.mxu1 %v22807_v26  ;;  %v26209_v5 = vld [vmem:[#allocation56_spill] sm:$0xff] }
 0x161   : > { %19753 = vmatprep.subr.bf16.mxu1 %v26206_v10 }
 0x163   : > { %17338 = vmatmul.mubr.f32.gmra.mrb[38].mxu1 %v22824_v9 }
 0x164   : > { %19755 = vmatpush3.bf16.msra.mxu1 %v26206_v10  ;;  %17340 = vmatprep.mubr.f32.mxu1 %v22842_v16  ;;  %v26214_v10 = vand.u32 4294901760, %v22805_v25 }
 0x165   : > { %19757 = vmatprep.subr.bf16.mxu1 %v26207_v31 }
 0x167   : > { %17341 = vmatmul.mubr.f32.gmra.mrb[40].mxu1 %v22858_v21 }
 0x168   : > { %19759 = vmatpush3.bf16.msra.mxu1 %v26207_v31  ;;  %17343 = vmatprep.mubr.f32.mxu1 %v22867_v6  ;;  %v26230_v31 = vld [vmem:[#allocation22_spill] sm:$0xff] }
 0x169   : > { %19761 = vmatprep.subr.bf16.mxu1 %v26208_v11 }
 0x16b   : > { %17344 = vmatmul.mubr.f32.gmra.mrb[42].mxu1 %v22884_v41 }
 0x16c   : > { %19763 = vmatpush3.bf16.msra.mxu1 %v26208_v11  ;;  %17346 = vmatprep.mubr.f32.mxu1 %v22891_v37 }
 0x16d   : > { %19765 = vmatprep.subr.bf16.mxu1 %v26209_v5 }
 0x16f   : > { %17347 = vmatmul.mubr.f32.gmra.mrb[44].mxu1 %v22905_v43 }
 0x170   : > { %19767 = vmatpush3.bf16.msra.mxu1 %v26209_v5  ;;  %17349 = vmatprep.mubr.f32.mxu1 %v22915_v2  ;;  %v26231_v5 = vld [vmem:[#allocation26_spill] sm:$0xff] }
 0x171   : > { %19769 = vmatprep.subr.bf16.mxu1 %v26210_v52 }
 0x173   : > { %17350 = vmatmul.mubr.f32.gmra.mrb[46].mxu1 %v22929_v42 }
 0x174   : > { %19771 = vmatpush3.bf16.msra.mxu1 %v26210_v52  ;;  %17384 = vmatprep.mubr.f32.mxu1 %v22776_v49  ;;  %v26215_v49 = vand.u32 4294901760, %v22816_v13 }
 0x175   : > { %19773 = vmatprep.subr.bf16.mxu1 %v21874_v14 }
 0x177   : > { %17385 = vmatmul.mubr.f32.vlgmr.msra.gmra.mrb[32].mxu1 %v22783_v59  ;;  %v26216_v59 = vand.u32 4294901760, %v22822_v63 }
 0x178   : > { %19775 = vmatpush3.bf16.msra.mxu1 %v21874_v14  ;;  %17387 = vmatprep.mubr.f32.mxu1 %v22791_v3  ;;  %v26218_v3 = vand.u32 4294901760, %v22849_v40 }
 0x179   : > { %19777 = vmatprep.subr.bf16.mxu1 %v26091_v19 }
 0x17b   : > { %17388 = vmatmul.mubr.f32.gmra.mrb[34].mxu1 %v22805_v25  ;;  %v26220_v25 = vand.u32 4294901760, %v22882_v62 }
 0x17c   : > { %19779 = vmatpush3.bf16.msra.mxu1 %v26091_v19  ;;  %17390 = vmatprep.mubr.f32.mxu1 %v22816_v13  ;;  %v26222_v13 = vand.u32 4294901760, %v22903_v29 }
 0x17d   : > { %19781 = vmatprep.subr.bf16.mxu1 %v21886_v22 }
 0x17f   : > { %17391 = vmatmul.mubr.f32.gmra.mrb[36].mxu1 %v22822_v63  ;;  %v26224_v63 = vand.u32 4294901760, %v22927_v53 }
 0x180   : > { %19783 = vmatpush3.bf16.msra.mxu1 %v21886_v22  ;;  %17393 = vmatprep.mubr.f32.mxu1 %v22834_v57 }
 0x181   : > { %19785 = vmatprep.subr.bf16.mxu1 %v21895_v28 }
 0x183   : > { %17394 = vmatmul.mubr.f32.gmra.mrb[38].mxu1 %v22849_v40  ;;  %v26227_v40 = vld [vmem:[#allocation5_spill] sm:$0xff] }
 0x184   : > { %19787 = vmatpush3.bf16.msra.mxu1 %v21895_v28  ;;  %17396 = vmatprep.mubr.f32.mxu1 %v22865_v24 }
 0x185   : > { %19789 = vmatprep.subr.bf16.mxu1 %v21934_v54 }
 0x187   : > { %17397 = vmatmul.mubr.f32.gmra.mrb[40].mxu1 %v22882_v62 }
 0x188   : > { %19791 = vmatpush3.bf16.msra.mxu1 %v21934_v54  ;;  %17399 = vmatprep.mubr.f32.mxu1 %v22889_v55 }
 0x189   : > { %19793 = vmatprep.subr.bf16.mxu1 %v21944_v61 }
 0x18b   : > { %17400 = vmatmul.mubr.f32.gmra.mrb[42].mxu1 %v22903_v29 }
 0x18c   : > { %19795 = vmatpush3.bf16.msra.mxu1 %v21944_v61  ;;  %17402 = vmatprep.mubr.f32.mxu1 %v22913_v15 }
 0x18d   : > { %19797 = vmatprep.subr.bf16.mxu1 %v22013_v60 }
 0x18f   : > { %17403 = vmatmul.mubr.f32.gmra.mrb[44].mxu1 %v22927_v53 }
 0x190   : > { %19799 = vmatpush3.bf16.msra.mxu1 %v22013_v60  ;;  %17405 = vmatprep.mubr.f32.mxu1 %v22937_v7  ;;  %v26228_v7 = vld [vmem:[#allocation18_spill] sm:$0xff] }
 0x191   : > { %19801 = vmatprep.subr.bf16.mxu1 %v22037_v45 }
 0x193   : > { %17406 = vmatmul.mubr.f32.gmra.mrb[46].mxu1 %v22949_v20  ;;  %v26229_v20 = vld [vmem:[#allocation21_spill] sm:$0xff] }
 0x194   : > { %19803 = vmatpush3.bf16.msra.mxu1 %v22037_v45  ;;  %17440 = vmatprep.mubr.f32.mxu1 %v26211_v27  ;;  %v26232_v27 = vld [vmem:[#allocation28_spill] sm:$0xff] }
 0x195   : > { %19805 = vmatprep.subr.bf16.mxu1 %v22326_v47 }
 0x197   : > { %17441 = vmatmul.mubr.f32.vlgmr.msra.gmra.mrb[32].mxu1 %v26212_v39 }
 0x198   : > { %19807 = vmatpush3.bf16.msra.mxu1 %v22326_v47  ;;  %17443 = vmatprep.mubr.f32.mxu1 %v26213_v35  ;;  %v26217_v47 = vand.u32 4294901760, %v22834_v57  ;;  %v26226_v57 = vld [vmem:[#allocation15_spill] sm:$0xff]  ;;  %v26233_v35 = vld [vmem:[#allocation29_spill] sm:$0xff] }
 0x199   : > { %19809 = vmatprep.subr.bf16.mxu1 %v22339_v8 }
 0x19b   : > { %17444 = vmatmul.mubr.f32.gmra.mrb[34].mxu1 %v26214_v10 }
 0x19c   : > { %19811 = vmatpush3.bf16.msra.mxu1 %v22339_v8  ;;  %17446 = vmatprep.mubr.f32.mxu1 %v26215_v49  ;;  %v26219_v8 = vand.u32 4294901760, %v22865_v24 }
 0x19d   : > { %19813 = vmatprep.subr.bf16.mxu1 %v22345_v44 }
 0x19f   : > { %17447 = vmatmul.mubr.f32.gmra.mrb[36].mxu1 %v26216_v59  ;;  %v26234_v59 = vld [vmem:[#allocation37_spill] sm:$0xff] }
 0x1a0   : > { %19815 = vmatpush3.bf16.msra.mxu1 %v22345_v44  ;;  %17449 = vmatprep.mubr.f32.mxu1 %v26217_v47  ;;  %v26221_v44 = vand.u32 4294901760, %v22889_v55  ;;  %v26225_v55 = vld [vmem:[#allocation12_spill] sm:$0xff] }
 0x1a1   : > { %19817 = vmatprep.subr.bf16.mxu1 %v22351_v32 }
 0x1a3   : > { %17450 = vmatmul.mubr.f32.gmra.mrb[38].mxu1 %v26218_v3  ;;  %v26235_v3 = vld [vmem:[#allocation41_spill] sm:$0xff] }
 0x1a4   : > { %19819 = vmatpush3.bf16.msra.mxu1 %v22351_v32  ;;  %17452 = vmatprep.mubr.f32.mxu1 %v26219_v8  ;;  %v26223_v32 = vand.u32 4294901760, %v22913_v15 }
 0x1a5   : > { %19821 = vmatprep.subr.bf16.mxu1 %v22366_v50 }
 0x1a7   : > { %17453 = vmatmul.mubr.f32.gmra.mrb[40].mxu1 %v26220_v25 }
 0x1a8   : > { %19823 = vmatpush3.bf16.msra.mxu1 %v22366_v50  ;;  %17455 = vmatprep.mubr.f32.mxu1 %v26221_v44  ;;  %v26236_v44 = vld [vmem:[#allocation43_spill] sm:$0xff] }
 0x1a9   : > { %19825 = vmatprep.subr.bf16.mxu1 %v22375_v17 }
 0x1ab   : > { %17456 = vmatmul.mubr.f32.gmra.mrb[42].mxu1 %v26222_v13 }
 0x1ac   : > { %19827 = vmatpush3.bf16.msra.mxu1 %v22375_v17  ;;  %17458 = vmatprep.mubr.f32.mxu1 %v26223_v32  ;;  %v26237_v32 = vld [vmem:[#allocation48_spill] sm:$0xff] }
 0x1ad   : > { %19829 = vmatprep.subr.bf16.mxu1 %v22381_v33 }
 0x1af   : > { %17459 = vmatmul.mubr.f32.gmra.mrb[44].mxu1 %v26224_v63 }
 0x1b0   : > { %19831 = vmatpush3.bf16.msra.mxu1 %v22381_v33  ;;  %17461 = vmatprep.mubr.f32.mxu1 %v5302_v0 }
 0x1b1   : > { %19833 = vmatprep.subr.bf16.mxu1 %v22396_v48 }
 0x1b2   : > { %v16570_v50 = vpop.f32.mrb[0].mxu0 }
 0x1b3   : > { %v23103_v62 = vadd.f32 %v16570_v50, %v26225_v55  ;;  %v1386_v17 = vpop.f32.mrb[1].mxu0  ;;  %17462 = vmatmul.mubr.f32.gmra.mrb[46].mxu1 %v5312_v56  ;;  %v26238_v55 = vld [vmem:[#allocation42_spill] sm:$0xff] }
 0x1b4   : > { %v23108_v29 = vadd.f32 %v1386_v17, %v26226_v57  ;;  %19835 = vmatpush3.bf16.msra.mxu1 %v22396_v48  ;;  %17496 = vmatprep.mubr.f32.mxu1 %v22767_v12 }
 0x1b5   : > { %19837 = vmatprep.subr.bf16.mxu1 %v21874_v14 }
 0x1b6   : > { %v16573_v33 = vpop.f32.mrb[2].mxu0 }
 0x1b7   : > { %v23114_v24 = vadd.f32 %v16573_v33, %v26227_v40  ;;  %v1398_v15 = vpop.f32.mrb[3].mxu0  ;;  %17497 = vmatmul.mubr.f32.vlgmr.msra.gmra.mrb[32].mxu1 %v22771_v23  ;;  %v26239_v40 = vld [vmem:[#allocation53_spill] sm:$0xff] }
 0x1b8   : > { %v23118_v53 = vadd.f32 %v1398_v15, %v26228_v7  ;;  %19839 = vmatpush3.bf16.msra.mxu1 %v21874_v14  ;;  %17499 = vmatprep.mubr.f32.mxu1 %v22778_v38 }
 0x1b9   : > { %19841 = vmatprep.subr.bf16.mxu1 %v26091_v19 }
 0x1ba   : > { %v16576_v48 = vpop.f32.mrb[4].mxu0 }
 0x1bb   : > { %v23124_v0 = vadd.f32 %v16576_v48, %v26229_v20  ;;  %v1410_v56 = vpop.f32.mrb[5].mxu0  ;;  %17500 = vmatmul.mubr.f32.gmra.mrb[34].mxu1 %v22785_v51 }
 0x1bc   : > { %v23128_v11 = vadd.f32 %v1410_v56, %v26230_v31  ;;  %19843 = vmatpush3.bf16.msra.mxu1 %v26091_v19  ;;  %17502 = vmatprep.mubr.f32.mxu1 %v22793_v1 }
 0x1bd   : > { %19845 = vmatprep.subr.bf16.mxu1 %v21886_v22 }
 0x1be   : > { %v16579_v14 = vpop.f32.mrb[6].mxu0 }
 0x1bf   : > { %v23134_v52 = vadd.f32 %v16579_v14, %v26231_v5  ;;  %v1422_v36 = vpop.f32.mrb[7].mxu0  ;;  %17503 = vmatmul.mubr.f32.gmra.mrb[36].mxu1 %v22798_v4 }
 0x1c0   : > { %v23138_v39 = vadd.f32 %v1422_v36, %v26232_v27  ;;  %19847 = vmatpush3.bf16.msra.mxu1 %v21886_v22  ;;  %17505 = vmatprep.mubr.f32.mxu1 %v22807_v26 }
 0x1c1   : > { %19849 = vmatprep.subr.bf16.mxu1 %v21895_v28 }
 0x1c2   : > { %v16582_v19 = vpop.f32.mrb[8].mxu0 }
 0x1c3   : > { %v23144_v10 = vadd.f32 %v16582_v19, %v26233_v35  ;;  %v1434_v49 = vpop.f32.mrb[9].mxu0  ;;  %17506 = vmatmul.mubr.f32.gmra.mrb[38].mxu1 %v22824_v9 }
 0x1c4   : > { %v23148_v47 = vadd.f32 %v1434_v49, %v26234_v59  ;;  %19851 = vmatpush3.bf16.msra.mxu1 %v21895_v28  ;;  %17508 = vmatprep.mubr.f32.mxu1 %v22842_v16 }
 0x1c5   : > { %19853 = vmatprep.subr.bf16.mxu1 %v21934_v54 }
 0x1c6   : > { %v16585_v22 = vpop.f32.mrb[10].mxu0 }
 0x1c7   : > { %v23154_v8 = vadd.f32 %v16585_v22, %v26235_v3  ;;  %v1446_v25 = vpop.f32.mrb[11].mxu0  ;;  %17509 = vmatmul.mubr.f32.gmra.mrb[40].mxu1 %v22858_v21 }
 0x1c8   : > { %v23158_v13 = vadd.f32 %v1446_v25, %v26236_v44  ;;  %19855 = vmatpush3.bf16.msra.mxu1 %v21934_v54  ;;  %17511 = vmatprep.mubr.f32.mxu1 %v22867_v6 }
 0x1c9   : > { %19857 = vmatprep.subr.bf16.mxu1 %v21944_v61 }
 0x1ca   : > { %v16588_v28 = vpop.f32.mrb[12].mxu0 }
 0x1cb   : > { %v23164_v63 = vadd.f32 %v16588_v28, %v26237_v32  ;;  %v1458_v50 = vpop.f32.mrb[13].mxu0  ;;  %17512 = vmatmul.mubr.f32.gmra.mrb[42].mxu1 %v22884_v41 }
 0x1cc   : > { %v23168_v17 = vadd.f32 %v1458_v50, %v26238_v55  ;;  %19859 = vmatpush3.bf16.msra.mxu1 %v21944_v61  ;;  %17514 = vmatprep.mubr.f32.mxu1 %v22891_v37 }
 0x1cd   : > { %19861 = vmatprep.subr.bf16.mxu1 %v22013_v60 }
 0x1ce   : > { %v16591_v54 = vpop.f32.mrb[14].mxu0 }
 0x1cf   : > { %v23174_v57 = vadd.f32 %v16591_v54, %v22957_v34  ;;  %v1470_v33 = vpop.f32.mrb[15].mxu0  ;;  %17515 = vmatmul.mubr.f32.gmra.mrb[44].mxu1 %v22905_v43 }
 0x1d0   : > { %v23178_v15 = vadd.f32 %v1470_v33, %v26239_v40  ;;  %19863 = vmatpush3.bf16.msra.mxu1 %v22013_v60  ;;  %17517 = vmatprep.mubr.f32.mxu1 %v22915_v2 }
 0x1d1   : > { %19865 = vmatprep.subr.bf16.mxu1 %v22037_v45 }
 0x1d3   : > { %17518 = vmatmul.mubr.f32.gmra.mrb[46].mxu1 %v22929_v42 }
 0x1d4   : > { %19867 = vmatpush3.bf16.msra.mxu1 %v22037_v45  ;;  %17552 = vmatprep.mubr.f32.mxu1 %v22767_v12 }
 0x1d7   : > { %17553 = vmatmul.mubr.f32.vlgmr.msra.gmra.mrb[32].mxu1 %v22771_v23 }
 0x1d8   : > { %17555 = vmatprep.mubr.f32.mxu1 %v22778_v38 }
 0x1db   : > { %17556 = vmatmul.mubr.f32.gmra.mrb[34].mxu1 %v22785_v51 }
 0x1dc   : > { %17558 = vmatprep.mubr.f32.mxu1 %v22793_v1 }
 0x1df   : > { %17559 = vmatmul.mubr.f32.gmra.mrb[36].mxu1 %v22798_v4 }
 0x1e0   : > { %17561 = vmatprep.mubr.f32.mxu1 %v22807_v26 }
 0x1e3   : > { %17562 = vmatmul.mubr.f32.gmra.mrb[38].mxu1 %v22824_v9 }
 0x1e4   : > { %17564 = vmatprep.mubr.f32.mxu1 %v22842_v16 }
 0x1e7   : > { %17565 = vmatmul.mubr.f32.gmra.mrb[40].mxu1 %v22858_v21 }
 0x1e8   : > { %17567 = vmatprep.mubr.f32.mxu1 %v22867_v6 }
 0x1ea   : > { %v16906_v61 = vpop.f32.mrb[16].mxu1 }
 0x1eb   : > { %v2789_v60 = vsel %vm2784_vm0, %v16906_v61, 0  ;;  %v2689_v45 = vpop.f32.mrb[17].mxu1  ;;  %17568 = vmatmul.mubr.f32.gmra.mrb[42].mxu1 %v22884_v41 }
 0x1ec   : > { %v23198_v12 = vand.u32 4294901760, %v2789_v60  ;;  %v2786_v23 = vsel %vm2784_vm0, %v2689_v45, 0  ;;  %17570 = vmatprep.mubr.f32.mxu1 %v22891_v37 }
 0x1ed   : > { %v23202_v38 = vand.u32 4294901760, %v2786_v23 }
 0x1ee   : > { %v23205_v51 = vsub.f32 %v2789_v60, %v23198_v12  ;;  %v16909_v1 = vpop.f32.mrb[18].mxu1 }
 0x1ef   : > { %v23208_v4 = vsub.f32 %v2786_v23, %v23202_v38  ;;  %v2795_v26 = vsel %vm2784_vm0, %v16909_v1, 0  ;;  %v2701_v9 = vpop.f32.mrb[19].mxu1  ;;  %17571 = vmatmul.mubr.f32.gmra.mrb[44].mxu1 %v22905_v43 }
 0x1f0   : > { %v25933_v41 = vand.u32 4294901760, %v23205_v51  ;;  %v23213_v16 = vand.u32 4294901760, %v2795_v26  ;;  %v2792_v21 = vsel %vm2784_vm0, %v2701_v9, 0  ;;  %17573 = vmatprep.mubr.f32.mxu1 %v22915_v2 }
 0x1f1   : > { %v2901_v6 = vand.u32 4294901760, %v23208_v4  ;;  %v23218_v37 = vand.u32 4294901760, %v2792_v21 }
 0x1f2   : > { %v2912_v34 = vsub.f32 %v23205_v51, %v25933_v41  ;;  %v23224_v7 = vsub.f32 %v2795_v26, %v23213_v16  ;;  %v16912_v43 = vpop.f32.mrb[20].mxu1 }
 0x1f3   : > { %v23227_v48 = vsub.f32 %v2792_v21, %v23218_v37  ;;  %v2801_v20 = vsel %vm2784_vm0, %v16912_v43, 0  ;;  %v2713_v56 = vpop.f32.mrb[21].mxu1  ;;  %v2902_v2 = vsub.f32 %v23208_v4, %v2901_v6  ;;  %17574 = vmatmul.mubr.f32.gmra.mrb[46].mxu1 %v22929_v42 }
 0x1f4   : > { %v25930_v31 = vand.u32 4294901760, %v23224_v7  ;;  %v23235_v14 = vand.u32 4294901760, %v2801_v20  ;;  %v2798_v5 = vsel %vm2784_vm0, %v2713_v56, 0  ;;  %v2913_v35 = vand.u32 4294901760, %v2912_v34 }
 0x1f5   : > { %v25932_v36 = vand.u32 4294901760, %v23227_v48  ;;  %v23239_v27 = vand.u32 4294901760, %v2798_v5  ;;  %v2903_v19 = vand.u32 4294901760, %v2902_v2 }
 0x1f6   : > { %v23242_v49 = vsub.f32 %v2801_v20, %v23235_v14  ;;  %v16915_v59 = vpop.f32.mrb[22].mxu1  ;;  %v2932_v42 = vsub.f32 %v23224_v7, %v25930_v31 }
 0x1f7   : > { %v23248_v22 = vsub.f32 %v2798_v5, %v23239_v27  ;;  %v2807_v3 = vsel %vm2784_vm0, %v16915_v59, 0  ;;  %v2725_v25 = vpop.f32.mrb[23].mxu1  ;;  %16930 = vmatprep.mubr.f32.mxu0 %v2903_v19  ;;  %v2922_v44 = vsub.f32 %v23227_v48, %v25932_v36 }
 0x1f8   : > { %v25927_v28 = vand.u32 4294901760, %v23242_v49  ;;  %v23255_v32 = vand.u32 4294901760, %v2807_v3  ;;  %v2804_v50 = vsel %vm2784_vm0, %v2725_v25, 0  ;;  %16931 = vmatmul.mubr.f32.vlgmr.msra.gmra.mrb[16].mxu0 %v2913_v35  ;;  %v2933_v60 = vand.u32 4294901760, %v2932_v42 }
 0x1f9   : > { %v25928_v55 = vand.u32 4294901760, %v23248_v22  ;;  %v23259_v54 = vand.u32 4294901760, %v2804_v50  ;;  %16955 = vmatpush3.msra.mxu0 %v23037_v46  ;;  %v2923_v33 = vand.u32 4294901760, %v2922_v44 }
 0x1fa   : > { %v23263_v40 = vsub.f32 %v2807_v3, %v23255_v32  ;;  %v16918_v61 = vpop.f32.mrb[24].mxu1  ;;  %v2952_v45 = vsub.f32 %v23242_v49, %v25927_v28  ;;  %16980 = vmatprep.subr.mxu0 %v23025_v58 }
 0x1fb   : > { %v23270_v23 = vsub.f32 %v2804_v50, %v23259_v54  ;;  %v2813_v1 = vsel %vm2784_vm0, %v16918_v61, 0  ;;  %v2737_v26 = vpop.f32.mrb[25].mxu1  ;;  %16933 = vmatprep.mubr.f32.mxu0 %v2923_v33  ;;  %v2942_v46 = vsub.f32 %v23248_v22, %v25928_v55 }
 0x1fc   : > { %v25924_v9 = vand.u32 4294901760, %v23263_v40  ;;  %v23277_v21 = vand.u32 4294901760, %v2813_v1  ;;  %v2810_v34 = vsel %vm2784_vm0, %v2737_v26, 0  ;;  %16934 = vmatmul.mubr.f32.gmra.mrb[18].mxu0 %v2933_v60  ;;  %v2953_v19 = vand.u32 4294901760, %v2952_v45 }
 0x1fd   : > { %v25925_v43 = vand.u32 4294901760, %v23270_v23  ;;  %v23281_v20 = vand.u32 4294901760, %v2810_v34  ;;  %v2943_v56 = vand.u32 4294901760, %v2942_v46 }
 0x1fe   : > { %v23284_v2 = vsub.f32 %v2813_v1, %v23277_v21  ;;  %v16921_v5 = vpop.f32.mrb[26].mxu1  ;;  %v2972_v35 = vsub.f32 %v23263_v40, %v25924_v9 }
 0x1ff   : > { %v23290_v59 = vsub.f32 %v2810_v34, %v23281_v20  ;;  %v2819_v42 = vsel %vm2784_vm0, %v16921_v5, 0  ;;  %v2749_v3 = vpop.f32.mrb[27].mxu1  ;;  %16936 = vmatprep.mubr.f32.mxu0 %v2943_v56  ;;  %v2962_v25 = vsub.f32 %v23270_v23, %v25925_v43 }
 0x200   : > { %v25923_v44 = vand.u32 4294901760, %v23284_v2  ;;  %v23297_v50 = vand.u32 4294901760, %v2819_v42  ;;  %v2816_v33 = vsel %vm2784_vm0, %v2749_v3, 0  ;;  %16937 = vmatmul.mubr.f32.gmra.mrb[20].mxu0 %v2953_v19  ;;  %v2973_v46 = vand.u32 4294901760, %v2972_v35 }
 0x201   : > { %v25926_v61 = vand.u32 4294901760, %v23290_v59  ;;  %v23301_v60 = vand.u32 4294901760, %v2816_v33  ;;  %v2963_v45 = vand.u32 4294901760, %v2962_v25 }
 0x202   : > { %v23304_v1 = vsub.f32 %v2819_v42, %v23297_v50  ;;  %v16924_v26 = vpop.f32.mrb[28].mxu1  ;;  %v2992_v34 = vsub.f32 %v23284_v2, %v25923_v44 }
 0x203   : > { %v23310_v56 = vsub.f32 %v2816_v33, %v23301_v60  ;;  %v2825_v5 = vsel %vm2784_vm0, %v16924_v26, 0  ;;  %v2761_v19 = vpop.f32.mrb[29].mxu1  ;;  %16939 = vmatprep.mubr.f32.mxu0 %v2963_v45  ;;  %v2982_v3 = vsub.f32 %v23290_v59, %v25926_v61 }
 0x204   : > { %v25929_v42 = vand.u32 4294901760, %v23304_v1  ;;  %v23317_v25 = vand.u32 4294901760, %v2825_v5  ;;  %v2822_v35 = vsel %vm2784_vm0, %v2761_v19, 0  ;;  %16940 = vmatmul.mubr.f32.gmra.mrb[22].mxu0 %v2973_v46  ;;  %v2993_v43 = vand.u32 4294901760, %v2992_v34 }
 0x205   : > { %v25931_v44 = vand.u32 4294901760, %v23310_v56  ;;  %v23321_v9 = vand.u32 4294901760, %v2822_v35  ;;  %v2983_v33 = vand.u32 4294901760, %v2982_v3 }
 0x206   : > { %v23324_v26 = vsub.f32 %v2825_v5, %v23317_v25  ;;  %v16927_v45 = vpop.f32.mrb[30].mxu1  ;;  %v3012_v61 = vsub.f32 %v23304_v1, %v25929_v42 }
 0x207   : > { %v23330_v28 = vsub.f32 %v2822_v35, %v23321_v9  ;;  %v2831_v19 = vsel %vm2784_vm0, %v16927_v45, 0  ;;  %v2773_v46 = vpop.f32.mrb[31].mxu1  ;;  %16942 = vmatprep.mubr.f32.mxu0 %v2983_v33  ;;  %v3002_v3 = vsub.f32 %v23310_v56, %v25931_v44 }
 0x208   : > { %v25934_v5 = vand.u32 4294901760, %v23324_v26  ;;  %v23337_v55 = vand.u32 4294901760, %v2831_v19  ;;  %v2828_v34 = vsel %vm2784_vm0, %v2773_v46, 0  ;;  %16943 = vmatmul.mubr.f32.gmra.mrb[24].mxu0 %v2993_v43  ;;  %v3013_v33 = vand.u32 4294901760, %v3012_v61 }
 0x209   : > { %v3021_v42 = vand.u32 4294901760, %v23330_v28  ;;  %v23341_v31 = vand.u32 4294901760, %v2828_v34  ;;  %v3003_v35 = vand.u32 4294901760, %v3002_v3 }
 0x20a   : > { %v23344_v45 = vsub.f32 %v2831_v19, %v23337_v55  ;;  %v3032_v44 = vsub.f32 %v23324_v26, %v25934_v5 }
 0x20b   : > { %v23350_v36 = vsub.f32 %v2828_v34, %v23341_v31  ;;  %16945 = vmatprep.mubr.f32.mxu0 %v3003_v35  ;;  %v3022_v43 = vsub.f32 %v23330_v28, %v3021_v42 }
 0x20c   : > { %v3051_v46 = vand.u32 4294901760, %v23344_v45  ;;  %16946 = vmatmul.mubr.f32.gmra.mrb[26].mxu0 %v3013_v33  ;;  %v3033_v41 = vand.u32 4294901760, %v3032_v44  ;;  %v26242_v44 = vand.u32 4294901760, %v23224_v7 }
 0x20d   : > { %v3041_v3 = vand.u32 4294901760, %v23350_v36  ;;  %v3023_v19 = vand.u32 4294901760, %v3022_v43 }
 0x20e   : > { %v3052_v61 = vsub.f32 %v23344_v45, %v3051_v46 }
 0x20f   : > { %16948 = vmatprep.mubr.f32.mxu0 %v3023_v19  ;;  %v3042_v34 = vsub.f32 %v23350_v36, %v3041_v3 }
 0x210   : > { %16949 = vmatmul.mubr.f32.gmra.mrb[28].mxu0 %v3033_v41  ;;  %v3053_v5 = vand.u32 4294901760, %v3052_v61  ;;  %v26241_v41 = vand.u32 4294901760, %v23227_v48  ;;  %v3952_v61 = vsel %vm2784_vm0, %v23144_v10, 0 }
 0x211   : > { %v3043_v35 = vand.u32 4294901760, %v3042_v34 }
 0x213   : > { %16951 = vmatprep.mubr.f32.mxu0 %v3043_v35 }
 0x214   : > { %16952 = vmatmul.mubr.f32.gmra.mrb[30].mxu0 %v3053_v5  ;;  %v26244_v5 = vand.u32 4294901760, %v23242_v49 }
 0x215   : > { %16956 = vmatprep.mubr.f32.mxu0 %v23202_v38 }
 0x218   : > { %16957 = vmatmul.mubr.f32.vlgmr.msra.gmra.mrb[16].mxu0 %v23198_v12 }
 0x219   : > { %16959 = vmatprep.mubr.f32.mxu0 %v23218_v37  ;;  %16981 = vmatpush3.msra.mxu0 %v23025_v58  ;;  %v26240_v58 = vand.u32 4294901760, %v23205_v51 }
 0x21a   : > { %17006 = vmatprep.subr.mxu0 %v22980_v18 }
 0x21c   : > { %16960 = vmatmul.mubr.f32.gmra.mrb[18].mxu0 %v23213_v16 }
 0x21d   : > { %16962 = vmatprep.mubr.f32.mxu0 %v23239_v27 }
 0x220   : > { %16963 = vmatmul.mubr.f32.gmra.mrb[20].mxu0 %v23235_v14 }
 0x221   : > { %16965 = vmatprep.mubr.f32.mxu0 %v23259_v54 }
 0x224   : > { %16966 = vmatmul.mubr.f32.gmra.mrb[22].mxu0 %v23255_v32 }
 0x225   : > { %16968 = vmatprep.mubr.f32.mxu0 %v23281_v20 }
 0x228   : > { %16969 = vmatmul.mubr.f32.gmra.mrb[24].mxu0 %v23277_v21 }
 0x229   : > { %16971 = vmatprep.mubr.f32.mxu0 %v23301_v60 }
 0x22c   : > { %16972 = vmatmul.mubr.f32.gmra.mrb[26].mxu0 %v23297_v50 }
 0x22d   : > { %16974 = vmatprep.mubr.f32.mxu0 %v23321_v9 }
 0x230   : > { %16975 = vmatmul.mubr.f32.gmra.mrb[28].mxu0 %v23317_v25 }
 0x231   : > { %16977 = vmatprep.mubr.f32.mxu0 %v23341_v31 }
 0x234   : > { %16978 = vmatmul.mubr.f32.gmra.mrb[30].mxu0 %v23337_v55 }
 0x235   : > { %16982 = vmatprep.mubr.f32.mxu0 %v23208_v4  ;;  %v26245_v4 = vand.u32 4294901760, %v23270_v23 }
 0x238   : > { %16983 = vmatmul.mubr.f32.vlgmr.msra.gmra.mrb[16].mxu0 %v23205_v51  ;;  %v26246_v51 = vand.u32 4294901760, %v23263_v40 }
 0x239   : > { %16985 = vmatprep.mubr.f32.mxu0 %v23227_v48  ;;  %17007 = vmatpush3.msra.mxu0 %v22980_v18  ;;  %v26250_v48 = vand.u32 4294901760, %v23304_v1 }
 0x23a   : > { %17032 = vmatprep.subr.mxu0 %v23029_v30 }
 0x23c   : > { %16986 = vmatmul.mubr.f32.gmra.mrb[18].mxu0 %v23224_v7  ;;  %v26249_v7 = vand.u32 4294901760, %v23310_v56 }
 0x23d   : > { %16988 = vmatprep.mubr.f32.mxu0 %v23248_v22 }
 0x240   : > { %16989 = vmatmul.mubr.f32.gmra.mrb[20].mxu0 %v23242_v49  ;;  %v26251_v49 = vand.u32 4294901760, %v23324_v26 }
 0x241   : > { %16991 = vmatprep.mubr.f32.mxu0 %v23270_v23 }
 0x244   : > { %16992 = vmatmul.mubr.f32.gmra.mrb[22].mxu0 %v23263_v40 }
 0x245   : > { %16994 = vmatprep.mubr.f32.mxu0 %v23290_v59 }
 0x248   : > { %16995 = vmatmul.mubr.f32.gmra.mrb[24].mxu0 %v23284_v2 }
 0x249   : > { %16997 = vmatprep.mubr.f32.mxu0 %v23310_v56 }
 0x24c   : > { %16998 = vmatmul.mubr.f32.gmra.mrb[26].mxu0 %v23304_v1 }
 0x24d   : > { %17000 = vmatprep.mubr.f32.mxu0 %v23330_v28 }
 0x250   : > { %17001 = vmatmul.mubr.f32.gmra.mrb[28].mxu0 %v23324_v26  ;;  %v3946_v26 = vsel %vm2784_vm0, %v23134_v52, 0 }
 0x251   : > { %17003 = vmatprep.mubr.f32.mxu0 %v23350_v36  ;;  %v26243_v36 = vand.u32 4294901760, %v23248_v22  ;;  %v1480_v22 = vld [vmem:[#allocation2 + $0x240] sm:$0xff]  ;;  %v23542_v19 = vand.u32 4294901760, %v3946_v26 }
 0x252   : > { %v23430_v40 = vand.u32 4294901760, %v1480_v22 }
 0x253   : > { %v23565_v10 = vsub.f32 %v3946_v26, %v23542_v19  ;;  %v3964_v26 = vsel %vm2784_vm0, %v23164_v63, 0 }
 0x254   : > { %17004 = vmatmul.mubr.f32.gmra.mrb[30].mxu0 %v23344_v45  ;;  %v23625_v63 = vand.u32 4294901760, %v3964_v26 }
 0x255   : > { %17008 = vmatprep.mubr.f32.mxu0 %v2901_v6  ;;  %v26247_v6 = vand.u32 4294901760, %v23290_v59  ;;  %v3925_v59 = vsel %vm2784_vm0, %v23108_v29, 0 }
 0x258   : > { %17009 = vmatmul.mubr.f32.vlgmr.msra.gmra.mrb[16].mxu0 %v26240_v58 }
 0x259   : > { %17011 = vmatprep.mubr.f32.mxu0 %v26241_v41  ;;  %17033 = vmatpush3.msra.mxu0 %v23029_v30  ;;  %v26248_v30 = vand.u32 4294901760, %v23284_v2 }
 0x25a   : > { %17058 = vmatprep.subr.mxu0 %v22980_v18 }
 0x25c   : > { %17012 = vmatmul.mubr.f32.gmra.mrb[18].mxu0 %v26242_v44 }
 0x25d   : > { %17014 = vmatprep.mubr.f32.mxu0 %v26243_v36  ;;  %v3955_v36 = vsel %vm2784_vm0, %v23158_v13, 0 }
 0x260   : > { %17015 = vmatmul.mubr.f32.gmra.mrb[20].mxu0 %v26244_v5  ;;  %v23567_v5 = vand.u32 4294901760, %v3952_v61 }
 0x261   : > { %17017 = vmatprep.mubr.f32.mxu0 %v26245_v4 }
 0x264   : > { %17018 = vmatmul.mubr.f32.gmra.mrb[22].mxu0 %v26246_v51 }
 0x265   : > { %17020 = vmatprep.mubr.f32.mxu0 %v26247_v6 }
 0x268   : > { %17021 = vmatmul.mubr.f32.gmra.mrb[24].mxu0 %v26248_v30 }
 0x269   : > { %17023 = vmatprep.mubr.f32.mxu0 %v26249_v7 }
 0x26c   : > { %17024 = vmatmul.mubr.f32.gmra.mrb[26].mxu0 %v26250_v48  ;;  %v23581_v48 = vand.u32 4294901760, %v3955_v36 }
 0x26d   : > { %17026 = vmatprep.mubr.f32.mxu0 %v3021_v42 }
 0x270   : > { %17027 = vmatmul.mubr.f32.gmra.mrb[28].mxu0 %v26251_v49 }
 0x271   : > { %17029 = vmatprep.mubr.f32.mxu0 %v3041_v3 }
 0x274   : > { %17030 = vmatmul.mubr.f32.gmra.mrb[30].mxu0 %v3051_v46 }
 0x275   : > { %17034 = vmatprep.mubr.f32.mxu0 %v23202_v38 }
 0x278   : > { %17035 = vmatmul.mubr.f32.vlgmr.msra.gmra.mrb[16].mxu0 %v23198_v12 }
 0x279   : > { %17037 = vmatprep.mubr.f32.mxu0 %v23218_v37  ;;  %17059 = vmatpush3.msra.mxu0 %v22980_v18  ;;  %v23445_v18 = vsub.f32 %v1480_v22, %v23430_v40 }
 0x27a   : > { %17084 = vmatprep.subr.mxu0 %v23430_v40 }
 0x27b   : > { %v23450_v28 = vand.u32 4294901760, %v23445_v18 }
 0x27c   : > { %17038 = vmatmul.mubr.f32.gmra.mrb[18].mxu0 %v23213_v16 }
 0x27d   : > { %17040 = vmatprep.mubr.f32.mxu0 %v23239_v27  ;;  %v4202_v23 = vsub.f32 %v23445_v18, %v23450_v28 }
 0x27f   : > { %v23458_v2 = vand.u32 4294901760, %v4202_v23 }
 0x280   : > { %17041 = vmatmul.mubr.f32.gmra.mrb[20].mxu0 %v23235_v14 }
 0x281   : > { %17043 = vmatprep.mubr.f32.mxu0 %v23259_v54 }
 0x284   : > { %17044 = vmatmul.mubr.f32.gmra.mrb[22].mxu0 %v23255_v32 }
 0x285   : > { %17046 = vmatprep.mubr.f32.mxu0 %v23281_v20 }
 0x288   : > { %17047 = vmatmul.mubr.f32.gmra.mrb[24].mxu0 %v23277_v21 }
 0x289   : > { %17049 = vmatprep.mubr.f32.mxu0 %v23301_v60 }
 0x28c   : > { %17050 = vmatmul.mubr.f32.gmra.mrb[26].mxu0 %v23297_v50 }
 0x28d   : > { %17052 = vmatprep.mubr.f32.mxu0 %v23321_v9 }
 0x290   : > { %17053 = vmatmul.mubr.f32.gmra.mrb[28].mxu0 %v23317_v25 }
 0x291   : > { %17055 = vmatprep.mubr.f32.mxu0 %v23341_v31 }
 0x294   : > { %17056 = vmatmul.mubr.f32.gmra.mrb[30].mxu0 %v23337_v55 }
 0x295   : > { %17060 = vmatprep.mubr.f32.mxu0 %v23202_v38  ;;  %v23472_v38 = vand.u32 4294901760, %v3925_v59 }
 0x297   : > { %v23481_v29 = vsub.f32 %v3925_v59, %v23472_v38  ;;  %v3961_v59 = vsel %vm2784_vm0, %v23168_v17, 0 }
 0x298   : > { %17061 = vmatmul.mubr.f32.vlgmr.msra.gmra.mrb[16].mxu0 %v23198_v12  ;;  %v3928_v12 = vsel %vm2784_vm0, %v23103_v62, 0  ;;  %v3937_v62 = vsel %vm2784_vm0, %v23128_v11, 0  ;;  %v3943_v11 = vsel %vm2784_vm0, %v23138_v39, 0 }
 0x299   : > { %17063 = vmatprep.mubr.f32.mxu0 %v23218_v37  ;;  %17085 = vmatpush3.msra.mxu0 %v23430_v40  ;;  %v3931_v37 = vsel %vm2784_vm0, %v23118_v53, 0  ;;  %v23503_v1 = vand.u32 4294901760, %v3937_v62  ;;  %v23520_v45 = vand.u32 4294901760, %v3943_v11 }
 0x29a   : > { %17110 = vmatprep.subr.mxu0 %v23458_v2 }
 0x29b   : > { %v23525_v33 = vsub.f32 %v3937_v62, %v23503_v1 }
 0x29c   : > { %17064 = vmatmul.mubr.f32.gmra.mrb[18].mxu0 %v23213_v16  ;;  %v23477_v16 = vand.u32 4294901760, %v3928_v12 }
 0x29d   : > { %17066 = vmatprep.mubr.f32.mxu0 %v23239_v27  ;;  %v23485_v27 = vand.u32 4294901760, %v3931_v37  ;;  %v25939_v44 = vand.u32 4294901760, %v23525_v33 }
 0x29e   : > { %v23491_v53 = vsub.f32 %v3928_v12, %v23477_v16  ;;  %v23591_v12 = vsub.f32 %v3952_v61, %v23567_v5  ;;  %v3967_v61 = vsel %vm2784_vm0, %v23178_v15, 0 }
 0x29f   : > { %v4081_v22 = vsub.f32 %v23525_v33, %v25939_v44 }
 0x2a0   : > { %17067 = vmatmul.mubr.f32.gmra.mrb[20].mxu0 %v23235_v14  ;;  %v3934_v14 = vsel %vm2784_vm0, %v23114_v24, 0  ;;  %v23501_v24 = vsub.f32 %v3931_v37, %v23485_v27  ;;  %v25935_v37 = vand.u32 4294901760, %v23565_v10 }
 0x2a1   : > { %17069 = vmatprep.mubr.f32.mxu0 %v23259_v54  ;;  %v3940_v54 = vsel %vm2784_vm0, %v23124_v0, 0 }
 0x2a2   : > { %v23512_v42 = vand.u32 4294901760, %v3940_v54  ;;  %v25942_v43 = vand.u32 4294901760, %v23501_v24 }
 0x2a4   : > { %17070 = vmatmul.mubr.f32.gmra.mrb[22].mxu0 %v23255_v32  ;;  %v23494_v32 = vand.u32 4294901760, %v3934_v14  ;;  %v23540_v3 = vsub.f32 %v3940_v54, %v23512_v42  ;;  %v4061_v41 = vsub.f32 %v23501_v24, %v25942_v43 }
 0x2a5   : > { %17072 = vmatprep.mubr.f32.mxu0 %v23281_v20 }
 0x2a6   : > { %v23516_v0 = vsub.f32 %v3934_v14, %v23494_v32  ;;  %v25938_v4 = vand.u32 4294901760, %v23540_v3  ;;  %v4062_v49 = vand.u32 4294901760, %v4061_v41  ;;  %v4111_v41 = vsub.f32 %v23565_v10, %v25935_v37 }
 0x2a7   : > { %v23643_v37 = vsub.f32 %v3964_v26, %v23625_v63 }
 0x2a8   : > { %17073 = vmatmul.mubr.f32.gmra.mrb[24].mxu0 %v23277_v21  ;;  %v4040_v21 = vand.u32 4294901760, %v23481_v29 }
 0x2a9   : > { %17075 = vmatprep.mubr.f32.mxu0 %v23301_v60  ;;  %v25945_v60 = vand.u32 4294901760, %v23491_v53 }
 0x2aa   : > { %v23498_v20 = vpop.f32.mrb[32].mxu1 }
 0x2ab   : > { %v23508_v56 = vpop.f32.mrb[33].mxu1  ;;  %v4051_v52 = vsub.f32 %v23491_v53, %v25945_v60 }
 0x2ac   : > { %17076 = vmatmul.mubr.f32.gmra.mrb[26].mxu0 %v23297_v50  ;;  %v3949_v50 = vsel %vm2784_vm0, %v23148_v47, 0  ;;  %v23546_v47 = vsub.f32 %v3943_v11, %v23520_v45 }
 0x2ad   : > { %17078 = vmatprep.mubr.f32.mxu0 %v23321_v9  ;;  %v4041_v9 = vsub.f32 %v23481_v29, %v4040_v21  ;;  %v23550_v34 = vand.u32 4294901760, %v3949_v50  ;;  %v4052_v51 = vand.u32 4294901760, %v4051_v52 }
 0x2ae   : > { %v23522_v39 = vpop.f32.mrb[34].mxu1  ;;  %v25937_v13 = vand.u32 4294901760, %v23546_v47 }
 0x2af   : > { %v23533_v46 = vpop.f32.mrb[35].mxu1  ;;  %v4042_v58 = vand.u32 4294901760, %v4041_v9  ;;  %v23571_v6 = vsub.f32 %v3949_v50, %v23550_v34  ;;  %v23612_v50 = vand.u32 4294901760, %v3961_v59  ;;  %v4082_v9 = vand.u32 4294901760, %v4081_v22 }
 0x2b0   : > { %17079 = vmatmul.mubr.f32.gmra.mrb[28].mxu0 %v23317_v25  ;;  %v25941_v25 = vand.u32 4294901760, %v23516_v0  ;;  %v4101_v17 = vsub.f32 %v23546_v47, %v25937_v13 }
 0x2b1   : > { %17081 = vmatprep.mubr.f32.mxu0 %v23341_v31  ;;  %v25936_v54 = vand.u32 4294901760, %v23571_v6  ;;  %v23633_v22 = vsub.f32 %v3961_v59, %v23612_v50 }
 0x2b2   : > { %v23553_v35 = vpop.f32.mrb[36].mxu1  ;;  %v4071_v30 = vsub.f32 %v23516_v0, %v25941_v25 }
 0x2b3   : > { %v23559_v31 = vpop.f32.mrb[37].mxu1  ;;  %v25946_v26 = vand.u32 4294901760, %v23633_v22 }
 0x2b4   : > { %17082 = vmatmul.mubr.f32.gmra.mrb[30].mxu0 %v23337_v55  ;;  %v3958_v55 = vsel %vm2784_vm0, %v23154_v8, 0  ;;  %v4091_v8 = vsub.f32 %v23540_v3, %v25938_v4  ;;  %v4072_v62 = vand.u32 4294901760, %v4071_v30  ;;  %v4102_v30 = vand.u32 4294901760, %v4101_v17 }
 0x2b5   : > { %17086 = vmatprep.mubr.f32.mxu0 %v4042_v58  ;;  %v23598_v14 = vand.u32 4294901760, %v3958_v55  ;;  %v4112_v17 = vand.u32 4294901760, %v4111_v41 }
 0x2b6   : > { %v23577_v7 = vpop.f32.mrb[38].mxu1  ;;  %v4092_v58 = vand.u32 4294901760, %v4091_v8  ;;  %v3970_v8 = vsel %vm2784_vm0, %v23174_v57, 0 }
 0x2b7   : > { %v23586_v23 = vpop.f32.mrb[39].mxu1 }
 0x2b8   : > { %17087 = vmatmul.mubr.f32.vlgmr.msra.gmra.mrb[16].mxu0 %v4052_v51  ;;  %v23623_v51 = vsub.f32 %v3958_v55, %v23598_v14 }
 0x2b9   : > { %17089 = vmatprep.mubr.f32.mxu0 %v4062_v49  ;;  %17111 = vmatpush3.msra.mxu0 %v23458_v2  ;;  %v23608_v2 = vsub.f32 %v3955_v36, %v23581_v48  ;;  %v25940_v36 = vand.u32 4294901760, %v23591_v12  ;;  %v4121_v49 = vsub.f32 %v23571_v6, %v25936_v54  ;;  %v23645_v54 = vand.u32 4294901760, %v3970_v8 }
 0x2ba   : > { %v23604_v11 = vpop.f32.mrb[40].mxu1  ;;  %17136 = vmatprep.subr.mxu0 %v23445_v18  ;;  %v25944_v57 = vand.u32 4294901760, %v23623_v51 }
 0x2bb   : > { %v23614_v52 = vpop.f32.mrb[41].mxu1  ;;  %v25943_v55 = vand.u32 4294901760, %v23608_v2  ;;  %v4131_v59 = vsub.f32 %v23591_v12, %v25940_v36  ;;  %v4122_v44 = vand.u32 4294901760, %v4121_v49  ;;  %v4170_v49 = vand.u32 4294901760, %v23643_v37 }
 0x2bc   : > { %17090 = vmatmul.mubr.f32.gmra.mrb[18].mxu0 %v4072_v62  ;;  %v23637_v62 = vand.u32 4294901760, %v3967_v61 }
 0x2bd   : > { %17092 = vmatprep.mubr.f32.mxu0 %v4082_v9  ;;  %v4132_v36 = vand.u32 4294901760, %v4131_v59  ;;  %v4171_v59 = vsub.f32 %v23643_v37, %v4170_v49 }
 0x2be   : > { %v23630_v15 = vpop.f32.mrb[42].mxu1  ;;  %v23654_v4 = vsub.f32 %v3967_v61, %v23637_v62  ;;  %v4151_v61 = vsub.f32 %v23623_v51, %v25944_v57 }
 0x2bf   : > { %v23640_v9 = vpop.f32.mrb[43].mxu1 }
 0x2c0   : > { %17093 = vmatmul.mubr.f32.gmra.mrb[20].mxu0 %v4092_v58  ;;  %v4141_v58 = vsub.f32 %v23608_v2, %v25943_v55  ;;  %v4161_v55 = vsub.f32 %v23633_v22, %v25946_v26  ;;  %v4172_v26 = vand.u32 4294901760, %v4171_v59 }
 0x2c1   : > { %17095 = vmatprep.mubr.f32.mxu0 %v4102_v30  ;;  %v23663_v30 = vsub.f32 %v3970_v8, %v23645_v54  ;;  %v4152_v8 = vand.u32 4294901760, %v4151_v61 }
 0x2c2   : > { %v23651_v13 = vpop.f32.mrb[44].mxu1  ;;  %v4142_v43 = vand.u32 4294901760, %v4141_v58  ;;  %v4162_v60 = vand.u32 4294901760, %v4161_v55  ;;  %v26254_v55 = vand.u32 4294901760, %v23516_v0 }
 0x2c3   : > { %v23660_v41 = vpop.f32.mrb[45].mxu1  ;;  %v4190_v57 = vand.u32 4294901760, %v23663_v30 }
 0x2c4   : > { %17096 = vmatmul.mubr.f32.gmra.mrb[22].mxu0 %v4112_v17  ;;  %v4180_v17 = vand.u32 4294901760, %v23654_v4 }
 0x2c5   : > { %17098 = vmatprep.mubr.f32.mxu0 %v4122_v44 }
 0x2c6   : > { %v23669_v25 = vpop.f32.mrb[46].mxu1  ;;  %v4181_v58 = vsub.f32 %v23654_v4, %v4180_v17 }
 0x2c7   : > { %v23675_v44 = vpop.f32.mrb[47].mxu1 }
 0x2c8   : > { %17099 = vmatmul.mubr.f32.gmra.mrb[24].mxu0 %v4132_v36  ;;  %v4191_v36 = vsub.f32 %v23663_v30, %v4190_v57 }
 0x2c9   : > { %17101 = vmatprep.mubr.f32.mxu0 %v4142_v43  ;;  %v4182_v43 = vand.u32 4294901760, %v4181_v58 }
 0x2ca   : > { %v4192_v61 = vand.u32 4294901760, %v4191_v36 }
 0x2cc   : > { %17102 = vmatmul.mubr.f32.gmra.mrb[26].mxu0 %v4152_v8  ;;  %v26256_v8 = vand.u32 4294901760, %v23540_v3 }
 0x2cd   : > { %17104 = vmatprep.mubr.f32.mxu0 %v4162_v60  ;;  %v26253_v60 = vand.u32 4294901760, %v23501_v24 }
 0x2d0   : > { %17105 = vmatmul.mubr.f32.gmra.mrb[28].mxu0 %v4172_v26  ;;  %v26255_v26 = vand.u32 4294901760, %v23525_v33 }
 0x2d1   : > { %17107 = vmatprep.mubr.f32.mxu0 %v4182_v43 }
 0x2d4   : > { %17108 = vmatmul.mubr.f32.gmra.mrb[30].mxu0 %v4192_v61 }
 0x2d5   : > { %17112 = vmatprep.mubr.f32.mxu0 %v23472_v38 }
 0x2d8   : > { %17113 = vmatmul.mubr.f32.vlgmr.msra.gmra.mrb[16].mxu0 %v23477_v16 }
 0x2d9   : > { %17115 = vmatprep.mubr.f32.mxu0 %v23485_v27  ;;  %17137 = vmatpush3.msra.mxu0 %v23445_v18  ;;  %v26252_v18 = vand.u32 4294901760, %v23491_v53 }
 0x2da   : > { %17162 = vmatprep.subr.mxu0 %v23430_v40 }
 0x2dc   : > { %17116 = vmatmul.mubr.f32.gmra.mrb[18].mxu0 %v23494_v32 }
 0x2dd   : > { %17118 = vmatprep.mubr.f32.mxu0 %v23503_v1 }
 0x2e0   : > { %17119 = vmatmul.mubr.f32.gmra.mrb[20].mxu0 %v23512_v42 }
 0x2e1   : > { %17121 = vmatprep.mubr.f32.mxu0 %v23520_v45 }
 0x2e4   : > { %17122 = vmatmul.mubr.f32.gmra.mrb[22].mxu0 %v23542_v19 }
 0x2e5   : > { %17124 = vmatprep.mubr.f32.mxu0 %v23550_v34 }
 0x2e8   : > { %17125 = vmatmul.mubr.f32.gmra.mrb[24].mxu0 %v23567_v5 }
 0x2e9   : > { %17127 = vmatprep.mubr.f32.mxu0 %v23581_v48 }
 0x2ec   : > { %17128 = vmatmul.mubr.f32.gmra.mrb[26].mxu0 %v23598_v14 }
 0x2ed   : > { %17130 = vmatprep.mubr.f32.mxu0 %v23612_v50 }
 0x2f0   : > { %17131 = vmatmul.mubr.f32.gmra.mrb[28].mxu0 %v23625_v63 }
 0x2f1   : > { %17133 = vmatprep.mubr.f32.mxu0 %v23637_v62 }
 0x2f4   : > { %17134 = vmatmul.mubr.f32.gmra.mrb[30].mxu0 %v23645_v54 }
 0x2f5   : > { %17138 = vmatprep.mubr.f32.mxu0 %v23481_v29  ;;  %v26257_v29 = vand.u32 4294901760, %v23546_v47 }
 0x2f8   : > { %17139 = vmatmul.mubr.f32.vlgmr.msra.gmra.mrb[16].mxu0 %v23491_v53  ;;  %v26258_v53 = vand.u32 4294901760, %v23565_v10 }
 0x2f9   : > { %17141 = vmatprep.mubr.f32.mxu0 %v23501_v24  ;;  %17163 = vmatpush3.msra.mxu0 %v23430_v40  ;;  %v26259_v24 = vand.u32 4294901760, %v23571_v6 }
 0x2fa   : > { %17188 = vmatprep.subr.mxu0 %v23450_v28 }
 0x2fc   : > { %17142 = vmatmul.mubr.f32.gmra.mrb[18].mxu0 %v23516_v0  ;;  %v26262_v0 = vand.u32 4294901760, %v23623_v51 }
 0x2fd   : > { %17144 = vmatprep.mubr.f32.mxu0 %v23525_v33  ;;  %v26263_v33 = vand.u32 4294901760, %v23633_v22 }
 0x300   : > { %17145 = vmatmul.mubr.f32.gmra.mrb[20].mxu0 %v23540_v3  ;;  %v6365_v3 = vld [vmem:[#allocation2 + $0x250] sm:$0xff] }
 0x301   : > { %17147 = vmatprep.mubr.f32.mxu0 %v23546_v47  ;;  %v23758_v47 = vand.u32 4294901760, %v6365_v3 }
 0x304   : > { %17148 = vmatmul.mubr.f32.gmra.mrb[22].mxu0 %v23565_v10 }
 0x305   : > { %17150 = vmatprep.mubr.f32.mxu0 %v23571_v6 }
 0x308   : > { %17151 = vmatmul.mubr.f32.gmra.mrb[24].mxu0 %v23591_v12 }
 0x309   : > { %17153 = vmatprep.mubr.f32.mxu0 %v23608_v2 }
 0x30c   : > { %17154 = vmatmul.mubr.f32.gmra.mrb[26].mxu0 %v23623_v51 }
 0x30d   : > { %17156 = vmatprep.mubr.f32.mxu0 %v23633_v22 }
 0x310   : > { %17157 = vmatmul.mubr.f32.gmra.mrb[28].mxu0 %v23643_v37 }
 0x311   : > { %17159 = vmatprep.mubr.f32.mxu0 %v23654_v4 }
 0x314   : > { %17160 = vmatmul.mubr.f32.gmra.mrb[30].mxu0 %v23663_v30 }
 0x315   : > { %17164 = vmatprep.mubr.f32.mxu0 %v4040_v21  ;;  %v26261_v21 = vand.u32 4294901760, %v23608_v2  ;;  %v6388_v2 = vsel %vm2784_vm0, %v23577_v7, 0 }
 0x316   : > { %v23862_v30 = vand.u32 4294901760, %v6388_v2 }
 0x318   : > { %17165 = vmatmul.mubr.f32.vlgmr.msra.gmra.mrb[16].mxu0 %v26252_v18  ;;  %v23882_v61 = vsub.f32 %v6388_v2, %v23862_v30 }
 0x319   : > { %17167 = vmatprep.mubr.f32.mxu0 %v26253_v60  ;;  %17189 = vmatpush3.msra.mxu0 %v23450_v28  ;;  %v26260_v28 = vand.u32 4294901760, %v23591_v12  ;;  %v6367_v12 = vsel %vm2784_vm0, %v23508_v56, 0  ;;  %v6376_v56 = vsel %vm2784_vm0, %v23522_v39, 0 }
 0x31a   : > { %17214 = vmatprep.subr.mxu0 %v23430_v40 }
 0x31c   : > { %17168 = vmatmul.mubr.f32.gmra.mrb[18].mxu0 %v26254_v55 }
 0x31d   : > { %17170 = vmatprep.mubr.f32.mxu0 %v26255_v26 }
 0x320   : > { %17171 = vmatmul.mubr.f32.gmra.mrb[20].mxu0 %v26256_v8 }
 0x321   : > { %17173 = vmatprep.mubr.f32.mxu0 %v26257_v29 }
 0x324   : > { %17174 = vmatmul.mubr.f32.gmra.mrb[22].mxu0 %v26258_v53  ;;  %v6403_v53 = vsel %vm2784_vm0, %v23660_v41, 0 }
 0x325   : > { %17176 = vmatprep.mubr.f32.mxu0 %v26259_v24  ;;  %v6552_v24 = vand.u32 4294901760, %v23882_v61 }
 0x328   : > { %17177 = vmatmul.mubr.f32.gmra.mrb[24].mxu0 %v26260_v28 }
 0x329   : > { %17179 = vmatprep.mubr.f32.mxu0 %v26261_v21 }
 0x32c   : > { %17180 = vmatmul.mubr.f32.gmra.mrb[26].mxu0 %v26262_v0 }
 0x32d   : > { %17182 = vmatprep.mubr.f32.mxu0 %v26263_v33 }
 0x330   : > { %17183 = vmatmul.mubr.f32.gmra.mrb[28].mxu0 %v4170_v49 }
 0x331   : > { %17185 = vmatprep.mubr.f32.mxu0 %v4180_v17  ;;  %v6394_v17 = vsel %vm2784_vm0, %v23604_v11, 0 }
 0x332   : > { %v23884_v11 = vand.u32 4294901760, %v6394_v17 }
 0x334   : > { %17186 = vmatmul.mubr.f32.gmra.mrb[30].mxu0 %v4190_v57  ;;  %v23904_v28 = vsub.f32 %v6394_v17, %v23884_v11 }
 0x335   : > { %17190 = vmatprep.mubr.f32.mxu0 %v23472_v38 }
 0x338   : > { %17191 = vmatmul.mubr.f32.vlgmr.msra.gmra.mrb[16].mxu0 %v23477_v16 }
 0x339   : > { %17193 = vmatprep.mubr.f32.mxu0 %v23485_v27  ;;  %17215 = vmatpush3.msra.mxu0 %v23430_v40  ;;  %v23773_v40 = vsub.f32 %v6365_v3, %v23758_v47 }
 0x33a   : > { %17576 = vmatprep.subr.mxu0 %v23758_v47 }
 0x33b   : > { %v23778_v10 = vand.u32 4294901760, %v23773_v40 }
 0x33c   : > { %17194 = vmatmul.mubr.f32.gmra.mrb[18].mxu0 %v23494_v32 }
 0x33d   : > { %17196 = vmatprep.mubr.f32.mxu0 %v23503_v1  ;;  %v6644_v4 = vsub.f32 %v23773_v40, %v23778_v10 }
 0x33f   : > { %v23786_v6 = vand.u32 4294901760, %v6644_v4  ;;  %v6406_v4 = vsel %vm2784_vm0, %v23651_v13, 0 }
 0x340   : > { %17197 = vmatmul.mubr.f32.gmra.mrb[20].mxu0 %v23512_v42 }
 0x341   : > { %17199 = vmatprep.mubr.f32.mxu0 %v23520_v45 }
 0x344   : > { %17200 = vmatmul.mubr.f32.gmra.mrb[22].mxu0 %v23542_v19 }
 0x345   : > { %17202 = vmatprep.mubr.f32.mxu0 %v23550_v34 }
 0x348   : > { %17203 = vmatmul.mubr.f32.gmra.mrb[24].mxu0 %v23567_v5 }
 0x349   : > { %17205 = vmatprep.mubr.f32.mxu0 %v23581_v48 }
 0x34c   : > { %17206 = vmatmul.mubr.f32.gmra.mrb[26].mxu0 %v23598_v14 }
 0x34d   : > { %17208 = vmatprep.mubr.f32.mxu0 %v23612_v50 }
 0x350   : > { %17209 = vmatmul.mubr.f32.gmra.mrb[28].mxu0 %v23625_v63 }
 0x351   : > { %17211 = vmatprep.mubr.f32.mxu0 %v23637_v62 }
 0x354   : > { %17212 = vmatmul.mubr.f32.gmra.mrb[30].mxu0 %v23645_v54 }
 0x355   : > { %17216 = vmatprep.mubr.f32.mxu0 %v23472_v38  ;;  %v6370_v38 = vsel %vm2784_vm0, %v23498_v20, 0  ;;  %v6379_v20 = vsel %vm2784_vm0, %v23559_v31, 0  ;;  %v6385_v31 = vsel %vm2784_vm0, %v23586_v23, 0 }
 0x356   : > { %v23830_v37 = vand.u32 4294901760, %v6379_v20  ;;  %v23844_v51 = vand.u32 4294901760, %v6385_v31 }
 0x358   : > { %17217 = vmatmul.mubr.f32.vlgmr.msra.gmra.mrb[16].mxu0 %v23477_v16  ;;  %v23800_v16 = vand.u32 4294901760, %v6367_v12  ;;  %v23848_v23 = vsub.f32 %v6379_v20, %v23830_v37  ;;  %v6553_v20 = vsub.f32 %v23882_v61, %v6552_v24 }
 0x359   : > { %17219 = vmatprep.mubr.f32.mxu0 %v23485_v27  ;;  %17577 = vmatpush3.msra.mxu0 %v23758_v47  ;;  %v6373_v27 = vsel %vm2784_vm0, %v23533_v46, 0  ;;  %v23822_v46 = vand.u32 4294901760, %v6376_v56 }
 0x35a   : > { %17602 = vmatprep.subr.mxu0 %v23786_v6  ;;  %v6522_v59 = vand.u32 4294901760, %v23848_v23  ;;  %v6554_v17 = vand.u32 4294901760, %v6553_v20 }
 0x35c   : > { %17220 = vmatmul.mubr.f32.gmra.mrb[18].mxu0 %v23494_v32  ;;  %v23805_v32 = vand.u32 4294901760, %v6370_v38  ;;  %v6523_v29 = vsub.f32 %v23848_v23, %v6522_v59 }
 0x35d   : > { %17222 = vmatprep.mubr.f32.mxu0 %v23503_v1  ;;  %v23809_v1 = vsub.f32 %v6367_v12, %v23800_v16 }
 0x35e   : > { %v6524_v12 = vand.u32 4294901760, %v6523_v29 }
 0x360   : > { %17223 = vmatmul.mubr.f32.gmra.mrb[20].mxu0 %v23512_v42  ;;  %v23813_v42 = vand.u32 4294901760, %v6373_v27 }
 0x361   : > { %17225 = vmatprep.mubr.f32.mxu0 %v23520_v45  ;;  %v23819_v45 = vsub.f32 %v6370_v38, %v23805_v32  ;;  %v6409_v38 = vsel %vm2784_vm0, %v23675_v44, 0 }
 0x362   : > { %v23828_v39 = vsub.f32 %v6373_v27, %v23813_v42  ;;  %v6572_v27 = vand.u32 4294901760, %v23904_v28 }
 0x364   : > { %17226 = vmatmul.mubr.f32.gmra.mrb[22].mxu0 %v23542_v19  ;;  %v6382_v19 = vsel %vm2784_vm0, %v23553_v35, 0  ;;  %v23840_v35 = vsub.f32 %v6376_v56, %v23822_v46  ;;  %v6502_v22 = vand.u32 4294901760, %v23828_v39 }
 0x365   : > { %17228 = vmatprep.mubr.f32.mxu0 %v23550_v34  ;;  %v6482_v34 = vand.u32 4294901760, %v23809_v1 }
 0x366   : > { %v6512_v49 = vand.u32 4294901760, %v23840_v35  ;;  %v6503_v36 = vsub.f32 %v23828_v39, %v6502_v22 }
 0x368   : > { %17229 = vmatmul.mubr.f32.gmra.mrb[24].mxu0 %v23567_v5  ;;  %v6492_v5 = vand.u32 4294901760, %v23819_v45  ;;  %v6504_v8 = vand.u32 4294901760, %v6503_v36 }
 0x369   : > { %17231 = vmatprep.mubr.f32.mxu0 %v23581_v48  ;;  %v23836_v48 = vand.u32 4294901760, %v6382_v19 }
 0x36a   : > { %v6493_v7 = vsub.f32 %v23819_v45, %v6492_v5 }
 0x36b   : > { %v23860_v57 = vsub.f32 %v6382_v19, %v23836_v48 }
 0x36c   : > { %17232 = vmatmul.mubr.f32.gmra.mrb[26].mxu0 %v23598_v14  ;;  %v6391_v14 = vsel %vm2784_vm0, %v23614_v52, 0  ;;  %v23867_v52 = vsub.f32 %v6385_v31, %v23844_v51  ;;  %v6494_v18 = vand.u32 4294901760, %v6493_v7  ;;  %v23933_v31 = vand.u32 4294901760, %v6406_v4 }
 0x36d   : > { %17234 = vmatprep.mubr.f32.mxu0 %v23612_v50  ;;  %v6483_v50 = vsub.f32 %v23809_v1, %v6482_v34  ;;  %v6532_v43 = vand.u32 4294901760, %v23860_v57  ;;  %v23944_v7 = vand.u32 4294901760, %v6409_v38 }
 0x36e   : > { %v6542_v60 = vand.u32 4294901760, %v23867_v52  ;;  %v23948_v36 = vsub.f32 %v6406_v4, %v23933_v31 }
 0x36f   : > { %v6484_v58 = vand.u32 4294901760, %v6483_v50  ;;  %v6412_v50 = vsel %vm2784_vm0, %v23669_v25, 0  ;;  %v23957_v25 = vsub.f32 %v6409_v38, %v23944_v7 }
 0x370   : > { %17235 = vmatmul.mubr.f32.gmra.mrb[28].mxu0 %v23625_v63  ;;  %v23871_v63 = vand.u32 4294901760, %v6391_v14  ;;  %v6543_v41 = vsub.f32 %v23867_v52, %v6542_v60  ;;  %v6612_v29 = vand.u32 4294901760, %v23948_v36 }
 0x371   : > { %17237 = vmatprep.mubr.f32.mxu0 %v23637_v62  ;;  %v6397_v62 = vsel %vm2784_vm0, %v23640_v9, 0  ;;  %v6513_v9 = vsub.f32 %v23840_v35, %v6512_v49 }
 0x372   : > { %v23888_v55 = vsub.f32 %v6391_v14, %v23871_v63  ;;  %v23895_v26 = vand.u32 4294901760, %v6397_v62  ;;  %v6544_v13 = vand.u32 4294901760, %v6543_v41  ;;  %v6622_v41 = vand.u32 4294901760, %v23957_v25 }
 0x373   : > { %v6514_v33 = vand.u32 4294901760, %v6513_v9  ;;  %v6613_v20 = vsub.f32 %v23948_v36, %v6612_v29 }
 0x374   : > { %17238 = vmatmul.mubr.f32.gmra.mrb[30].mxu0 %v23645_v54  ;;  %v6400_v54 = vsel %vm2784_vm0, %v23630_v15, 0  ;;  %v6533_v15 = vsub.f32 %v23860_v57, %v6532_v43  ;;  %v6562_v21 = vand.u32 4294901760, %v23888_v55  ;;  %v23918_v3 = vsub.f32 %v6397_v62, %v23895_v26 }
 0x375   : > { %17578 = vmatprep.mubr.f32.mxu0 %v6484_v58  ;;  %v23911_v0 = vand.u32 4294901760, %v6400_v54  ;;  %v23950_v62 = vand.u32 4294901760, %v6412_v50 }
 0x376   : > { %v6534_v56 = vand.u32 4294901760, %v6533_v15  ;;  %v6563_v2 = vsub.f32 %v23888_v55, %v6562_v21  ;;  %v6582_v44 = vand.u32 4294901760, %v23918_v3 }
 0x377   : > { %v23931_v19 = vsub.f32 %v6400_v54, %v23911_v0 }
 0x378   : > { %17579 = vmatmul.mubr.f32.vlgmr.msra.gmra.mrb[16].mxu0 %v6494_v18  ;;  %v6573_v18 = vsub.f32 %v23904_v28, %v6572_v27  ;;  %v6564_v54 = vand.u32 4294901760, %v6563_v2  ;;  %v6623_v2 = vsub.f32 %v23957_v25, %v6622_v41 }
 0x379   : > { %17581 = vmatprep.mubr.f32.mxu0 %v6504_v8  ;;  %17603 = vmatpush3.msra.mxu0 %v23786_v6  ;;  %v23922_v6 = vand.u32 4294901760, %v6403_v53  ;;  %v6592_v58 = vand.u32 4294901760, %v23931_v19  ;;  %v6583_v8 = vsub.f32 %v23918_v3, %v6582_v44 }
 0x37a   : > { %17628 = vmatprep.subr.mxu0 %v23773_v40  ;;  %v6574_v15 = vand.u32 4294901760, %v6573_v18  ;;  %v6624_v18 = vand.u32 4294901760, %v6623_v2 }
 0x37b   : > { %v23940_v14 = vsub.f32 %v6403_v53, %v23922_v6  ;;  %v23964_v53 = vsub.f32 %v6412_v50, %v23950_v62  ;;  %v6584_v4 = vand.u32 4294901760, %v6583_v8  ;;  %v6614_v50 = vand.u32 4294901760, %v6613_v20 }
 0x37c   : > { %17582 = vmatmul.mubr.f32.gmra.mrb[18].mxu0 %v6514_v33  ;;  %v6593_v33 = vsub.f32 %v23931_v19, %v6592_v58 }
 0x37d   : > { %17584 = vmatprep.mubr.f32.mxu0 %v6524_v12  ;;  %v6602_v9 = vand.u32 4294901760, %v23940_v14  ;;  %v6632_v38 = vand.u32 4294901760, %v23964_v53 }
 0x37f   : > { %v6603_v12 = vsub.f32 %v23940_v14, %v6602_v9 }
 0x380   : > { %17585 = vmatmul.mubr.f32.gmra.mrb[20].mxu0 %v6534_v56  ;;  %v6594_v56 = vand.u32 4294901760, %v6593_v33 }
 0x381   : > { %17587 = vmatprep.mubr.f32.mxu0 %v6544_v13  ;;  %v6604_v13 = vand.u32 4294901760, %v6603_v12 }
 0x384   : > { %17588 = vmatmul.mubr.f32.gmra.mrb[22].mxu0 %v6554_v17  ;;  %v6633_v17 = vsub.f32 %v23964_v53, %v6632_v38 }
 0x385   : > { %17590 = vmatprep.mubr.f32.mxu0 %v6564_v54 }
 0x386   : > { %v6634_v54 = vand.u32 4294901760, %v6633_v17 }
 0x388   : > { %17591 = vmatmul.mubr.f32.gmra.mrb[24].mxu0 %v6574_v15 }
 0x389   : > { %17593 = vmatprep.mubr.f32.mxu0 %v6584_v4 }
 0x38c   : > { %17594 = vmatmul.mubr.f32.gmra.mrb[26].mxu0 %v6594_v56 }
 0x38d   : > { %17596 = vmatprep.mubr.f32.mxu0 %v6604_v13 }
 0x390   : > { %17597 = vmatmul.mubr.f32.gmra.mrb[28].mxu0 %v6614_v50 }
 0x391   : > { %17599 = vmatprep.mubr.f32.mxu0 %v6624_v18 }
 0x394   : > { %17600 = vmatmul.mubr.f32.gmra.mrb[30].mxu0 %v6634_v54 }
 0x395   : > { %17604 = vmatprep.mubr.f32.mxu0 %v23800_v16 }
 0x398   : > { %17605 = vmatmul.mubr.f32.vlgmr.msra.gmra.mrb[16].mxu0 %v23805_v32 }
 0x399   : > { %17607 = vmatprep.mubr.f32.mxu0 %v23813_v42  ;;  %17629 = vmatpush3.msra.mxu0 %v23773_v40  ;;  %v11199_v40 = vld [vmem:[#allocation2 + $0x200] sm:$0xff] }
 0x39a   : > { %17654 = vmatprep.subr.mxu0 %v23758_v47 }
 0x39c   : > { %17608 = vmatmul.mubr.f32.gmra.mrb[18].mxu0 %v23822_v46 }
 0x39d   : > { %17610 = vmatprep.mubr.f32.mxu0 %v23830_v37 }
 0x3a0   : > { %17611 = vmatmul.mubr.f32.gmra.mrb[20].mxu0 %v23836_v48 }
 0x3a1   : > { %17613 = vmatprep.mubr.f32.mxu0 %v23844_v51 }
 0x3a4   : > { %17614 = vmatmul.mubr.f32.gmra.mrb[22].mxu0 %v23862_v30 }
 0x3a5   : > { %17616 = vmatprep.mubr.f32.mxu0 %v23871_v63 }
 0x3a8   : > { %17617 = vmatmul.mubr.f32.gmra.mrb[24].mxu0 %v23884_v11 }
 0x3a9   : > { %17619 = vmatprep.mubr.f32.mxu0 %v23895_v26 }
 0x3ac   : > { %17620 = vmatmul.mubr.f32.gmra.mrb[26].mxu0 %v23911_v0 }
 0x3ad   : > { %17622 = vmatprep.mubr.f32.mxu0 %v23922_v6 }
 0x3b0   : > { %17623 = vmatmul.mubr.f32.gmra.mrb[28].mxu0 %v23933_v31 }
 0x3b1   : > { %17625 = vmatprep.mubr.f32.mxu0 %v23944_v7 }
 0x3b4   : > { %17626 = vmatmul.mubr.f32.gmra.mrb[30].mxu0 %v23950_v62 }
 0x3b5   : > { %17630 = vmatprep.mubr.f32.mxu0 %v23809_v1 }
 0x3b8   : > { %17631 = vmatmul.mubr.f32.vlgmr.msra.gmra.mrb[16].mxu0 %v23819_v45 }
 0x3b9   : > { %17633 = vmatprep.mubr.f32.mxu0 %v23828_v39  ;;  %17655 = vmatpush3.msra.mxu0 %v23758_v47 }
 0x3ba   : > { %17680 = vmatprep.subr.mxu0 %v23778_v10 }
 0x3bc   : > { %17634 = vmatmul.mubr.f32.gmra.mrb[18].mxu0 %v23840_v35 }
 0x3bd   : > { %17636 = vmatprep.mubr.f32.mxu0 %v23848_v23  ;;  %v11201_v23 = vld [vmem:[#allocation2 + $0x210] sm:$0xff] }
 0x3c0   : > { %17637 = vmatmul.mubr.f32.gmra.mrb[20].mxu0 %v23860_v57  ;;  %v7561_v57 = vld [vmem:[#allocation2 + $0x198] sm:$0xff] }
 0x3c1   : > { %17639 = vmatprep.mubr.f32.mxu0 %v23867_v52 }
 0x3c4   : > { %17640 = vmatmul.mubr.f32.gmra.mrb[22].mxu0 %v23882_v61 }
 0x3c5   : > { %17642 = vmatprep.mubr.f32.mxu0 %v23888_v55 }
 0x3c8   : > { %17643 = vmatmul.mubr.f32.gmra.mrb[24].mxu0 %v23904_v28 }
 0x3c9   : > { %17645 = vmatprep.mubr.f32.mxu0 %v23918_v3  ;;  %v24136_v3 = vld [vmem:[#allocation2 + $0x378] ss:$0 sm:$0xff] }
 0x3cc   : > { %17646 = vmatmul.mubr.f32.gmra.mrb[26].mxu0 %v23931_v19 }
 0x3cd   : > { %17648 = vmatprep.mubr.f32.mxu0 %v23940_v14 }
 0x3d0   : > { %17649 = vmatmul.mubr.f32.gmra.mrb[28].mxu0 %v23948_v36 }
 0x3d1   : > { %17651 = vmatprep.mubr.f32.mxu0 %v23957_v25 }
 0x3d4   : > { %17652 = vmatmul.mubr.f32.gmra.mrb[30].mxu0 %v23964_v53 }
 0x3d5   : > { %17656 = vmatprep.mubr.f32.mxu0 %v6482_v34 }
 0x3d8   : > { %17657 = vmatmul.mubr.f32.vlgmr.msra.gmra.mrb[16].mxu0 %v6492_v5  ;;  %v7559_v5 = vld [vmem:[#allocation2 + $0x188] sm:$0xff] }
 0x3d9   : > { %17659 = vmatprep.mubr.f32.mxu0 %v6502_v22  ;;  %17681 = vmatpush3.msra.mxu0 %v23778_v10  ;;  %v24104_v35 = vand.u32 4294901760, %v7559_v5  ;;  %v7560_v22 = vld [vmem:[#allocation2 + $0x190] sm:$0xff] }
 0x3da   : > { %17706 = vmatprep.subr.mxu0 %v23758_v47  ;;  %v24111_v52 = vand.u32 4294901760, %v7560_v22 }
 0x3dc   : > { %17660 = vmatmul.mubr.f32.gmra.mrb[18].mxu0 %v6512_v49  ;;  %v24109_v49 = vsub.f32 %v7559_v5, %v24104_v35 }
 0x3dd   : > { %17662 = vmatprep.mubr.f32.mxu0 %v6522_v59  ;;  %v24116_v59 = vand.u32 4294901760, %v11201_v23 }
 0x3de   : > { %26264 = vst [vmem:[#allocation54_spill] sm:$0xff] %v24109_v49 }
 0x3e0   : > { %17663 = vmatmul.mubr.f32.gmra.mrb[20].mxu0 %v6532_v43  ;;  %v24118_v43 = vand.u32 4294901760, %v7561_v57 }
 0x3e1   : > { %17665 = vmatprep.mubr.f32.mxu0 %v6542_v60  ;;  %v24124_v60 = vsub.f32 %v7560_v22, %v24111_v52 }
 0x3e2   : > { %v24131_v28 = vsub.f32 %v7561_v57, %v24118_v43 }
 0x3e3   : > { %26266 = vst [vmem:[#allocation49_spill] sm:$0xff] %v24124_v60 }
 0x3e4   : > { %17666 = vmatmul.mubr.f32.gmra.mrb[22].mxu0 %v6552_v24  ;;  %v7562_v24 = vld [vmem:[#allocation2 + $0x1a0] sm:$0xff]  ;;  %26268 = vst [vmem:[#allocation9_spill] sm:$0xff] %v24131_v28  ;;  %v25948_v25 = vand.u32 4294901760, %v24131_v28 }
 0x3e5   : > { %17668 = vmatprep.mubr.f32.mxu0 %v6562_v21  ;;  %v24144_v19 = vand.u32 4294901760, %v7562_v24 }
 0x3e6   : > { %v24184_v54 = vsub.f32 %v24131_v28, %v25948_v25 }
 0x3e7   : > { %v24169_v12 = vsub.f32 %v7562_v24, %v24144_v19 }
 0x3e8   : > { %17669 = vmatmul.mubr.f32.gmra.mrb[24].mxu0 %v6572_v27  ;;  %v25950_v27 = vand.u32 4294901760, %v24124_v60 }
 0x3e9   : > { %17671 = vmatprep.mubr.f32.mxu0 %v6582_v44  ;;  %v11204_v44 = vld [vmem:[#allocation2 + $0x228] sm:$0xff] }
 0x3ea   : > { %v24160_v15 = vand.u32 4294901760, %v11204_v44  ;;  %v24166_v4 = vsub.f32 %v24124_v60, %v25950_v27 }
 0x3ec   : > { %17672 = vmatmul.mubr.f32.gmra.mrb[26].mxu0 %v6592_v58 }
 0x3ed   : > { %17674 = vmatprep.mubr.f32.mxu0 %v6602_v9 }
 0x3f0   : > { %17675 = vmatmul.mubr.f32.gmra.mrb[28].mxu0 %v6612_v29 }
 0x3f1   : > { %17677 = vmatprep.mubr.f32.mxu0 %v6622_v41 }
 0x3f4   : > { %17678 = vmatmul.mubr.f32.gmra.mrb[30].mxu0 %v6632_v38 }
 0x3f5   : > { %17682 = vmatprep.mubr.f32.mxu0 %v23800_v16 }
 0x3f8   : > { %17683 = vmatmul.mubr.f32.vlgmr.msra.gmra.mrb[16].mxu0 %v23805_v32 }
 0x3f9   : > { %17685 = vmatprep.mubr.f32.mxu0 %v23813_v42  ;;  %17707 = vmatpush3.msra.mxu0 %v23758_v47  ;;  %v7558_v47 = vld [vmem:[#allocation2 + $0x180] sm:$0xff] }
 0x3fa   : > { %v24086_v10 = vand.u32 4294901760, %v7558_v47 }
 0x3fc   : > { %17686 = vmatmul.mubr.f32.gmra.mrb[18].mxu0 %v23822_v46 }
 0x3fd   : > { %17688 = vmatprep.mubr.f32.mxu0 %v23830_v37 }
 0x400   : > { %17689 = vmatmul.mubr.f32.gmra.mrb[20].mxu0 %v23836_v48 }
 0x401   : > { %17691 = vmatprep.mubr.f32.mxu0 %v23844_v51 }
 0x404   : > { %17692 = vmatmul.mubr.f32.gmra.mrb[22].mxu0 %v23862_v30 }
 0x405   : > { %17694 = vmatprep.mubr.f32.mxu0 %v23871_v63 }
 0x408   : > { %17695 = vmatmul.mubr.f32.gmra.mrb[24].mxu0 %v23884_v11 }
 0x409   : > { %17697 = vmatprep.mubr.f32.mxu0 %v23895_v26 }
 0x40c   : > { %17698 = vmatmul.mubr.f32.gmra.mrb[26].mxu0 %v23911_v0 }
 0x40d   : > { %17700 = vmatprep.mubr.f32.mxu0 %v23922_v6 }
 0x410   : > { %17701 = vmatmul.mubr.f32.gmra.mrb[28].mxu0 %v23933_v31 }
 0x411   : > { %17703 = vmatprep.mubr.f32.mxu0 %v23944_v7 }
 0x414   : > { %17704 = vmatmul.mubr.f32.gmra.mrb[30].mxu0 %v23950_v62 }
 0x415   : > { %17708 = vmatprep.mubr.f32.mxu0 %v23800_v16  ;;  %v24088_v16 = vand.u32 4294901760, %v11199_v40 }
 0x417   : > { %v24094_v1 = vsub.f32 %v11199_v40, %v24088_v16 }
 0x418   : > { %17709 = vmatmul.mubr.f32.vlgmr.msra.gmra.mrb[16].mxu0 %v23805_v32  ;;  %v24091_v32 = vsub.f32 %v7558_v47, %v24086_v10 }
 0x419   : > { %17711 = vmatprep.mubr.f32.mxu0 %v23813_v42  ;;  %v25953_v45 = vand.u32 4294901760, %v24094_v1 }
 0x41a   : > { %v25954_v42 = vand.u32 4294901760, %v24091_v32 }
 0x41b   : > { %v11291_v34 = vsub.f32 %v24094_v1, %v25953_v45 }
 0x41c   : > { %17712 = vmatmul.mubr.f32.gmra.mrb[18].mxu0 %v23822_v46  ;;  %v7650_v46 = vsub.f32 %v24091_v32, %v25954_v42 }
 0x41d   : > { %17714 = vmatprep.mubr.f32.mxu0 %v23830_v37  ;;  %v11292_v37 = vand.u32 4294901760, %v11291_v34 }
 0x41e   : > { %v7651_v39 = vand.u32 4294901760, %v7650_v46 }
 0x420   : > { %17715 = vmatmul.mubr.f32.gmra.mrb[20].mxu0 %v23836_v48  ;;  %17764 = vmatprep.mubr.f32.mxu1 %v7651_v39  ;;  %v11200_v48 = vld [vmem:[#allocation2 + $0x208] sm:$0xff]  ;;  %v24196_v39 = vsub.f32 %v11204_v44, %v24160_v15 }
 0x421   : > { %17717 = vmatprep.mubr.f32.mxu0 %v23844_v51  ;;  %v24106_v51 = vand.u32 4294901760, %v11200_v48 }
 0x424   : > { %17718 = vmatmul.mubr.f32.gmra.mrb[22].mxu0 %v23862_v30  ;;  %v11202_v30 = vld [vmem:[#allocation2 + $0x218] sm:$0xff] }
 0x425   : > { %17720 = vmatprep.mubr.f32.mxu0 %v23871_v63  ;;  %v24114_v63 = vsub.f32 %v11200_v48, %v24106_v51  ;;  %v24120_v61 = vand.u32 4294901760, %v11202_v30 }
 0x427   : > { %26265 = vst [vmem:[#allocation46_spill] sm:$0xff] %v24114_v63  ;;  %v25951_v55 = vand.u32 4294901760, %v24114_v63  ;;  %v24134_v21 = vsub.f32 %v11202_v30, %v24120_v61 }
 0x428   : > { %17721 = vmatmul.mubr.f32.gmra.mrb[24].mxu0 %v23884_v11  ;;  %v25952_v11 = vand.u32 4294901760, %v24109_v49 }
 0x429   : > { %17723 = vmatprep.mubr.f32.mxu0 %v23895_v26  ;;  %v24128_v26 = vsub.f32 %v11201_v23, %v24116_v59  ;;  %26269 = vst [vmem:[#allocation10_spill] sm:$0xff] %v24134_v21  ;;  %v25947_v8 = vand.u32 4294901760, %v24134_v21 }
 0x42b   : > { %26267 = vst [vmem:[#allocation50_spill] sm:$0xff] %v24128_v26  ;;  %v25949_v58 = vand.u32 4294901760, %v24128_v26  ;;  %v24189_v47 = vsub.f32 %v24134_v21, %v25947_v8 }
 0x42c   : > { %17724 = vmatmul.mubr.f32.gmra.mrb[26].mxu0 %v23911_v0  ;;  %v11203_v0 = vld [vmem:[#allocation2 + $0x220] sm:$0xff] }
 0x42d   : > { %17726 = vmatprep.mubr.f32.mxu0 %v23922_v6  ;;  %v24141_v6 = vsub.f32 %v24109_v49, %v25952_v11  ;;  %v24152_v36 = vand.u32 4294901760, %v11203_v0  ;;  %v24175_v13 = vsub.f32 %v24128_v26, %v25949_v58 }
 0x42f   : > { %v24178_v2 = vsub.f32 %v11203_v0, %v24152_v36 }
 0x430   : > { %17727 = vmatmul.mubr.f32.gmra.mrb[28].mxu0 %v23933_v31  ;;  %v7563_v31 = vld [vmem:[#allocation2 + $0x1a8] sm:$0xff] }
 0x431   : > { %17729 = vmatprep.mubr.f32.mxu0 %v23944_v7  ;;  %v24149_v7 = vsub.f32 %v24114_v63, %v25951_v55  ;;  %v24158_v53 = vand.u32 4294901760, %v7563_v31 }
 0x433   : > { %v24193_v34 = vsub.f32 %v7563_v31, %v24158_v53  ;;  %v24205_v31 = vld [vmem:[#allocation2 + $0x230] sm:$0xff] }
 0x434   : > { %17730 = vmatmul.mubr.f32.gmra.mrb[30].mxu0 %v23950_v62 }
 0x435   : > { %18628 = vmatprep.mubr.f32.mxu0 %v11292_v37  ;;  %v24198_v37 = vld [vmem:[#allocation2 + $0x1b0] sm:$0xff] }
 0x4eb   : > { %v17710_v14 = vpop.f32.mrb[16].mxu0 }
 0x4ec   : > { %v7527_v62 = vadd.f32 %v17710_v14, %v24136_v3  ;;  %v7411_v9 = vpop.f32.mrb[17].mxu0 }
 0x4ed   : > { %v7526_v29 = vadd.f32 %v24136_v3, %v7411_v9 }
 0x4ee   : > { %v7543_v33 = vmax.f32 %v7527_v62, 0.0 }
 0x4ef   : > { %v7542_v38 = vmax.f32 %v7526_v29, 0.0  ;;  %v17713_v56 = vpop.f32.mrb[18].mxu0 }
 0x4f0   : > { %v7570_v50 = vand.u32 4294901760, %v7543_v33  ;;  %v7529_v17 = vadd.f32 %v17713_v56, %v24136_v3  ;;  %v7423_v18 = vpop.f32.mrb[19].mxu0 }
 0x4f1   : > { %v7567_v40 = vand.u32 4294901760, %v7542_v38  ;;  %v7528_v46 = vadd.f32 %v24136_v3, %v7423_v18 }
 0x4f2   : > { %v7736_v5 = vsub.f32 %v7543_v33, %v7570_v50  ;;  %v7545_v48 = vmax.f32 %v7529_v17, 0.0  ;;  %v24209_v33 = vand.u32 4294901760, %v24198_v37 }
 0x4f3   : > { %v24202_v57 = vpack.c.bf16 %v7570_v50, %v7567_v40  ;;  %v7729_v30 = vsub.f32 %v7542_v38, %v7567_v40  ;;  %v7544_v24 = vmax.f32 %v7528_v46, 0.0  ;;  %v17716_v0 = vpop.f32.mrb[20].mxu0 }
 0x4f4   : > { %v7737_v62 = vand.u32 4294901760, %v7736_v5  ;;  %v7576_v44 = vand.u32 4294901760, %v7545_v48  ;;  %v7531_v9 = vadd.f32 %v17716_v0, %v24136_v3  ;;  %v7435_v29 = vpop.f32.mrb[21].mxu0  ;;  %v24219_v0 = vand.u32 4294901760, %v24205_v31 }
 0x4f5   : > { %26270 = vst [vmem:[#allocation14_spill] sm:$0xff] %v24202_v57  ;;  %v7730_v56 = vand.u32 4294901760, %v7729_v30  ;;  %v24211_v17 = vpack.c.bf16 %v7736_v5, %v7729_v30  ;;  %v7573_v50 = vand.u32 4294901760, %v7544_v24  ;;  %v7530_v38 = vadd.f32 %v24136_v3, %v7435_v29  ;;  %19869 = vmatprep.subr.bf16.mxu1 %v24202_v57  ;;  %20445 = vmatprep.subr.bf16.mxu0 %v24202_v57 }
 0x4f6   : > { %v7738_v18 = vsub.f32 %v7736_v5, %v7737_v62  ;;  %v7750_v40 = vsub.f32 %v7545_v48, %v7576_v44  ;;  %v7547_v46 = vmax.f32 %v7531_v9, 0.0  ;;  %19871 = vmatpush3.bf16.msra.mxu1 %v24202_v57  ;;  %20447 = vmatpush3.bf16.msra.mxu0 %v24202_v57 }
 0x4f7   : > { %v7731_v8 = vsub.f32 %v7729_v30, %v7730_v56  ;;  %v24221_v25 = vpack.c.bf16 %v7737_v62, %v7730_v56  ;;  %v24223_v58 = vpack.c.bf16 %v7576_v44, %v7573_v50  ;;  %v7743_v29 = vsub.f32 %v7544_v24, %v7573_v50  ;;  %v17719_v27 = vpop.f32.mrb[22].mxu0 }
 0x4f8   : > { %v7739_v55 = vand.u32 4294901760, %v7738_v18  ;;  %v7751_v11 = vand.u32 4294901760, %v7750_v40  ;;  %v7582_v45 = vand.u32 4294901760, %v7547_v46  ;;  %v7546_v5 = vmax.f32 %v7530_v38, 0.0  ;;  %v7447_v48 = vpop.f32.mrb[23].mxu0 }
 0x4f9   : > { %26271 = vst [vmem:[#allocation16_spill] sm:$0xff] %v24221_v25  ;;  %26272 = vst [vmem:[#allocation19_spill] sm:$0xff] %v24223_v58  ;;  %v7732_v9 = vand.u32 4294901760, %v7731_v8  ;;  %v7744_v42 = vand.u32 4294901760, %v7743_v29  ;;  %v24225_v22 = vpack.c.bf16 %v7750_v40, %v7743_v29  ;;  %v7533_v20 = vadd.f32 %v17719_v27, %v24136_v3  ;;  %19873 = vmatprep.subr.bf16.mxu1 %v24223_v58 }
 0x4fa   : > { %20449 = vmatprep.subr.bf16.mxu0 %v24223_v58  ;;  %v7752_v30 = vsub.f32 %v7750_v40, %v7751_v11  ;;  %v7764_v62 = vsub.f32 %v7547_v46, %v7582_v45  ;;  %v7579_v44 = vand.u32 4294901760, %v7546_v5  ;;  %v7532_v24 = vadd.f32 %v24136_v3, %v7447_v48  ;;  %19875 = vmatpush3.bf16.msra.mxu1 %v24223_v58 }
 0x4fb   : > { %20451 = vmatpush3.bf16.msra.mxu0 %v24223_v58  ;;  %v24233_v56 = vpack.c.bf16 %v7739_v55, %v7732_v9  ;;  %v7745_v8 = vsub.f32 %v7743_v29, %v7744_v42  ;;  %v24235_v50 = vpack.c.bf16 %v7751_v11, %v7744_v42  ;;  %v7549_v38 = vmax.f32 %v7533_v20, 0.0  ;;  %v17722_v27 = vpop.f32.mrb[24].mxu0 }
 0x4fc   : > { %v7753_v18 = vand.u32 4294901760, %v7752_v30  ;;  %v7765_v41 = vand.u32 4294901760, %v7764_v62  ;;  %v24237_v14 = vpack.c.bf16 %v7582_v45, %v7579_v44  ;;  %v7757_v40 = vsub.f32 %v7546_v5, %v7579_v44  ;;  %v7459_v46 = vpop.f32.mrb[25].mxu0 }
 0x4fd   : > { %26273 = vst [vmem:[#allocation20_spill] sm:$0xff] %v24235_v50  ;;  %v7746_v23 = vand.u32 4294901760, %v7745_v8  ;;  %v7588_v25 = vand.u32 4294901760, %v7549_v38  ;;  %v7548_v48 = vmax.f32 %v7532_v24, 0.0  ;;  %v7535_v21 = vadd.f32 %v17722_v27, %v24136_v3 }
 0x4fe   : > { %26274 = vst [vmem:[#allocation24_spill] sm:$0xff] %v24237_v14  ;;  %v7766_v28 = vsub.f32 %v7764_v62, %v7765_v41  ;;  %v7758_v26 = vand.u32 4294901760, %v7757_v40  ;;  %v24240_v55 = vpack.c.bf16 %v7764_v62, %v7757_v40  ;;  %v7534_v42 = vadd.f32 %v24136_v3, %v7459_v46  ;;  %19877 = vmatprep.subr.bf16.mxu1 %v24237_v14 }
 0x4ff   : > { %20453 = vmatprep.subr.bf16.mxu0 %v24237_v14  ;;  %v24245_v11 = vpack.c.bf16 %v7753_v18, %v7746_v23  ;;  %v7778_v45 = vsub.f32 %v7549_v38, %v7588_v25  ;;  %v7585_v20 = vand.u32 4294901760, %v7548_v48  ;;  %v7551_v29 = vmax.f32 %v7535_v21, 0.0  ;;  %19879 = vmatpush3.bf16.msra.mxu1 %v24237_v14  ;;  %v17725_v5 = vpop.f32.mrb[26].mxu0 }
 0x500   : > { %20455 = vmatpush3.bf16.msra.mxu0 %v24237_v14  ;;  %v7767_v9 = vand.u32 4294901760, %v7766_v28  ;;  %v7759_v30 = vsub.f32 %v7757_v40, %v7758_v26  ;;  %v24249_v62 = vpack.c.bf16 %v7765_v41, %v7758_v26  ;;  %v7550_v44 = vmax.f32 %v7534_v42, 0.0  ;;  %v7471_v24 = vpop.f32.mrb[27].mxu0 }
 0x501   : > { %v7779_v8 = vand.u32 4294901760, %v7778_v45  ;;  %v24251_v27 = vpack.c.bf16 %v7588_v25, %v7585_v20  ;;  %v7771_v46 = vsub.f32 %v7548_v48, %v7585_v20  ;;  %v7594_v23 = vand.u32 4294901760, %v7551_v29 }
 0x502   : > { %26275 = vst [vmem:[#allocation25_spill] sm:$0xff] %v24249_v62  ;;  %v7760_v18 = vand.u32 4294901760, %v7759_v30  ;;  %v7591_v38 = vand.u32 4294901760, %v7550_v44  ;;  %v7537_v21 = vadd.f32 %v17725_v5, %v24136_v3  ;;  %v7536_v50 = vadd.f32 %v24136_v3, %v7471_v24 }
 0x503   : > { %26276 = vst [vmem:[#allocation27_spill] sm:$0xff] %v24251_v27  ;;  %v7780_v60 = vsub.f32 %v7778_v45, %v7779_v8  ;;  %v7772_v14 = vand.u32 4294901760, %v7771_v46  ;;  %v24255_v58 = vpack.c.bf16 %v7778_v45, %v7771_v46  ;;  %v7792_v28 = vsub.f32 %v7551_v29, %v7594_v23  ;;  %19881 = vmatprep.subr.bf16.mxu1 %v24251_v27  ;;  %v17728_v26 = vpop.f32.mrb[28].mxu0 }
 0x504   : > { %20457 = vmatprep.subr.bf16.mxu0 %v24251_v27  ;;  %v24259_v25 = vpack.c.bf16 %v7767_v9, %v7760_v18  ;;  %v24261_v41 = vpack.c.bf16 %v7594_v23, %v7591_v38  ;;  %v7785_v40 = vsub.f32 %v7550_v44, %v7591_v38  ;;  %v7553_v48 = vmax.f32 %v7537_v21, 0.0  ;;  %19883 = vmatpush3.bf16.msra.mxu1 %v24251_v27  ;;  %v7483_v42 = vpop.f32.mrb[29].mxu0 }
 0x505   : > { %20459 = vmatpush3.bf16.msra.mxu0 %v24251_v27  ;;  %v7781_v20 = vand.u32 4294901760, %v7780_v60  ;;  %v7773_v45 = vsub.f32 %v7771_v46, %v7772_v14  ;;  %v24265_v5 = vpack.c.bf16 %v7779_v8, %v7772_v14  ;;  %v7793_v29 = vand.u32 4294901760, %v7792_v28 }
 0x506   : > { %26277 = vst [vmem:[#allocation58_spill] sm:$0xff] %v24261_v41  ;;  %v7786_v30 = vand.u32 4294901760, %v7785_v40  ;;  %v24267_v24 = vpack.c.bf16 %v7792_v28, %v7785_v40  ;;  %v7600_v62 = vand.u32 4294901760, %v7553_v48  ;;  %v7552_v9 = vmax.f32 %v7536_v50, 0.0  ;;  %19885 = vmatprep.subr.bf16.mxu1 %v24261_v41  ;;  %20461 = vmatprep.subr.bf16.mxu0 %v24261_v41 }
 0x507   : > { %26278 = vst [vmem:[#allocation30_spill] sm:$0xff] %v24265_v5  ;;  %v7774_v44 = vand.u32 4294901760, %v7773_v45  ;;  %v7794_v23 = vsub.f32 %v7792_v28, %v7793_v29  ;;  %v7539_v18 = vadd.f32 %v17728_v26, %v24136_v3  ;;  %v7538_v38 = vadd.f32 %v24136_v3, %v7483_v42  ;;  %v17731_v60 = vpop.f32.mrb[30].mxu0 }
 0x508   : > { %v7787_v46 = vsub.f32 %v7785_v40, %v7786_v30  ;;  %v24273_v14 = vpack.c.bf16 %v7793_v29, %v7786_v30  ;;  %v7806_v8 = vsub.f32 %v7553_v48, %v7600_v62  ;;  %v7597_v21 = vand.u32 4294901760, %v7552_v9  ;;  %19887 = vmatpush3.bf16.msra.mxu1 %v24261_v41  ;;  %v7495_v50 = vpop.f32.mrb[31].mxu0 }
 0x509   : > { %20463 = vmatpush3.bf16.msra.mxu0 %v24261_v41  ;;  %v24277_v5 = vpack.c.bf16 %v7781_v20, %v7774_v44  ;;  %v7795_v27 = vand.u32 4294901760, %v7794_v23  ;;  %v7555_v45 = vmax.f32 %v7539_v18, 0.0  ;;  %v7554_v28 = vmax.f32 %v7538_v38, 0.0 }
 0x50a   : > { %26279 = vst [vmem:[#allocation32_spill] sm:$0xff] %v24273_v14  ;;  %v7788_v63 = vand.u32 4294901760, %v7787_v46  ;;  %v7807_v26 = vand.u32 4294901760, %v7806_v8  ;;  %v24279_v49 = vpack.c.bf16 %v7600_v62, %v7597_v21  ;;  %v7799_v42 = vsub.f32 %v7552_v9, %v7597_v21 }
 0x50b   : > { %v7606_v40 = vand.u32 4294901760, %v7555_v45  ;;  %v7603_v29 = vand.u32 4294901760, %v7554_v28  ;;  %v7541_v48 = vadd.f32 %v17731_v60, %v24136_v3  ;;  %v7540_v30 = vadd.f32 %v24136_v3, %v7495_v50  ;;  %v7565_v3 = vld [vmem:[#allocation2 + $0x1b8] sm:$0xff] }
 0x50c   : > { %26280 = vst [vmem:[#allocation33_spill] sm:$0xff] %v24279_v49  ;;  %v24283_v14 = vpack.c.bf16 %v7795_v27, %v7788_v63  ;;  %v7808_v41 = vsub.f32 %v7806_v8, %v7807_v26  ;;  %v7800_v57 = vand.u32 4294901760, %v7799_v42  ;;  %v24285_v20 = vpack.c.bf16 %v7806_v8, %v7799_v42  ;;  %19889 = vmatprep.subr.bf16.mxu1 %v24279_v49  ;;  %v11206_v63 = vld [vmem:[#allocation2 + $0x238] sm:$0xff] }
 0x50d   : > { %20465 = vmatprep.subr.bf16.mxu0 %v24279_v49  ;;  %v7820_v44 = vsub.f32 %v7555_v45, %v7606_v40  ;;  %v24289_v62 = vpack.c.bf16 %v7606_v40, %v7603_v29  ;;  %v7813_v9 = vsub.f32 %v7554_v28, %v7603_v29  ;;  %v7557_v23 = vmax.f32 %v7541_v48, 0.0  ;;  %19891 = vmatpush3.bf16.msra.mxu1 %v24279_v49 }
 0x50e   : > { %26281 = vst [vmem:[#allocation35_spill] sm:$0xff] %v24285_v20  ;;  %20467 = vmatpush3.bf16.msra.mxu0 %v24279_v49  ;;  %v7809_v27 = vand.u32 4294901760, %v7808_v41  ;;  %v7801_v18 = vsub.f32 %v7799_v42, %v7800_v57  ;;  %v24293_v38 = vpack.c.bf16 %v7807_v26, %v7800_v57  ;;  %v7556_v60 = vmax.f32 %v7540_v30, 0.0 }
 0x50f   : > { %v7821_v46 = vand.u32 4294901760, %v7820_v44  ;;  %v7814_v8 = vand.u32 4294901760, %v7813_v9  ;;  %v24295_v21 = vpack.c.bf16 %v7820_v44, %v7813_v9  ;;  %v7612_v50 = vand.u32 4294901760, %v7557_v23  ;;  %19893 = vmatprep.subr.bf16.mxu1 %v24289_v62  ;;  %20469 = vmatprep.subr.bf16.mxu0 %v24289_v62 }
 0x510   : > { %26282 = vst [vmem:[#allocation36_spill] sm:$0xff] %v24293_v38  ;;  %v7802_v45 = vand.u32 4294901760, %v7801_v18  ;;  %v7609_v28 = vand.u32 4294901760, %v7556_v60  ;;  %v24299_v40 = vand.u32 4294901760, %v7565_v3  ;;  %v24301_v29 = vand.u32 4294901760, %v11206_v63 }
 0x511   : > { %26283 = vst [vmem:[#allocation38_spill] sm:$0xff] %v24295_v21  ;;  %v7822_v41 = vsub.f32 %v7820_v44, %v7821_v46  ;;  %v7815_v42 = vsub.f32 %v7813_v9, %v7814_v8  ;;  %v24303_v57 = vpack.c.bf16 %v7821_v46, %v7814_v8  ;;  %v7834_v26 = vsub.f32 %v7557_v23, %v7612_v50 }
 0x512   : > { %19895 = vmatpush3.bf16.msra.mxu1 %v24289_v62  ;;  %v24306_v48 = vpack.c.bf16 %v7809_v27, %v7802_v45  ;;  %v24308_v30 = vpack.c.bf16 %v7612_v50, %v7609_v28  ;;  %v7827_v38 = vsub.f32 %v7556_v60, %v7609_v28  ;;  %20471 = vmatpush3.bf16.msra.mxu0 %v24289_v62  ;;  %v7699_v18 = vand.u32 4294901760, %v24193_v34 }
 0x513   : > { %v7823_v49 = vand.u32 4294901760, %v7822_v41  ;;  %v7816_v21 = vand.u32 4294901760, %v7815_v42  ;;  %v7835_v20 = vand.u32 4294901760, %v7834_v26  ;;  %v24314_v44 = vsub.f32 %v24198_v37, %v24209_v33 }
 0x514   : > { %v7828_v9 = vand.u32 4294901760, %v7827_v38  ;;  %v24316_v23 = vpack.c.bf16 %v7834_v26, %v7827_v38  ;;  %19897 = vmatprep.subr.bf16.mxu1 %v24308_v30  ;;  %20473 = vmatprep.subr.bf16.mxu0 %v24308_v30  ;;  %v24322_v27 = vsub.f32 %v24205_v31, %v24219_v0  ;;  %v24325_v60 = vsub.f32 %v7565_v3, %v24299_v40 }
 0x515   : > { %v24327_v46 = vpack.c.bf16 %v7823_v49, %v7816_v21  ;;  %v7836_v8 = vsub.f32 %v7834_v26, %v7835_v20  ;;  %v25987_v37 = vand.u32 4294901760, %v24196_v39  ;;  %v24332_v50 = vsub.f32 %v11206_v63, %v24301_v29 }
 0x516   : > { %19899 = vmatpush3.bf16.msra.mxu1 %v24308_v30  ;;  %v7829_v45 = vsub.f32 %v7827_v38, %v7828_v9  ;;  %v24334_v28 = vpack.c.bf16 %v7835_v20, %v7828_v9  ;;  %20475 = vmatpush3.bf16.msra.mxu0 %v24308_v30  ;;  %v11312_v31 = vand.u32 4294901760, %v24175_v13  ;;  %v7681_v49 = vand.u32 4294901760, %v24184_v54 }
 0x517   : > { %19901 = vmatprep.subr.bf16.mxu1 %v24233_v56  ;;  %v7837_v3 = vand.u32 4294901760, %v7836_v8  ;;  %20477 = vmatprep.subr.bf16.mxu0 %v24233_v56  ;;  %v26284_v21 = vand.u32 4294901760, %v24169_v12  ;;  %v26285_v63 = vand.u32 4294901760, %v24178_v2  ;;  %v7709_v38 = vand.u32 4294901760, %v24314_v44 }
 0x518   : > { %v7830_v42 = vand.u32 4294901760, %v7829_v45  ;;  %v26286_v26 = vand.u32 4294901760, %v24141_v6  ;;  %v7700_v13 = vsub.f32 %v24193_v34, %v7699_v18  ;;  %v25990_v54 = vand.u32 4294901760, %v24322_v27 }
 0x519   : > { %v7690_v41 = vsub.f32 %v24169_v12, %v26284_v21  ;;  %v11331_v20 = vsub.f32 %v24178_v2, %v26285_v63  ;;  %v25989_v9 = vand.u32 4294901760, %v24325_v60  ;;  %v26287_v8 = vand.u32 4294901760, %v24149_v7 }
 0x51a   : > { %17765 = vmatmul.mubr.f32.vlgmr.msra.gmra.mrb[48].mxu1 %v26286_v26  ;;  %v11322_v21 = vand.u32 4294901760, %v24189_v47  ;;  %v11341_v6 = vsub.f32 %v24196_v39, %v25987_v37  ;;  %v25988_v45 = vand.u32 4294901760, %v24332_v50  ;;  %v24363_v63 = vpack.c.bf16 %v7837_v3, %v7830_v42 }
 0x51b   : > { %19903 = vmatpush3.bf16.msra.mxu1 %v24233_v56  ;;  %18629 = vmatmul.mubr.f32.vlgmr.msra.gmra.mrb[32].mxu0 %v26287_v8  ;;  %v26288_v26 = vand.u32 4294901760, %v24166_v4  ;;  %v7691_v7 = vand.u32 4294901760, %v7690_v41  ;;  %v7710_v47 = vsub.f32 %v24314_v44, %v7709_v38  ;;  %v11332_v8 = vand.u32 4294901760, %v11331_v20 }
 0x51c   : > { %20479 = vmatpush3.bf16.msra.mxu0 %v24233_v56  ;;  %19905 = vmatprep.subr.bf16.mxu1 %v24245_v11  ;;  %v7701_v37 = vand.u32 4294901760, %v7700_v13  ;;  %v11351_v3 = vsub.f32 %v24322_v27, %v25990_v54  ;;  %v7720_v42 = vsub.f32 %v24325_v60, %v25989_v9  ;;  %v11342_v4 = vand.u32 4294901760, %v11341_v6  ;;  %v26291_v6 = vld [vmem:[#allocation14_spill] sm:$0xff] }
 0x51d   : > { %20481 = vmatprep.subr.bf16.mxu0 %v24245_v11  ;;  %17767 = vmatprep.mubr.f32.mxu1 %v26288_v26  ;;  %v11361_v41 = vsub.f32 %v24332_v50, %v25988_v45  ;;  %v26292_v26 = vld [vmem:[#allocation54_spill] sm:$0xff]  ;;  %v26304_v45 = vld [vmem:[#allocation33_spill] sm:$0xff] }
 0x51e   : > { %18631 = vmatprep.mubr.f32.mxu0 %v11312_v31  ;;  %17768 = vmatmul.mubr.f32.gmra.mrb[50].mxu1 %v7681_v49  ;;  %v7711_v31 = vand.u32 4294901760, %v7710_v47  ;;  %v11352_v49 = vand.u32 4294901760, %v11351_v3  ;;  %v7721_v20 = vand.u32 4294901760, %v7720_v42  ;;  %v26294_v47 = vld [vmem:[#allocation19_spill] sm:$0xff]  ;;  %v26296_v3 = vld [vmem:[#allocation50_spill] sm:$0xff]  ;;  %v26297_v42 = vld [vmem:[#allocation9_spill] sm:$0xff] }
 0x51f   : > { %19907 = vmatpush3.bf16.msra.mxu1 %v24245_v11  ;;  %18632 = vmatmul.mubr.f32.gmra.mrb[34].mxu0 %v11322_v21  ;;  %v11362_v13 = vand.u32 4294901760, %v11361_v41  ;;  %v26290_v21 = vld [vmem:[#allocation38_spill] sm:$0xff]  ;;  %v26299_v41 = vld [vmem:[#allocation24_spill] sm:$0xff]  ;;  %v26310_v54 = vand.u32 4294901760, %v26296_v3 }
 0x520   : > { %20483 = vmatpush3.bf16.msra.mxu0 %v24245_v11  ;;  %19909 = vmatprep.subr.bf16.mxu1 %v24259_v25 }
 0x521   : > { %20485 = vmatprep.subr.bf16.mxu0 %v24259_v25  ;;  %17770 = vmatprep.mubr.f32.mxu1 %v7691_v7  ;;  %v26293_v7 = vld [vmem:[#allocation46_spill] sm:$0xff] }
 0x522   : > { %18634 = vmatprep.mubr.f32.mxu0 %v11332_v8  ;;  %17771 = vmatmul.mubr.f32.gmra.mrb[52].mxu1 %v7701_v37  ;;  %v26289_v37 = vld [vmem:[#allocation35_spill] sm:$0xff]  ;;  %v26295_v8 = vld [vmem:[#allocation49_spill] sm:$0xff] }
 0x523   : > { %19911 = vmatpush3.bf16.msra.mxu1 %v24259_v25  ;;  %18635 = vmatmul.mubr.f32.gmra.mrb[36].mxu0 %v11342_v4  ;;  %v26298_v4 = vld [vmem:[#allocation10_spill] sm:$0xff]  ;;  %v26309_v9 = vand.u32 4294901760, %v26295_v8 }
 0x524   : > { %20487 = vmatpush3.bf16.msra.mxu0 %v24259_v25  ;;  %19913 = vmatprep.subr.bf16.mxu1 %v24277_v5 }
 0x525   : > { %20489 = vmatprep.subr.bf16.mxu0 %v24277_v5  ;;  %17773 = vmatprep.mubr.f32.mxu1 %v7711_v31  ;;  %v26300_v31 = vld [vmem:[#allocation27_spill] sm:$0xff] }
 0x526   : > { %18637 = vmatprep.mubr.f32.mxu0 %v11352_v49  ;;  %17774 = vmatmul.mubr.f32.gmra.mrb[54].mxu1 %v7721_v20  ;;  %v26301_v49 = vld [vmem:[#allocation58_spill] sm:$0xff]  ;;  %v26302_v20 = vand.u32 4294901760, %v24091_v32 }
 0x527   : > { %19915 = vmatpush3.bf16.msra.mxu1 %v24277_v5  ;;  %18638 = vmatmul.mubr.f32.gmra.mrb[38].mxu0 %v11362_v13  ;;  %v26303_v13 = vand.u32 4294901760, %v24094_v1 }
 0x528   : > { %20491 = vmatpush3.bf16.msra.mxu0 %v24277_v5  ;;  %19917 = vmatprep.subr.bf16.mxu1 %v24283_v14 }
 0x529   : > { %20493 = vmatprep.subr.bf16.mxu0 %v24283_v14  ;;  %17808 = vmatprep.mubr.f32.mxu1 %v24086_v10 }
 0x52a   : > { %18672 = vmatprep.mubr.f32.mxu0 %v24088_v16 }
 0x52b   : > { %19919 = vmatpush3.bf16.msra.mxu1 %v24283_v14 }
 0x52c   : > { %20495 = vmatpush3.bf16.msra.mxu0 %v24283_v14  ;;  %19921 = vmatprep.subr.bf16.mxu1 %v24306_v48 }
 0x52d   : > { %20497 = vmatprep.subr.bf16.mxu0 %v24306_v48 }
 0x52f   : > { %19923 = vmatpush3.bf16.msra.mxu1 %v24306_v48 }
 0x530   : > { %20499 = vmatpush3.bf16.msra.mxu0 %v24306_v48  ;;  %19925 = vmatprep.subr.bf16.mxu1 %v24327_v46 }
 0x531   : > { %20501 = vmatprep.subr.bf16.mxu0 %v24327_v46 }
 0x533   : > { %19927 = vmatpush3.bf16.msra.mxu1 %v24327_v46 }
 0x534   : > { %20503 = vmatpush3.bf16.msra.mxu0 %v24327_v46  ;;  %19929 = vmatprep.subr.bf16.mxu1 %v24363_v63 }
 0x535   : > { %20505 = vmatprep.subr.bf16.mxu0 %v24363_v63 }
 0x537   : > { %19931 = vmatpush3.bf16.msra.mxu1 %v24363_v63 }
 0x538   : > { %20507 = vmatpush3.bf16.msra.mxu0 %v24363_v63  ;;  %19933 = vmatprep.subr.bf16.mxu1 %v24211_v17 }
 0x539   : > { %20509 = vmatprep.subr.bf16.mxu0 %v24211_v17 }
 0x53a   : > { %17809 = vmatmul.mubr.f32.vlgmr.msra.gmra.mrb[48].mxu1 %v24104_v35 }
 0x53b   : > { %19935 = vmatpush3.bf16.msra.mxu1 %v24211_v17  ;;  %18673 = vmatmul.mubr.f32.vlgmr.msra.gmra.mrb[32].mxu0 %v24106_v51 }
 0x53c   : > { %20511 = vmatpush3.bf16.msra.mxu0 %v24211_v17  ;;  %19937 = vmatprep.subr.bf16.mxu1 %v24225_v22 }
 0x53d   : > { %20513 = vmatprep.subr.bf16.mxu0 %v24225_v22  ;;  %17811 = vmatprep.mubr.f32.mxu1 %v24111_v52 }
 0x53e   : > { %18675 = vmatprep.mubr.f32.mxu0 %v24116_v59  ;;  %17812 = vmatmul.mubr.f32.gmra.mrb[50].mxu1 %v24118_v43 }
 0x53f   : > { %19939 = vmatpush3.bf16.msra.mxu1 %v24225_v22  ;;  %18676 = vmatmul.mubr.f32.gmra.mrb[34].mxu0 %v24120_v61 }
 0x540   : > { %20515 = vmatpush3.bf16.msra.mxu0 %v24225_v22  ;;  %19941 = vmatprep.subr.bf16.mxu1 %v24240_v55 }
 0x541   : > { %20517 = vmatprep.subr.bf16.mxu0 %v24240_v55  ;;  %17814 = vmatprep.mubr.f32.mxu1 %v24144_v19 }
 0x542   : > { %18678 = vmatprep.mubr.f32.mxu0 %v24152_v36  ;;  %17815 = vmatmul.mubr.f32.gmra.mrb[52].mxu1 %v24158_v53 }
 0x543   : > { %19943 = vmatpush3.bf16.msra.mxu1 %v24240_v55  ;;  %18679 = vmatmul.mubr.f32.gmra.mrb[36].mxu0 %v24160_v15 }
 0x544   : > { %20519 = vmatpush3.bf16.msra.mxu0 %v24240_v55  ;;  %19945 = vmatprep.subr.bf16.mxu1 %v24255_v58 }
 0x545   : > { %20521 = vmatprep.subr.bf16.mxu0 %v24255_v58  ;;  %17817 = vmatprep.mubr.f32.mxu1 %v24209_v33 }
 0x546   : > { %18681 = vmatprep.mubr.f32.mxu0 %v24219_v0  ;;  %17818 = vmatmul.mubr.f32.gmra.mrb[54].mxu1 %v24299_v40 }
 0x547   : > { %19947 = vmatpush3.bf16.msra.mxu1 %v24255_v58  ;;  %18682 = vmatmul.mubr.f32.gmra.mrb[38].mxu0 %v24301_v29 }
 0x548   : > { %20523 = vmatpush3.bf16.msra.mxu0 %v24255_v58  ;;  %19949 = vmatprep.subr.bf16.mxu1 %v24267_v24 }
 0x549   : > { %20525 = vmatprep.subr.bf16.mxu0 %v24267_v24  ;;  %17852 = vmatprep.mubr.f32.mxu1 %v24091_v32  ;;  %v26305_v32 = vld [vmem:[#allocation16_spill] sm:$0xff] }
 0x54a   : > { %18716 = vmatprep.mubr.f32.mxu0 %v24094_v1  ;;  %v26306_v1 = vand.u32 4294901760, %v26292_v26 }
 0x54b   : > { %19951 = vmatpush3.bf16.msra.mxu1 %v24267_v24 }
 0x54c   : > { %20527 = vmatpush3.bf16.msra.mxu0 %v24267_v24  ;;  %19953 = vmatprep.subr.bf16.mxu1 %v26289_v37 }
 0x54d   : > { %20529 = vmatprep.subr.bf16.mxu0 %v26289_v37 }
 0x54f   : > { %19955 = vmatpush3.bf16.msra.mxu1 %v26289_v37 }
 0x550   : > { %20531 = vmatpush3.bf16.msra.mxu0 %v26289_v37  ;;  %19957 = vmatprep.subr.bf16.mxu1 %v26290_v21 }
 0x551   : > { %20533 = vmatprep.subr.bf16.mxu0 %v26290_v21 }
 0x553   : > { %19959 = vmatpush3.bf16.msra.mxu1 %v26290_v21 }
 0x554   : > { %20535 = vmatpush3.bf16.msra.mxu0 %v26290_v21  ;;  %19961 = vmatprep.subr.bf16.mxu1 %v24316_v23 }
 0x555   : > { %20537 = vmatprep.subr.bf16.mxu0 %v24316_v23 }
 0x557   : > { %19963 = vmatpush3.bf16.msra.mxu1 %v24316_v23 }
 0x558   : > { %20539 = vmatpush3.bf16.msra.mxu0 %v24316_v23  ;;  %19965 = vmatprep.subr.bf16.mxu1 %v26291_v6 }
 0x559   : > { %20541 = vmatprep.subr.bf16.mxu0 %v26291_v6 }
 0x55a   : > { %17853 = vmatmul.mubr.f32.vlgmr.msra.gmra.mrb[48].mxu1 %v26292_v26  ;;  %v26311_v26 = vand.u32 4294901760, %v26297_v42 }
 0x55b   : > { %19967 = vmatpush3.bf16.msra.mxu1 %v26291_v6  ;;  %18717 = vmatmul.mubr.f32.vlgmr.msra.gmra.mrb[32].mxu0 %v26293_v7 }
 0x55c   : > { %20543 = vmatpush3.bf16.msra.mxu0 %v26291_v6  ;;  %19969 = vmatprep.subr.bf16.mxu1 %v26294_v47 }
 0x55d   : > { %20545 = vmatprep.subr.bf16.mxu0 %v26294_v47  ;;  %17855 = vmatprep.mubr.f32.mxu1 %v26295_v8  ;;  %v26314_v8 = vand.u32 4294901760, %v24169_v12 }
 0x55e   : > { %18719 = vmatprep.mubr.f32.mxu0 %v26296_v3  ;;  %17856 = vmatmul.mubr.f32.gmra.mrb[50].mxu1 %v26297_v42  ;;  %v26317_v3 = vld [vmem:[#allocation30_spill] sm:$0xff] }
 0x55f   : > { %19971 = vmatpush3.bf16.msra.mxu1 %v26294_v47  ;;  %18720 = vmatmul.mubr.f32.gmra.mrb[34].mxu0 %v26298_v4 }
 0x560   : > { %20547 = vmatpush3.bf16.msra.mxu0 %v26294_v47  ;;  %19973 = vmatprep.subr.bf16.mxu1 %v26299_v41 }
 0x561   : > { %20549 = vmatprep.subr.bf16.mxu0 %v26299_v41  ;;  %17858 = vmatprep.mubr.f32.mxu1 %v24169_v12  ;;  %v26318_v12 = vand.u32 4294901760, %v24322_v27 }
 0x562   : > { %18722 = vmatprep.mubr.f32.mxu0 %v24178_v2  ;;  %17859 = vmatmul.mubr.f32.gmra.mrb[52].mxu1 %v24193_v34  ;;  %v26320_v34 = vand.u32 4294901760, %v24332_v50 }
 0x563   : > { %19975 = vmatpush3.bf16.msra.mxu1 %v26299_v41  ;;  %18723 = vmatmul.mubr.f32.gmra.mrb[36].mxu0 %v24196_v39 }
 0x564   : > { %20551 = vmatpush3.bf16.msra.mxu0 %v26299_v41  ;;  %19977 = vmatprep.subr.bf16.mxu1 %v26300_v31 }
 0x565   : > { %20553 = vmatprep.subr.bf16.mxu0 %v26300_v31  ;;  %17861 = vmatprep.mubr.f32.mxu1 %v24314_v44 }
 0x566   : > { %18725 = vmatprep.mubr.f32.mxu0 %v24322_v27  ;;  %17862 = vmatmul.mubr.f32.gmra.mrb[54].mxu1 %v24325_v60 }
 0x567   : > { %19979 = vmatpush3.bf16.msra.mxu1 %v26300_v31  ;;  %18726 = vmatmul.mubr.f32.gmra.mrb[38].mxu0 %v24332_v50 }
 0x568   : > { %20555 = vmatpush3.bf16.msra.mxu0 %v26300_v31  ;;  %19981 = vmatprep.subr.bf16.mxu1 %v26301_v49 }
 0x569   : > { %20557 = vmatprep.subr.bf16.mxu0 %v26301_v49  ;;  %17896 = vmatprep.mubr.f32.mxu1 %v26302_v20  ;;  %v26307_v20 = vand.u32 4294901760, %v26293_v7  ;;  %v26312_v7 = vand.u32 4294901760, %v26298_v4 }
 0x56a   : > { %18760 = vmatprep.mubr.f32.mxu0 %v26303_v13  ;;  %v26308_v13 = vld [vmem:[#allocation20_spill] sm:$0xff] }
 0x56b   : > { %19983 = vmatpush3.bf16.msra.mxu1 %v26301_v49 }
 0x56c   : > { %20559 = vmatpush3.bf16.msra.mxu0 %v26301_v49  ;;  %19985 = vmatprep.subr.bf16.mxu1 %v26304_v45 }
 0x56d   : > { %20561 = vmatprep.subr.bf16.mxu0 %v26304_v45 }
 0x56f   : > { %19987 = vmatpush3.bf16.msra.mxu1 %v26304_v45 }
 0x570   : > { %20563 = vmatpush3.bf16.msra.mxu0 %v26304_v45  ;;  %19989 = vmatprep.subr.bf16.mxu1 %v24289_v62 }
 0x571   : > { %20565 = vmatprep.subr.bf16.mxu0 %v24289_v62 }
 0x573   : > { %19991 = vmatpush3.bf16.msra.mxu1 %v24289_v62 }
 0x574   : > { %20567 = vmatpush3.bf16.msra.mxu0 %v24289_v62  ;;  %19993 = vmatprep.subr.bf16.mxu1 %v24308_v30 }
 0x575   : > { %20569 = vmatprep.subr.bf16.mxu0 %v24308_v30 }
 0x577   : > { %19995 = vmatpush3.bf16.msra.mxu1 %v24308_v30 }
 0x578   : > { %20571 = vmatpush3.bf16.msra.mxu0 %v24308_v30  ;;  %19997 = vmatprep.subr.bf16.mxu1 %v26305_v32 }
 0x579   : > { %20573 = vmatprep.subr.bf16.mxu0 %v26305_v32 }
 0x57a   : > { %17897 = vmatmul.mubr.f32.vlgmr.msra.gmra.mrb[48].mxu1 %v26306_v1  ;;  %v26313_v1 = vld [vmem:[#allocation25_spill] sm:$0xff] }
 0x57b   : > { %19999 = vmatpush3.bf16.msra.mxu1 %v26305_v32  ;;  %18761 = vmatmul.mubr.f32.vlgmr.msra.gmra.mrb[32].mxu0 %v26307_v20 }
 0x57c   : > { %20575 = vmatpush3.bf16.msra.mxu0 %v26305_v32  ;;  %20001 = vmatprep.subr.bf16.mxu1 %v26308_v13 }
 0x57d   : > { %20577 = vmatprep.subr.bf16.mxu0 %v26308_v13  ;;  %17899 = vmatprep.mubr.f32.mxu1 %v26309_v9  ;;  %v26315_v9 = vand.u32 4294901760, %v24178_v2  ;;  %v26319_v2 = vand.u32 4294901760, %v24325_v60  ;;  %v8522_v60 = vld [vmem:[#allocation2 + $0x1f0] sm:$0xff] }
 0x57e   : > { %18763 = vmatprep.mubr.f32.mxu0 %v26310_v54  ;;  %17900 = vmatmul.mubr.f32.gmra.mrb[50].mxu1 %v26311_v26  ;;  %v26316_v54 = vand.u32 4294901760, %v24196_v39  ;;  %v26321_v39 = vld [vmem:[#allocation32_spill] sm:$0xff]  ;;  %v24677_v20 = vand.u32 4294901760, %v8522_v60  ;;  %v8523_v26 = vld [vmem:[#allocation2 + $0x1f8] sm:$0xff] }
 0x57f   : > { %20003 = vmatpush3.bf16.msra.mxu1 %v26308_v13  ;;  %18764 = vmatmul.mubr.f32.gmra.mrb[34].mxu0 %v26312_v7 }
 0x580   : > { %20579 = vmatpush3.bf16.msra.mxu0 %v26308_v13  ;;  %20005 = vmatprep.subr.bf16.mxu1 %v26313_v1 }
 0x581   : > { %20581 = vmatprep.subr.bf16.mxu0 %v26313_v1  ;;  %17902 = vmatprep.mubr.f32.mxu1 %v26314_v8 }
 0x582   : > { %18766 = vmatprep.mubr.f32.mxu0 %v26315_v9  ;;  %17903 = vmatmul.mubr.f32.gmra.mrb[52].mxu1 %v7699_v18  ;;  %v26322_v18 = vld [vmem:[#allocation36_spill] sm:$0xff] }
 0x583   : > { %20007 = vmatpush3.bf16.msra.mxu1 %v26313_v1  ;;  %18767 = vmatmul.mubr.f32.gmra.mrb[36].mxu0 %v26316_v54  ;;  %v24687_v54 = vand.u32 4294901760, %v8523_v26 }
 0x584   : > { %20583 = vmatpush3.bf16.msra.mxu0 %v26313_v1  ;;  %20009 = vmatprep.subr.bf16.mxu1 %v26317_v3 }
 0x585   : > { %20585 = vmatprep.subr.bf16.mxu0 %v26317_v3  ;;  %17905 = vmatprep.mubr.f32.mxu1 %v7709_v38 }
 0x586   : > { %18769 = vmatprep.mubr.f32.mxu0 %v26318_v12  ;;  %17906 = vmatmul.mubr.f32.gmra.mrb[54].mxu1 %v26319_v2 }
 0x587   : > { %20011 = vmatpush3.bf16.msra.mxu1 %v26317_v3  ;;  %18770 = vmatmul.mubr.f32.gmra.mrb[38].mxu0 %v26320_v34  ;;  %v24695_v34 = vsub.f32 %v8522_v60, %v24677_v20 }
 0x588   : > { %20587 = vmatpush3.bf16.msra.mxu0 %v26317_v3  ;;  %20013 = vmatprep.subr.bf16.mxu1 %v26321_v39 }
 0x589   : > { %20589 = vmatprep.subr.bf16.mxu0 %v26321_v39  ;;  %17940 = vmatprep.mubr.f32.mxu1 %v24086_v10 }
 0x58a   : > { %18804 = vmatprep.mubr.f32.mxu0 %v24088_v16 }
 0x58b   : > { %20015 = vmatpush3.bf16.msra.mxu1 %v26321_v39 }
 0x58c   : > { %20591 = vmatpush3.bf16.msra.mxu0 %v26321_v39  ;;  %20017 = vmatprep.subr.bf16.mxu1 %v26322_v18 }
 0x58d   : > { %20593 = vmatprep.subr.bf16.mxu0 %v26322_v18 }
 0x58f   : > { %20019 = vmatpush3.bf16.msra.mxu1 %v26322_v18 }
 0x590   : > { %20595 = vmatpush3.bf16.msra.mxu0 %v26322_v18  ;;  %20021 = vmatprep.subr.bf16.mxu1 %v24303_v57 }
 0x591   : > { %20597 = vmatprep.subr.bf16.mxu0 %v24303_v57 }
 0x593   : > { %20023 = vmatpush3.bf16.msra.mxu1 %v24303_v57 }
 0x594   : > { %20599 = vmatpush3.bf16.msra.mxu0 %v24303_v57  ;;  %20025 = vmatprep.subr.bf16.mxu1 %v24334_v28 }
 0x595   : > { %20601 = vmatprep.subr.bf16.mxu0 %v24334_v28 }
 0x597   : > { %20027 = vmatpush3.bf16.msra.mxu1 %v24334_v28 }
 0x598   : > { %20603 = vmatpush3.bf16.msra.mxu0 %v24334_v28  ;;  %20029 = vmatprep.subr.bf16.mxu1 %v26291_v6 }
 0x599   : > { %20605 = vmatprep.subr.bf16.mxu0 %v26291_v6 }
 0x59a   : > { %17941 = vmatmul.mubr.f32.vlgmr.msra.gmra.mrb[48].mxu1 %v24104_v35 }
 0x59b   : > { %20031 = vmatpush3.bf16.msra.mxu1 %v26291_v6  ;;  %18805 = vmatmul.mubr.f32.vlgmr.msra.gmra.mrb[32].mxu0 %v24106_v51 }
 0x59c   : > { %20607 = vmatpush3.bf16.msra.mxu0 %v26291_v6  ;;  %20033 = vmatprep.subr.bf16.mxu1 %v26294_v47 }
 0x59d   : > { %20609 = vmatprep.subr.bf16.mxu0 %v26294_v47  ;;  %17943 = vmatprep.mubr.f32.mxu1 %v24111_v52 }
 0x59e   : > { %17944 = vmatmul.mubr.f32.gmra.mrb[50].mxu1 %v24118_v43  ;;  %18807 = vmatprep.mubr.f32.mxu0 %v24116_v59 }
 0x59f   : > { %20035 = vmatpush3.bf16.msra.mxu1 %v26294_v47  ;;  %17946 = vmatprep.mubr.f32.mxu1 %v24144_v19 }
 0x5a0   : > { %20611 = vmatpush3.bf16.msra.mxu0 %v26294_v47  ;;  %20037 = vmatprep.subr.bf16.mxu1 %v26299_v41 }
 0x5a1   : > { %20613 = vmatprep.subr.bf16.mxu0 %v26299_v41  ;;  %18808 = vmatmul.mubr.f32.gmra.mrb[34].mxu0 %v24120_v61 }
 0x5a2   : > { %17947 = vmatmul.mubr.f32.gmra.mrb[52].mxu1 %v24158_v53  ;;  %18810 = vmatprep.mubr.f32.mxu0 %v24152_v36 }
 0x5a3   : > { %20039 = vmatpush3.bf16.msra.mxu1 %v26299_v41  ;;  %17949 = vmatprep.mubr.f32.mxu1 %v24209_v33 }
 0x5a4   : > { %20615 = vmatpush3.bf16.msra.mxu0 %v26299_v41  ;;  %20041 = vmatprep.subr.bf16.mxu1 %v26300_v31 }
 0x5a5   : > { %20617 = vmatprep.subr.bf16.mxu0 %v26300_v31  ;;  %18811 = vmatmul.mubr.f32.gmra.mrb[36].mxu0 %v24160_v15 }
 0x5a6   : > { %17950 = vmatmul.mubr.f32.gmra.mrb[54].mxu1 %v24299_v40  ;;  %18813 = vmatprep.mubr.f32.mxu0 %v24219_v0 }
 0x5a7   : > { %20043 = vmatpush3.bf16.msra.mxu1 %v26300_v31  ;;  %17984 = vmatprep.mubr.f32.mxu1 %v24086_v10  ;;  %v8516_v10 = vld [vmem:[#allocation2 + $0x1c0] sm:$0xff] }
 0x5a8   : > { %20619 = vmatpush3.bf16.msra.mxu0 %v26300_v31  ;;  %20045 = vmatprep.subr.bf16.mxu1 %v26301_v49 }
 0x5a9   : > { %20621 = vmatprep.subr.bf16.mxu0 %v26301_v49  ;;  %18814 = vmatmul.mubr.f32.gmra.mrb[38].mxu0 %v24301_v29 }
 0x5aa   : > { %18848 = vmatprep.mubr.f32.mxu0 %v24088_v16  ;;  %v24613_v16 = vand.u32 4294901760, %v8516_v10 }
 0x5ab   : > { %20047 = vmatpush3.bf16.msra.mxu1 %v26301_v49 }
 0x5ac   : > { %20623 = vmatpush3.bf16.msra.mxu0 %v26301_v49  ;;  %20049 = vmatprep.subr.bf16.mxu1 %v26304_v45  ;;  %v24620_v44 = vsub.f32 %v8516_v10, %v24613_v16 }
 0x5ad   : > { %20625 = vmatprep.subr.bf16.mxu0 %v26304_v45 }
 0x5ae   : > { %v8607_v27 = vand.u32 4294901760, %v24620_v44 }
 0x5af   : > { %20051 = vmatpush3.bf16.msra.mxu1 %v26304_v45 }
 0x5b0   : > { %20627 = vmatpush3.bf16.msra.mxu0 %v26304_v45  ;;  %20053 = vmatprep.subr.bf16.mxu1 %v24289_v62 }
 0x5b1   : > { %20629 = vmatprep.subr.bf16.mxu0 %v24289_v62 }
 0x5b3   : > { %20055 = vmatpush3.bf16.msra.mxu1 %v24289_v62 }
 0x5b4   : > { %20631 = vmatpush3.bf16.msra.mxu0 %v24289_v62  ;;  %20057 = vmatprep.subr.bf16.mxu1 %v24308_v30 }
 0x5b5   : > { %20633 = vmatprep.subr.bf16.mxu0 %v24308_v30 }
 0x5b7   : > { %20059 = vmatpush3.bf16.msra.mxu1 %v24308_v30 }
 0x5b8   : > { %20635 = vmatpush3.bf16.msra.mxu0 %v24308_v30  ;;  %20061 = vmatprep.subr.bf16.mxu1 %v26291_v6 }
 0x5ba   : > { %17985 = vmatmul.mubr.f32.vlgmr.msra.gmra.mrb[48].mxu1 %v24104_v35  ;;  %v8608_v35 = vsub.f32 %v24620_v44, %v8607_v27 }
 0x5bb   : > { %20063 = vmatpush3.bf16.msra.mxu1 %v26291_v6  ;;  %17987 = vmatprep.mubr.f32.mxu1 %v24111_v52  ;;  %v8517_v52 = vld [vmem:[#allocation2 + $0x1c8] sm:$0xff] }
 0x5bc   : > { %20065 = vmatprep.subr.bf16.mxu1 %v26294_v47  ;;  %18849 = vmatmul.mubr.f32.vlgmr.msra.gmra.mrb[32].mxu0 %v24106_v51  ;;  %v8609_v51 = vand.u32 4294901760, %v8608_v35 }
 0x5bd   : > { %18851 = vmatprep.mubr.f32.mxu0 %v24116_v59  ;;  %v8518_v59 = vld [vmem:[#allocation2 + $0x1d0] sm:$0xff] }
 0x5be   : > { %17988 = vmatmul.mubr.f32.gmra.mrb[50].mxu1 %v24118_v43  ;;  %v24647_v43 = vand.u32 4294901760, %v8517_v52 }
 0x5bf   : > { %20067 = vmatpush3.bf16.msra.mxu1 %v26294_v47  ;;  %17990 = vmatprep.mubr.f32.mxu1 %v24144_v19  ;;  %v8519_v19 = vld [vmem:[#allocation2 + $0x1d8] sm:$0xff] }
 0x5c0   : > { %20069 = vmatprep.subr.bf16.mxu1 %v26299_v41  ;;  %18852 = vmatmul.mubr.f32.gmra.mrb[34].mxu0 %v24120_v61  ;;  %v24650_v61 = vand.u32 4294901760, %v8518_v59 }
 0x5c1   : > { %18854 = vmatprep.mubr.f32.mxu0 %v24152_v36  ;;  %v8520_v36 = vld [vmem:[#allocation2 + $0x1e0] sm:$0xff] }
 0x5c2   : > { %17991 = vmatmul.mubr.f32.gmra.mrb[52].mxu1 %v24158_v53  ;;  %v24655_v53 = vsub.f32 %v8517_v52, %v24647_v43  ;;  %v24703_v52 = vsub.f32 %v8523_v26, %v24687_v54 }
 0x5c3   : > { %20071 = vmatpush3.bf16.msra.mxu1 %v26299_v41  ;;  %17993 = vmatprep.mubr.f32.mxu1 %v24209_v33  ;;  %v24661_v33 = vsub.f32 %v8518_v59, %v24650_v61 }
 0x5c4   : > { %20073 = vmatprep.subr.bf16.mxu1 %v26300_v31  ;;  %18855 = vmatmul.mubr.f32.gmra.mrb[36].mxu0 %v24160_v15  ;;  %v24657_v15 = vand.u32 4294901760, %v8519_v19  ;;  %v8617_v50 = vand.u32 4294901760, %v24655_v53  ;;  %v8677_v26 = vand.u32 4294901760, %v24703_v52 }
 0x5c5   : > { %18857 = vmatprep.mubr.f32.mxu0 %v24219_v0  ;;  %v24663_v0 = vand.u32 4294901760, %v8520_v36  ;;  %v8627_v42 = vand.u32 4294901760, %v24661_v33 }
 0x5c6   : > { %17994 = vmatmul.mubr.f32.gmra.mrb[54].mxu1 %v24299_v40  ;;  %v8521_v40 = vld [vmem:[#allocation2 + $0x1e8] sm:$0xff]  ;;  %v8618_v7 = vsub.f32 %v24655_v53, %v8617_v50 }
 0x5c7   : > { %20075 = vmatpush3.bf16.msra.mxu1 %v26300_v31  ;;  %18028 = vmatprep.mubr.f32.mxu1 %v8609_v51  ;;  %v24670_v38 = vand.u32 4294901760, %v8521_v40  ;;  %v24675_v4 = vsub.f32 %v8520_v36, %v24663_v0  ;;  %v8628_v12 = vsub.f32 %v24661_v33, %v8627_v42  ;;  %v8667_v36 = vand.u32 4294901760, %v24695_v34 }
 0x5c8   : > { %20077 = vmatprep.subr.bf16.mxu1 %v26301_v49  ;;  %18858 = vmatmul.mubr.f32.gmra.mrb[38].mxu0 %v24301_v29  ;;  %v24668_v29 = vsub.f32 %v8519_v19, %v24657_v15  ;;  %v8619_v10 = vand.u32 4294901760, %v8618_v7 }
 0x5c9   : > { %v24685_v9 = vsub.f32 %v8521_v40, %v24670_v38  ;;  %v25991_v2 = vand.u32 4294901760, %v24675_v4  ;;  %v8629_v59 = vand.u32 4294901760, %v8628_v12  ;;  %v8668_v12 = vsub.f32 %v24695_v34, %v8667_v36 }
 0x5ca   : > { %v8637_v8 = vand.u32 4294901760, %v24668_v29 }
 0x5cb   : > { %20079 = vmatpush3.bf16.msra.mxu1 %v26301_v49  ;;  %v8657_v51 = vand.u32 4294901760, %v24685_v9  ;;  %v8648_v19 = vsub.f32 %v24675_v4, %v25991_v2 }
 0x5cc   : > { %20081 = vmatprep.subr.bf16.mxu1 %v26304_v45  ;;  %v8638_v35 = vsub.f32 %v24668_v29, %v8637_v8 }
 0x5cd   : > { %v8658_v60 = vsub.f32 %v24685_v9, %v8657_v51  ;;  %v8649_v7 = vand.u32 4294901760, %v8648_v19 }
 0x5ce   : > { %v8639_v40 = vand.u32 4294901760, %v8638_v35  ;;  %v8669_v35 = vand.u32 4294901760, %v8668_v12 }
 0x5cf   : > { %20083 = vmatpush3.bf16.msra.mxu1 %v26304_v45  ;;  %v8659_v2 = vand.u32 4294901760, %v8658_v60 }
 0x5d0   : > { %20085 = vmatprep.subr.bf16.mxu1 %v24289_v62 }
 0x5d3   : > { %20087 = vmatpush3.bf16.msra.mxu1 %v24289_v62 }
 0x5d4   : > { %20089 = vmatprep.subr.bf16.mxu1 %v24308_v30 }
 0x5d7   : > { %20091 = vmatpush3.bf16.msra.mxu1 %v24308_v30 }
 0x5d8   : > { %20093 = vmatprep.subr.bf16.mxu1 %v24233_v56 }
 0x5da   : > { %18029 = vmatmul.mubr.f32.vlgmr.msra.gmra.mrb[56].mxu1 %v8619_v10  ;;  %v8678_v10 = vsub.f32 %v24703_v52, %v8677_v26 }
 0x5db   : > { %20095 = vmatpush3.bf16.msra.mxu1 %v24233_v56  ;;  %18031 = vmatprep.mubr.f32.mxu1 %v8629_v59 }
 0x5dc   : > { %20097 = vmatprep.subr.bf16.mxu1 %v24245_v11  ;;  %v8679_v56 = vand.u32 4294901760, %v8678_v10 }
 0x5de   : > { %18032 = vmatmul.mubr.f32.gmra.mrb[58].mxu1 %v8639_v40 }
 0x5df   : > { %20099 = vmatpush3.bf16.msra.mxu1 %v24245_v11  ;;  %18034 = vmatprep.mubr.f32.mxu1 %v8649_v7 }
 0x5e0   : > { %20101 = vmatprep.subr.bf16.mxu1 %v24259_v25 }
 0x5e2   : > { %18035 = vmatmul.mubr.f32.gmra.mrb[60].mxu1 %v8659_v2 }
 0x5e3   : > { %20103 = vmatpush3.bf16.msra.mxu1 %v24259_v25  ;;  %18037 = vmatprep.mubr.f32.mxu1 %v8669_v35 }
 0x5e4   : > { %20105 = vmatprep.subr.bf16.mxu1 %v24277_v5 }
 0x5e6   : > { %18038 = vmatmul.mubr.f32.gmra.mrb[62].mxu1 %v8679_v56 }
 0x5e7   : > { %20107 = vmatpush3.bf16.msra.mxu1 %v24277_v5  ;;  %18072 = vmatprep.mubr.f32.mxu1 %v24613_v16 }
 0x5e8   : > { %20109 = vmatprep.subr.bf16.mxu1 %v24283_v14 }
 0x5eb   : > { %20111 = vmatpush3.bf16.msra.mxu1 %v24283_v14 }
 0x5ec   : > { %20113 = vmatprep.subr.bf16.mxu1 %v24306_v48 }
 0x5ef   : > { %20115 = vmatpush3.bf16.msra.mxu1 %v24306_v48 }
 0x5f0   : > { %20117 = vmatprep.subr.bf16.mxu1 %v24327_v46 }
 0x5f3   : > { %20119 = vmatpush3.bf16.msra.mxu1 %v24327_v46  ;;  %v9468_v46 = vld [vmem:[#allocation2 + $0x2a8] sm:$0xff] }
 0x5f4   : > { %20121 = vmatprep.subr.bf16.mxu1 %v24363_v63 }
 0x5f7   : > { %20123 = vmatpush3.bf16.msra.mxu1 %v24363_v63 }
 0x5f8   : > { %20125 = vmatprep.subr.bf16.mxu1 %v24211_v17 }
 0x5fa   : > { %18073 = vmatmul.mubr.f32.vlgmr.msra.gmra.mrb[56].mxu1 %v24647_v43 }
 0x5fb   : > { %20127 = vmatpush3.bf16.msra.mxu1 %v24211_v17  ;;  %18075 = vmatprep.mubr.f32.mxu1 %v24650_v61  ;;  %v9467_v17 = vld [vmem:[#allocation2 + $0x2a0] sm:$0xff] }
 0x5fc   : > { %20129 = vmatprep.subr.bf16.mxu1 %v24225_v22  ;;  %v9503_v11 = vand.u32 4294901760, %v9467_v17 }
 0x5fe   : > { %18076 = vmatmul.mubr.f32.gmra.mrb[58].mxu1 %v24657_v15 }
 0x5ff   : > { %20131 = vmatpush3.bf16.msra.mxu1 %v24225_v22  ;;  %18078 = vmatprep.mubr.f32.mxu1 %v24663_v0  ;;  %v9466_v22 = vld [vmem:[#allocation2 + $0x298] sm:$0xff] }
 0x600   : > { %20133 = vmatprep.subr.bf16.mxu1 %v24240_v55 }
 0x602   : > { %18079 = vmatmul.mubr.f32.gmra.mrb[60].mxu1 %v24670_v38 }
 0x603   : > { %20135 = vmatpush3.bf16.msra.mxu1 %v24240_v55  ;;  %18081 = vmatprep.mubr.f32.mxu1 %v24677_v20  ;;  %v9500_v55 = vand.u32 4294901760, %v9466_v22 }
 0x604   : > { %20137 = vmatprep.subr.bf16.mxu1 %v24255_v58 }
 0x605   : > { %v24840_v25 = vpack.c.bf16 %v9503_v11, %v9500_v55 }
 0x606   : > { %18082 = vmatmul.mubr.f32.gmra.mrb[62].mxu1 %v24687_v54 }
 0x607   : > { %20139 = vmatpush3.bf16.msra.mxu1 %v24255_v58  ;;  %18116 = vmatprep.mubr.f32.mxu1 %v24620_v44  ;;  %v26323_v58 = vand.u32 4294901760, %v24675_v4 }
 0x608   : > { %20141 = vmatprep.subr.bf16.mxu1 %v24267_v24 }
 0x60b   : > { %20143 = vmatpush3.bf16.msra.mxu1 %v24267_v24 }
 0x60c   : > { %20145 = vmatprep.subr.bf16.mxu1 %v26289_v37 }
 0x60f   : > { %20147 = vmatpush3.bf16.msra.mxu1 %v26289_v37 }
 0x610   : > { %20149 = vmatprep.subr.bf16.mxu1 %v26290_v21 }
 0x613   : > { %20151 = vmatpush3.bf16.msra.mxu1 %v26290_v21  ;;  %v9470_v21 = vld [vmem:[#allocation2 + $0x2b8] sm:$0xff] }
 0x614   : > { %20153 = vmatprep.subr.bf16.mxu1 %v24316_v23 }
 0x617   : > { %20155 = vmatpush3.bf16.msra.mxu1 %v24316_v23 }
 0x618   : > { %20157 = vmatprep.subr.bf16.mxu1 %v26291_v6 }
 0x61a   : > { %18117 = vmatmul.mubr.f32.vlgmr.msra.gmra.mrb[56].mxu1 %v24655_v53 }
 0x61b   : > { %20159 = vmatpush3.bf16.msra.mxu1 %v26291_v6  ;;  %18119 = vmatprep.mubr.f32.mxu1 %v24661_v33 }
 0x61c   : > { %20161 = vmatprep.subr.bf16.mxu1 %v26294_v47 }
 0x61e   : > { %18120 = vmatmul.mubr.f32.gmra.mrb[58].mxu1 %v24668_v29 }
 0x61f   : > { %20163 = vmatpush3.bf16.msra.mxu1 %v26294_v47  ;;  %18122 = vmatprep.mubr.f32.mxu1 %v24675_v4 }
 0x620   : > { %20165 = vmatprep.subr.bf16.mxu1 %v26299_v41 }
 0x622   : > { %18123 = vmatmul.mubr.f32.gmra.mrb[60].mxu1 %v24685_v9 }
 0x623   : > { %20167 = vmatpush3.bf16.msra.mxu1 %v26299_v41  ;;  %18125 = vmatprep.mubr.f32.mxu1 %v24695_v34 }
 0x624   : > { %20169 = vmatprep.subr.bf16.mxu1 %v26300_v31 }
 0x626   : > { %18126 = vmatmul.mubr.f32.gmra.mrb[62].mxu1 %v24703_v52 }
 0x627   : > { %20171 = vmatpush3.bf16.msra.mxu1 %v26300_v31  ;;  %18160 = vmatprep.mubr.f32.mxu1 %v8607_v27 }
 0x628   : > { %20173 = vmatprep.subr.bf16.mxu1 %v26301_v49 }
 0x62b   : > { %20175 = vmatpush3.bf16.msra.mxu1 %v26301_v49 }
 0x62c   : > { %20177 = vmatprep.subr.bf16.mxu1 %v26304_v45 }
 0x62f   : > { %20179 = vmatpush3.bf16.msra.mxu1 %v26304_v45 }
 0x630   : > { %20181 = vmatprep.subr.bf16.mxu1 %v24289_v62 }
 0x633   : > { %20183 = vmatpush3.bf16.msra.mxu1 %v24289_v62 }
 0x634   : > { %20185 = vmatprep.subr.bf16.mxu1 %v24308_v30 }
 0x637   : > { %20187 = vmatpush3.bf16.msra.mxu1 %v24308_v30 }
 0x638   : > { %20189 = vmatprep.subr.bf16.mxu1 %v26305_v32 }
 0x63a   : > { %18161 = vmatmul.mubr.f32.vlgmr.msra.gmra.mrb[56].mxu1 %v8617_v50 }
 0x63b   : > { %20191 = vmatpush3.bf16.msra.mxu1 %v26305_v32  ;;  %18163 = vmatprep.mubr.f32.mxu1 %v8627_v42  ;;  %v9661_v32 = vsub.f32 %v9467_v17, %v9503_v11 }
 0x63c   : > { %20193 = vmatprep.subr.bf16.mxu1 %v26308_v13 }
 0x63e   : > { %18164 = vmatmul.mubr.f32.gmra.mrb[58].mxu1 %v8637_v8 }
 0x63f   : > { %20195 = vmatpush3.bf16.msra.mxu1 %v26308_v13  ;;  %18166 = vmatprep.mubr.f32.mxu1 %v26323_v58  ;;  %v9472_v13 = vld [vmem:[#allocation2 + $0x2c8] sm:$0xff] }
 0x640   : > { %20197 = vmatprep.subr.bf16.mxu1 %v26313_v1 }
 0x642   : > { %18167 = vmatmul.mubr.f32.gmra.mrb[60].mxu1 %v8657_v51 }
 0x643   : > { %20199 = vmatpush3.bf16.msra.mxu1 %v26313_v1  ;;  %18169 = vmatprep.mubr.f32.mxu1 %v8667_v36  ;;  %v9473_v1 = vld [vmem:[#allocation2 + $0x2d0] sm:$0xff] }
 0x644   : > { %20201 = vmatprep.subr.bf16.mxu1 %v26317_v3 }
 0x646   : > { %18170 = vmatmul.mubr.f32.gmra.mrb[62].mxu1 %v8677_v26 }
 0x647   : > { %20203 = vmatpush3.bf16.msra.mxu1 %v26317_v3  ;;  %18204 = vmatprep.mubr.f32.mxu1 %v24613_v16  ;;  %v9518_v3 = vand.u32 4294901760, %v9472_v13 }
 0x648   : > { %20205 = vmatprep.subr.bf16.mxu1 %v26321_v39 }
 0x649   : > { %v9696_v52 = vsub.f32 %v9472_v13, %v9518_v3 }
 0x64b   : > { %20207 = vmatpush3.bf16.msra.mxu1 %v26321_v39  ;;  %v9521_v39 = vand.u32 4294901760, %v9473_v1  ;;  %v9697_v60 = vand.u32 4294901760, %v9696_v52 }
 0x64c   : > { %20209 = vmatprep.subr.bf16.mxu1 %v26322_v18 }
 0x64d   : > { %v24876_v44 = vpack.c.bf16 %v9521_v39, %v9518_v3  ;;  %v9703_v59 = vsub.f32 %v9473_v1, %v9521_v39  ;;  %v9698_v12 = vsub.f32 %v9696_v52, %v9697_v60 }
 0x64f   : > { %20211 = vmatpush3.bf16.msra.mxu1 %v26322_v18  ;;  %v9704_v26 = vand.u32 4294901760, %v9703_v59  ;;  %v9699_v35 = vand.u32 4294901760, %v9698_v12 }
 0x650   : > { %20213 = vmatprep.subr.bf16.mxu1 %v24303_v57 }
 0x651   : > { %v9705_v10 = vsub.f32 %v9703_v59, %v9704_v26  ;;  %v24919_v1 = vpack.c.bf16 %v9704_v26, %v9697_v60 }
 0x653   : > { %20215 = vmatpush3.bf16.msra.mxu1 %v24303_v57  ;;  %v9706_v56 = vand.u32 4294901760, %v9705_v10 }
 0x654   : > { %20217 = vmatprep.subr.bf16.mxu1 %v24334_v28 }
 0x655   : > { %v24887_v58 = vpack.c.bf16 %v9706_v56, %v9699_v35 }
 0x657   : > { %20219 = vmatpush3.bf16.msra.mxu1 %v24334_v28  ;;  %v9469_v28 = vld [vmem:[#allocation2 + $0x2b0] sm:$0xff] }
 0x658   : > { %20221 = vmatprep.subr.bf16.mxu1 %v26291_v6  ;;  %v9509_v63 = vand.u32 4294901760, %v9469_v28 }
 0x65a   : > { %18205 = vmatmul.mubr.f32.vlgmr.msra.gmra.mrb[56].mxu1 %v24647_v43  ;;  %v9675_v53 = vsub.f32 %v9469_v28, %v9509_v63  ;;  %v24899_v28 = vpack.c.bf16 %v9703_v59, %v9696_v52 }
 0x65b   : > { %20223 = vmatpush3.bf16.msra.mxu1 %v26291_v6  ;;  %18207 = vmatprep.mubr.f32.mxu1 %v24650_v61  ;;  %v9471_v6 = vld [vmem:[#allocation2 + $0x2c0] sm:$0xff] }
 0x65c   : > { %20225 = vmatprep.subr.bf16.mxu1 %v26294_v47  ;;  %v9676_v50 = vand.u32 4294901760, %v9675_v53 }
 0x65e   : > { %18208 = vmatmul.mubr.f32.gmra.mrb[58].mxu1 %v24657_v15 }
 0x65f   : > { %20227 = vmatpush3.bf16.msra.mxu1 %v26294_v47  ;;  %18210 = vmatprep.mubr.f32.mxu1 %v24663_v0  ;;  %v9512_v47 = vand.u32 4294901760, %v9470_v21 }
 0x660   : > { %20229 = vmatprep.subr.bf16.mxu1 %v26299_v41 }
 0x661   : > { %v9682_v42 = vsub.f32 %v9470_v21, %v9512_v47 }
 0x662   : > { %18211 = vmatmul.mubr.f32.gmra.mrb[60].mxu1 %v24670_v38 }
 0x663   : > { %20231 = vmatpush3.bf16.msra.mxu1 %v26299_v41  ;;  %18213 = vmatprep.mubr.f32.mxu1 %v24677_v20  ;;  %v9515_v41 = vand.u32 4294901760, %v9471_v6  ;;  %v9683_v9 = vand.u32 4294901760, %v9682_v42 }
 0x664   : > { %20233 = vmatprep.subr.bf16.mxu1 %v26300_v31 }
 0x665   : > { %v9689_v4 = vsub.f32 %v9471_v6, %v9515_v41  ;;  %v9684_v34 = vsub.f32 %v9682_v42, %v9683_v9 }
 0x666   : > { %18214 = vmatmul.mubr.f32.gmra.mrb[62].mxu1 %v24687_v54 }
 0x667   : > { %20235 = vmatpush3.bf16.msra.mxu1 %v26300_v31  ;;  %18248 = vmatprep.mubr.f32.mxu1 %v24613_v16  ;;  %v24872_v31 = vpack.c.bf16 %v9515_v41, %v9512_v47  ;;  %v9662_v16 = vand.u32 4294901760, %v9661_v32  ;;  %v9685_v36 = vand.u32 4294901760, %v9684_v34 }
 0x668   : > { %20237 = vmatprep.subr.bf16.mxu1 %v26301_v49 }
 0x66b   : > { %20239 = vmatpush3.bf16.msra.mxu1 %v26301_v49  ;;  %v9654_v49 = vsub.f32 %v9466_v22, %v9500_v55 }
 0x66c   : > { %20241 = vmatprep.subr.bf16.mxu1 %v26304_v45 }
 0x66d   : > { %v9655_v18 = vand.u32 4294901760, %v9654_v49  ;;  %v24891_v17 = vpack.c.bf16 %v9661_v32, %v9654_v49 }
 0x66f   : > { %20243 = vmatpush3.bf16.msra.mxu1 %v26304_v45  ;;  %v9506_v45 = vand.u32 4294901760, %v9468_v46  ;;  %v9656_v27 = vsub.f32 %v9654_v49, %v9655_v18  ;;  %v24913_v49 = vpack.c.bf16 %v9662_v16, %v9655_v18 }
 0x670   : > { %20245 = vmatprep.subr.bf16.mxu1 %v24289_v62 }
 0x671   : > { %v24868_v37 = vpack.c.bf16 %v9509_v63, %v9506_v45 }
 0x673   : > { %20247 = vmatpush3.bf16.msra.mxu1 %v24289_v62 }
 0x674   : > { %20249 = vmatprep.subr.bf16.mxu1 %v24308_v30 }
 0x677   : > { %20251 = vmatpush3.bf16.msra.mxu1 %v24308_v30 }
 0x678   : > { %20253 = vmatprep.subr.bf16.mxu1 %v24840_v25 }
 0x67a   : > { %18249 = vmatmul.mubr.f32.vlgmr.msra.gmra.mrb[56].mxu1 %v24647_v43  ;;  %v9663_v43 = vsub.f32 %v9661_v32, %v9662_v16 }
 0x67b   : > { %18251 = vmatprep.mubr.f32.mxu1 %v24650_v61  ;;  %20255 = vmatpush3.bf16.msra.mxu1 %v24840_v25  ;;  %v9668_v61 = vsub.f32 %v9468_v46, %v9506_v45  ;;  %v24897_v46 = vpack.c.bf16 %v9689_v4, %v9682_v42 }
 0x67c   : > { %20257 = vmatprep.subr.bf16.mxu1 %v24868_v37  ;;  %v9664_v33 = vand.u32 4294901760, %v9663_v43 }
 0x67d   : > { %v24895_v11 = vpack.c.bf16 %v9675_v53, %v9668_v61 }
 0x67e   : > { %18252 = vmatmul.mubr.f32.gmra.mrb[58].mxu1 %v24657_v15  ;;  %v9657_v15 = vand.u32 4294901760, %v9656_v27 }
 0x67f   : > { %18254 = vmatprep.mubr.f32.mxu1 %v24663_v0  ;;  %20259 = vmatpush3.bf16.msra.mxu1 %v24868_v37  ;;  %v9669_v0 = vand.u32 4294901760, %v9668_v61 }
 0x680   : > { %20261 = vmatprep.subr.bf16.mxu1 %v24872_v31  ;;  %v24880_v29 = vpack.c.bf16 %v9664_v33, %v9657_v15 }
 0x681   : > { %v24915_v32 = vpack.c.bf16 %v9676_v50, %v9669_v0 }
 0x682   : > { %18255 = vmatmul.mubr.f32.gmra.mrb[60].mxu1 %v24670_v38  ;;  %v9670_v38 = vsub.f32 %v9668_v61, %v9669_v0 }
 0x683   : > { %18257 = vmatprep.mubr.f32.mxu1 %v24677_v20  ;;  %20263 = vmatpush3.bf16.msra.mxu1 %v24872_v31  ;;  %v9677_v20 = vsub.f32 %v9675_v53, %v9676_v50 }
 0x684   : > { %20265 = vmatprep.subr.bf16.mxu1 %v24876_v44  ;;  %v9671_v8 = vand.u32 4294901760, %v9670_v38 }
 0x685   : > { %v9678_v2 = vand.u32 4294901760, %v9677_v20 }
 0x686   : > { %18258 = vmatmul.mubr.f32.gmra.mrb[62].mxu1 %v24687_v54  ;;  %v9690_v54 = vand.u32 4294901760, %v9689_v4 }
 0x687   : > { %20267 = vmatpush3.bf16.msra.mxu1 %v24876_v44  ;;  %v24883_v19 = vpack.c.bf16 %v9678_v2, %v9671_v8 }
 0x688   : > { %20269 = vmatprep.subr.bf16.mxu1 %v24880_v29  ;;  %v9691_v51 = vsub.f32 %v9689_v4, %v9690_v54  ;;  %v24917_v13 = vpack.c.bf16 %v9690_v54, %v9683_v9 }
 0x68a   : > { %v9692_v40 = vand.u32 4294901760, %v9691_v51 }
 0x68c   : > { %v24885_v7 = vpack.c.bf16 %v9692_v40, %v9685_v36 }
 0x68d   : > { %v24852_v5 = vpop.f32.mrb[48].mxu1 }
 0x68e   : > { %v24854_v24 = vpop.f32.mrb[49].mxu1 }
 0x68f   : > { %v24889_v22 = vpop.f32.mrb[32].mxu0 }
 0x690   : > { %v24893_v55 = vpop.f32.mrb[33].mxu0 }
 0x691   : > { %v24856_v14 = vpop.f32.mrb[50].mxu1 }
 0x692   : > { %v24858_v62 = vpop.f32.mrb[51].mxu1 }
 0x693   : > { %v24901_v45 = vpop.f32.mrb[34].mxu0 }
 0x694   : > { %v24903_v63 = vpop.f32.mrb[35].mxu0 }
 0x695   : > { %v24860_v57 = vpop.f32.mrb[52].mxu1 }
 0x696   : > { %v24862_v48 = vpop.f32.mrb[53].mxu1 }
 0x697   : > { %v24905_v21 = vpop.f32.mrb[36].mxu0 }
 0x698   : > { %v24907_v6 = vpop.f32.mrb[37].mxu0 }
 0x699   : > { %v24864_v30 = vpop.f32.mrb[54].mxu1 }
 0x69a   : > { %v24866_v23 = vpop.f32.mrb[55].mxu1 }
 0x69b   : > { %v24909_v47 = vpop.f32.mrb[38].mxu0 }
 0x69c   : > { %v24911_v41 = vpop.f32.mrb[39].mxu0 }
 0x74d   : > { %v18250_v3 = vpop.f32.mrb[56].mxu1 }
 0x74e   : > { %v9479_v39 = vsel %vm9474_vm1, %v18250_v3, 0  ;;  %v9420_v27 = vpop.f32.mrb[57].mxu1 }
 0x74f   : > { %v24922_v43 = vand.u32 4294901760, %v9479_v39  ;;  %v9476_v61 = vsel %vm9474_vm1, %v9420_v27, 0 }
 0x750   : > { %v24925_v53 = vand.u32 4294901760, %v9476_v61 }
 0x751   : > { %v24928_v18 = vsub.f32 %v9479_v39, %v24922_v43  ;;  %v18253_v16 = vpop.f32.mrb[58].mxu1 }
 0x752   : > { %v24931_v15 = vsub.f32 %v9476_v61, %v24925_v53  ;;  %v9485_v33 = vsel %vm9474_vm1, %v18253_v16, 0  ;;  %v9432_v0 = vpop.f32.mrb[59].mxu1 }
 0x753   : > { %v9584_v50 = vand.u32 4294901760, %v24928_v18  ;;  %v24935_v38 = vand.u32 4294901760, %v9485_v33  ;;  %v9482_v42 = vsel %vm9474_vm1, %v9432_v0, 0 }
 0x754   : > { %v9574_v4 = vand.u32 4294901760, %v24931_v15  ;;  %v24939_v20 = vand.u32 4294901760, %v9482_v42 }
 0x755   : > { %v9585_v8 = vsub.f32 %v24928_v18, %v9584_v50  ;;  %v24945_v9 = vsub.f32 %v9485_v33, %v24935_v38  ;;  %v18256_v54 = vpop.f32.mrb[60].mxu1 }
 0x756   : > { %v24948_v2 = vsub.f32 %v9482_v42, %v24939_v20  ;;  %v9491_v34 = vsel %vm9474_vm1, %v18256_v54, 0  ;;  %v9444_v51 = vpop.f32.mrb[61].mxu1  ;;  %v9575_v52 = vsub.f32 %v24931_v15, %v9574_v4 }
 0x757   : > { %v9604_v59 = vand.u32 4294901760, %v24945_v9  ;;  %v24955_v36 = vand.u32 4294901760, %v9491_v34  ;;  %v9488_v40 = vsel %vm9474_vm1, %v9444_v51, 0  ;;  %v9586_v10 = vand.u32 4294901760, %v9585_v8 }
 0x758   : > { %v9594_v60 = vand.u32 4294901760, %v24948_v2  ;;  %v24959_v26 = vand.u32 4294901760, %v9488_v40  ;;  %v9576_v12 = vand.u32 4294901760, %v9575_v52 }
 0x759   : > { %v24962_v35 = vsub.f32 %v9491_v34, %v24955_v36  ;;  %v18259_v56 = vpop.f32.mrb[62].mxu1  ;;  %v9605_v3 = vsub.f32 %v24945_v9, %v9604_v59 }
 0x75a   : > { %v24968_v39 = vsub.f32 %v9488_v40, %v24959_v26  ;;  %v9497_v27 = vsel %vm9474_vm1, %v18259_v56, 0  ;;  %v9456_v61 = vpop.f32.mrb[63].mxu1  ;;  %18276 = vmatprep.mubr.f32.mxu1 %v9576_v12  ;;  %v9595_v16 = vsub.f32 %v24948_v2, %v9594_v60 }
 0x75b   : > { %v9624_v33 = vand.u32 4294901760, %v24962_v35  ;;  %v24975_v0 = vand.u32 4294901760, %v9497_v27  ;;  %v9494_v42 = vsel %vm9474_vm1, %v9456_v61, 0  ;;  %18277 = vmatmul.mubr.f32.vlgmr.msra.gmra.mrb[64].mxu1 %v9586_v10  ;;  %v9606_v52 = vand.u32 4294901760, %v9605_v3 }
 0x75c   : > { %v9614_v8 = vand.u32 4294901760, %v24968_v39  ;;  %v24979_v54 = vand.u32 4294901760, %v9494_v42  ;;  %20271 = vmatpush3.bf16.msra.mxu1 %v24880_v29  ;;  %v9596_v34 = vand.u32 4294901760, %v9595_v16 }
 0x75d   : > { %v24983_v51 = vsub.f32 %v9497_v27, %v24975_v0  ;;  %20273 = vmatprep.subr.bf16.mxu1 %v24883_v19  ;;  %v9625_v40 = vsub.f32 %v24962_v35, %v9624_v33 }
 0x75e   : > { %v24990_v12 = vsub.f32 %v9494_v42, %v24979_v54  ;;  %18279 = vmatprep.mubr.f32.mxu1 %v9596_v34  ;;  %v9615_v10 = vsub.f32 %v24968_v39, %v9614_v8 }
 0x75f   : > { %v9644_v29 = vand.u32 4294901760, %v24983_v51  ;;  %18280 = vmatmul.mubr.f32.gmra.mrb[66].mxu1 %v9606_v52  ;;  %v9626_v27 = vand.u32 4294901760, %v9625_v40  ;;  %v10350_v52 = vsel %vm9474_vm1, %v24862_v48, 0 }
 0x760   : > { %v9634_v56 = vand.u32 4294901760, %v24990_v12  ;;  %20275 = vmatpush3.bf16.msra.mxu1 %v24883_v19  ;;  %v9616_v3 = vand.u32 4294901760, %v9615_v10  ;;  %v8508_v19 = vld [vmem:[#allocation2 + $0x258] sm:$0xff] }
 0x761   : > { %20277 = vmatprep.subr.bf16.mxu1 %v24885_v7  ;;  %v9645_v61 = vsub.f32 %v24983_v51, %v9644_v29 }
 0x762   : > { %18282 = vmatprep.mubr.f32.mxu1 %v9616_v3  ;;  %v9635_v16 = vsub.f32 %v24990_v12, %v9634_v56 }
 0x763   : > { %18283 = vmatmul.mubr.f32.gmra.mrb[68].mxu1 %v9626_v27  ;;  %v9646_v34 = vand.u32 4294901760, %v9645_v61 }
 0x764   : > { %20279 = vmatpush3.bf16.msra.mxu1 %v24885_v7  ;;  %v9636_v42 = vand.u32 4294901760, %v9635_v16  ;;  %v8509_v7 = vld [vmem:[#allocation2 + $0x260] sm:$0xff] }
 0x765   : > { %20281 = vmatprep.subr.bf16.mxu1 %v24887_v58 }
 0x766   : > { %18285 = vmatprep.mubr.f32.mxu1 %v9636_v42  ;;  %v25144_v42 = vand.u32 4294901760, %v10350_v52 }
 0x767   : > { %18286 = vmatmul.mubr.f32.gmra.mrb[70].mxu1 %v9646_v34 }
 0x768   : > { %20283 = vmatpush3.bf16.msra.mxu1 %v24887_v58  ;;  %18304 = vmatprep.mubr.f32.mxu1 %v24925_v53  ;;  %v10362_v58 = vand.u32 4294901760, %v8508_v19 }
 0x769   : > { %20285 = vmatprep.subr.bf16.mxu1 %v24891_v17 }
 0x76b   : > { %18305 = vmatmul.mubr.f32.vlgmr.msra.gmra.mrb[64].mxu1 %v24922_v43 }
 0x76c   : > { %18307 = vmatprep.mubr.f32.mxu1 %v24939_v20  ;;  %20287 = vmatpush3.bf16.msra.mxu1 %v24891_v17  ;;  %v10365_v17 = vand.u32 4294901760, %v8509_v7 }
 0x76d   : > { %20289 = vmatprep.subr.bf16.mxu1 %v24895_v11 }
 0x76f   : > { %18308 = vmatmul.mubr.f32.gmra.mrb[66].mxu1 %v24935_v38 }
 0x770   : > { %18310 = vmatprep.mubr.f32.mxu1 %v24959_v26  ;;  %20291 = vmatpush3.bf16.msra.mxu1 %v24895_v11  ;;  %v10341_v11 = vsel %vm9474_vm1, %v24852_v5, 0  ;;  %v25084_v5 = vpack.c.bf16 %v10365_v17, %v10362_v58 }
 0x771   : > { %20293 = vmatprep.subr.bf16.mxu1 %v24897_v46 }
 0x773   : > { %18311 = vmatmul.mubr.f32.gmra.mrb[68].mxu1 %v24955_v36 }
 0x774   : > { %18313 = vmatprep.mubr.f32.mxu1 %v24979_v54  ;;  %20295 = vmatpush3.bf16.msra.mxu1 %v24897_v46  ;;  %v8510_v46 = vld [vmem:[#allocation2 + $0x268] sm:$0xff] }
 0x775   : > { %20297 = vmatprep.subr.bf16.mxu1 %v24899_v28 }
 0x777   : > { %18314 = vmatmul.mubr.f32.gmra.mrb[70].mxu1 %v24975_v0 }
 0x778   : > { %20299 = vmatpush3.bf16.msra.mxu1 %v24899_v28  ;;  %18332 = vmatprep.mubr.f32.mxu1 %v24931_v15  ;;  %v8511_v28 = vld [vmem:[#allocation2 + $0x270] sm:$0xff]  ;;  %v8513_v15 = vld [vmem:[#allocation2 + $0x280] sm:$0xff] }
 0x779   : > { %20301 = vmatprep.subr.bf16.mxu1 %v24840_v25 }
 0x77b   : > { %18333 = vmatmul.mubr.f32.vlgmr.msra.gmra.mrb[64].mxu1 %v24928_v18 }
 0x77c   : > { %18335 = vmatprep.mubr.f32.mxu1 %v24948_v2  ;;  %20303 = vmatpush3.bf16.msra.mxu1 %v24840_v25 }
 0x77d   : > { %20305 = vmatprep.subr.bf16.mxu1 %v24868_v37 }
 0x77f   : > { %18336 = vmatmul.mubr.f32.gmra.mrb[66].mxu1 %v24945_v9  ;;  %v8515_v9 = vld [vmem:[#allocation2 + $0x290] sm:$0xff] }
 0x780   : > { %18338 = vmatprep.mubr.f32.mxu1 %v24968_v39  ;;  %20307 = vmatpush3.bf16.msra.mxu1 %v24868_v37  ;;  %v10377_v39 = vand.u32 4294901760, %v8513_v15 }
 0x781   : > { %20309 = vmatprep.subr.bf16.mxu1 %v24872_v31 }
 0x782   : > { %v25135_v3 = vsub.f32 %v8513_v15, %v10377_v39 }
 0x783   : > { %18339 = vmatmul.mubr.f32.gmra.mrb[68].mxu1 %v24962_v35 }
 0x784   : > { %18341 = vmatprep.mubr.f32.mxu1 %v24990_v12  ;;  %20311 = vmatpush3.bf16.msra.mxu1 %v24872_v31  ;;  %v10383_v12 = vand.u32 4294901760, %v8515_v9 }
 0x785   : > { %20313 = vmatprep.subr.bf16.mxu1 %v24876_v44 }
 0x787   : > { %18342 = vmatmul.mubr.f32.gmra.mrb[70].mxu1 %v24983_v51  ;;  %v10353_v51 = vsel %vm9474_vm1, %v24860_v57, 0 }
 0x788   : > { %20315 = vmatpush3.bf16.msra.mxu1 %v24876_v44  ;;  %18360 = vmatprep.mubr.f32.mxu1 %v9574_v4  ;;  %v8514_v4 = vld [vmem:[#allocation2 + $0x288] sm:$0xff]  ;;  %v25146_v34 = vand.u32 4294901760, %v10353_v51 }
 0x789   : > { %20317 = vmatprep.subr.bf16.mxu1 %v24913_v49  ;;  %v10380_v40 = vand.u32 4294901760, %v8514_v4 }
 0x78b   : > { %18361 = vmatmul.mubr.f32.vlgmr.msra.gmra.mrb[64].mxu1 %v9584_v50  ;;  %v10347_v50 = vsel %vm9474_vm1, %v24856_v14, 0 }
 0x78c   : > { %18363 = vmatprep.mubr.f32.mxu1 %v9594_v60  ;;  %20319 = vmatpush3.bf16.msra.mxu1 %v24913_v49  ;;  %v25077_v49 = vsub.f32 %v8508_v19, %v10362_v58  ;;  %v10359_v19 = vsel %vm9474_vm1, %v24864_v30, 0  ;;  %v25153_v58 = vpack.c.bf16 %v10383_v12, %v10380_v40 }
 0x78d   : > { %20321 = vmatprep.subr.bf16.mxu1 %v24915_v32 }
 0x78e   : > { %v10517_v2 = vand.u32 4294901760, %v25077_v49 }
 0x78f   : > { %18364 = vmatmul.mubr.f32.gmra.mrb[66].mxu1 %v9604_v59 }
 0x790   : > { %18366 = vmatprep.mubr.f32.mxu1 %v9614_v8  ;;  %20323 = vmatpush3.bf16.msra.mxu1 %v24915_v32  ;;  %v25081_v32 = vand.u32 4294901760, %v10341_v11  ;;  %v10518_v10 = vsub.f32 %v25077_v49, %v10517_v2 }
 0x791   : > { %20325 = vmatprep.subr.bf16.mxu1 %v24917_v13 }
 0x792   : > { %v25102_v14 = vsub.f32 %v10341_v11, %v25081_v32 }
 0x793   : > { %18367 = vmatmul.mubr.f32.gmra.mrb[68].mxu1 %v9624_v33  ;;  %v25110_v33 = vand.u32 4294901760, %v10347_v50 }
 0x794   : > { %18369 = vmatprep.mubr.f32.mxu1 %v9634_v56  ;;  %20327 = vmatpush3.bf16.msra.mxu1 %v24917_v13  ;;  %v10368_v13 = vand.u32 4294901760, %v8510_v46 }
 0x795   : > { %20329 = vmatprep.subr.bf16.mxu1 %v24919_v1  ;;  %v25139_v61 = vsub.f32 %v10347_v50, %v25110_v33 }
 0x796   : > { %v25097_v60 = vsub.f32 %v8510_v46, %v10368_v13 }
 0x797   : > { %18370 = vmatmul.mubr.f32.gmra.mrb[70].mxu1 %v9644_v29  ;;  %v25996_v50 = vand.u32 4294901760, %v25139_v61 }
 0x798   : > { %20331 = vmatpush3.bf16.msra.mxu1 %v24919_v1  ;;  %18388 = vmatprep.mubr.f32.mxu1 %v24925_v53  ;;  %v10371_v1 = vand.u32 4294901760, %v8511_v28  ;;  %v10531_v57 = vand.u32 4294901760, %v25097_v60 }
 0x799   : > { %20333 = vmatprep.subr.bf16.mxu1 %v24840_v25 }
 0x79a   : > { %v25099_v35 = vsub.f32 %v8511_v28, %v10371_v1  ;;  %v10532_v46 = vsub.f32 %v25097_v60, %v10531_v57  ;;  %v25166_v28 = vsub.f32 %v8514_v4, %v10380_v40  ;;  %v25187_v4 = vand.u32 4294901760, %v10359_v19 }
 0x79b   : > { %18389 = vmatmul.mubr.f32.vlgmr.msra.gmra.mrb[64].mxu1 %v24922_v43 }
 0x79c   : > { %18391 = vmatprep.mubr.f32.mxu1 %v24939_v20  ;;  %20335 = vmatpush3.bf16.msra.mxu1 %v24840_v25  ;;  %v10338_v25 = vsel %vm9474_vm1, %v24854_v24, 0  ;;  %v8512_v24 = vld [vmem:[#allocation2 + $0x278] sm:$0xff]  ;;  %v10538_v48 = vand.u32 4294901760, %v25099_v35 }
 0x79d   : > { %20337 = vmatprep.subr.bf16.mxu1 %v24868_v37  ;;  %v25086_v18 = vand.u32 4294901760, %v10338_v25 }
 0x79e   : > { %v10539_v30 = vsub.f32 %v25099_v35, %v10538_v48 }
 0x79f   : > { %18392 = vmatmul.mubr.f32.gmra.mrb[66].mxu1 %v24935_v38 }
 0x7a0   : > { %18394 = vmatprep.mubr.f32.mxu1 %v24959_v26  ;;  %20339 = vmatpush3.bf16.msra.mxu1 %v24868_v37  ;;  %v25079_v37 = vsub.f32 %v8509_v7, %v10365_v17  ;;  %v10356_v7 = vsel %vm9474_vm1, %v24866_v23, 0  ;;  %v10519_v17 = vand.u32 4294901760, %v10518_v10 }
 0x7a1   : > { %20341 = vmatprep.subr.bf16.mxu1 %v24872_v31 }
 0x7a2   : > { %v10524_v59 = vand.u32 4294901760, %v25079_v37 }
 0x7a3   : > { %18395 = vmatmul.mubr.f32.gmra.mrb[68].mxu1 %v24955_v36 }
 0x7a4   : > { %18397 = vmatprep.mubr.f32.mxu1 %v24979_v54  ;;  %20343 = vmatpush3.bf16.msra.mxu1 %v24872_v31  ;;  %v10344_v31 = vsel %vm9474_vm1, %v24858_v62, 0  ;;  %v25105_v62 = vpack.c.bf16 %v10371_v1, %v10368_v13  ;;  %v10525_v29 = vsub.f32 %v25079_v37, %v10524_v59  ;;  %v25172_v13 = vsub.f32 %v10350_v52, %v25144_v42 }
 0x7a5   : > { %20345 = vmatprep.subr.bf16.mxu1 %v24876_v44  ;;  %v25112_v8 = vand.u32 4294901760, %v10344_v31  ;;  %v25174_v1 = vand.u32 4294901760, %v10356_v7 }
 0x7a6   : > { %v10526_v11 = vand.u32 4294901760, %v10525_v29 }
 0x7a7   : > { %18398 = vmatmul.mubr.f32.gmra.mrb[70].mxu1 %v24975_v0  ;;  %v25142_v16 = vsub.f32 %v10344_v31, %v25112_v8  ;;  %v25184_v31 = vsub.f32 %v10353_v51, %v25146_v34 }
 0x7a8   : > { %20347 = vmatpush3.bf16.msra.mxu1 %v24876_v44  ;;  %18416 = vmatprep.mubr.f32.mxu1 %v24925_v53  ;;  %v10374_v44 = vand.u32 4294901760, %v8512_v24  ;;  %v25108_v53 = vsub.f32 %v10338_v25, %v25086_v18 }
 0x7a9   : > { %20349 = vmatprep.subr.bf16.mxu1 %v25084_v5  ;;  %v10456_v25 = vand.u32 4294901760, %v25142_v16 }
 0x7aa   : > { %v25131_v56 = vpack.c.bf16 %v10377_v39, %v10374_v44  ;;  %v10436_v27 = vand.u32 4294901760, %v25108_v53  ;;  %v10540_v39 = vand.u32 4294901760, %v10539_v30 }
 0x7ab   : > { %18417 = vmatmul.mubr.f32.vlgmr.msra.gmra.mrb[64].mxu1 %v24922_v43  ;;  %v10446_v43 = vand.u32 4294901760, %v25102_v14  ;;  %v10457_v29 = vsub.f32 %v25142_v16, %v10456_v25 }
 0x7ac   : > { %18419 = vmatprep.mubr.f32.mxu1 %v24939_v20  ;;  %20351 = vmatpush3.bf16.msra.mxu1 %v25084_v5  ;;  %v25133_v20 = vsub.f32 %v8512_v24, %v10374_v44  ;;  %v10437_v24 = vsub.f32 %v25108_v53, %v10436_v27  ;;  %v10533_v44 = vand.u32 4294901760, %v10532_v46  ;;  %v25210_v46 = vsub.f32 %v10359_v19, %v25187_v4 }
 0x7ad   : > { %20353 = vmatprep.subr.bf16.mxu1 %v25105_v62  ;;  %v10447_v15 = vsub.f32 %v25102_v14, %v10446_v43 }
 0x7ae   : > { %v25993_v23 = vand.u32 4294901760, %v25133_v20  ;;  %v10438_v10 = vand.u32 4294901760, %v10437_v24  ;;  %v20368_v30 = vpack.c.bf16 %v10540_v39, %v10533_v44 }
 0x7af   : > { %18420 = vmatmul.mubr.f32.gmra.mrb[66].mxu1 %v24935_v38  ;;  %v25992_v38 = vand.u32 4294901760, %v25135_v3 }
 0x7b0   : > { %18422 = vmatprep.mubr.f32.mxu1 %v24959_v26  ;;  %20355 = vmatpush3.bf16.msra.mxu1 %v25105_v62  ;;  %v25168_v26 = vsub.f32 %v8515_v9, %v10383_v12  ;;  %v20364_v9 = vpack.c.bf16 %v10526_v11, %v10519_v17  ;;  %v10546_v52 = vsub.f32 %v25133_v20, %v25993_v23  ;;  %v10448_v17 = vand.u32 4294901760, %v10447_v15 }
 0x7b1   : > { %20357 = vmatprep.subr.bf16.mxu1 %v25131_v56  ;;  %v10553_v51 = vsub.f32 %v25135_v3, %v25992_v38  ;;  %v25202_v12 = vsub.f32 %v10356_v7, %v25174_v1  ;;  %v10486_v11 = vand.u32 4294901760, %v25184_v31  ;;  %v10467_v7 = vsub.f32 %v25139_v61, %v25996_v50 }
 0x7b2   : > { %v25994_v40 = vand.u32 4294901760, %v25168_v26  ;;  %v10547_v24 = vand.u32 4294901760, %v10546_v52  ;;  %v10458_v23 = vand.u32 4294901760, %v10457_v29  ;;  %v10506_v52 = vand.u32 4294901760, %v25210_v46 }
 0x7b3   : > { %18423 = vmatmul.mubr.f32.gmra.mrb[68].mxu1 %v24955_v36  ;;  %v25995_v36 = vand.u32 4294901760, %v25166_v28  ;;  %v10554_v38 = vand.u32 4294901760, %v10553_v51  ;;  %v10496_v15 = vand.u32 4294901760, %v25202_v12  ;;  %v10468_v44 = vand.u32 4294901760, %v10467_v7 }
 0x7b4   : > { %18425 = vmatprep.mubr.f32.mxu1 %v24979_v54  ;;  %20359 = vmatpush3.bf16.msra.mxu1 %v25131_v56  ;;  %v10476_v54 = vand.u32 4294901760, %v25172_v13  ;;  %v10567_v19 = vsub.f32 %v25168_v26, %v25994_v40  ;;  %v10487_v39 = vsub.f32 %v25184_v31, %v10486_v11 }
 0x7b5   : > { %20361 = vmatprep.subr.bf16.mxu1 %v25153_v58  ;;  %v20372_v51 = vpack.c.bf16 %v10554_v38, %v10547_v24  ;;  %v10497_v29 = vsub.f32 %v25202_v12, %v10496_v15  ;;  %v20380_v24 = vpack.c.bf16 %v25079_v37, %v25077_v49  ;;  %v26324_v49 = vand.u32 4294901760, %v25133_v20 }
 0x7b6   : > { %v26325_v37 = vand.u32 4294901760, %v25135_v3 }
 0x7b7   : > { %18426 = vmatmul.mubr.f32.gmra.mrb[70].mxu1 %v24975_v0  ;;  %v10560_v0 = vsub.f32 %v25166_v28, %v25995_v36  ;;  %v10568_v36 = vand.u32 4294901760, %v10567_v19  ;;  %v10498_v7 = vand.u32 4294901760, %v10497_v29 }
 0x7b8   : > { %20363 = vmatpush3.bf16.msra.mxu1 %v25153_v58  ;;  %18444 = vmatprep.mubr.f32.mxu1 %v10438_v10  ;;  %v10477_v10 = vsub.f32 %v25172_v13, %v10476_v54 }
 0x7b9   : > { %20365 = vmatprep.subr.bf16.mxu1 %v20364_v9  ;;  %v10561_v40 = vand.u32 4294901760, %v10560_v0  ;;  %v20416_v0 = vpack.c.bf16 %v10538_v48, %v10531_v57  ;;  %v12150_v57 = vld [vmem:[#allocation2 + $0x2e0] sm:$0xff] }
 0x7ba   : > { %v10478_v50 = vand.u32 4294901760, %v10477_v10 }
 0x7bb   : > { %18445 = vmatmul.mubr.f32.vlgmr.msra.gmra.mrb[64].mxu1 %v10448_v17  ;;  %v20376_v17 = vpack.c.bf16 %v10568_v36, %v10561_v40  ;;  %v20388_v36 = vpack.c.bf16 %v25135_v3, %v25133_v20  ;;  %v20392_v40 = vpack.c.bf16 %v25168_v26, %v25166_v28  ;;  %v12161_v20 = vsel %vm9474_vm1, %v24889_v22, 0  ;;  %v12151_v3 = vld [vmem:[#allocation2 + $0x2e8] sm:$0xff] }
 0x7bc   : > { %18447 = vmatprep.mubr.f32.mxu1 %v10458_v23  ;;  %20367 = vmatpush3.bf16.msra.mxu1 %v20364_v9  ;;  %v10488_v23 = vand.u32 4294901760, %v10487_v39  ;;  %v10507_v9 = vsub.f32 %v25210_v46, %v10506_v52 }
 0x7bd   : > { %20369 = vmatprep.subr.bf16.mxu1 %v20368_v30 }
 0x7be   : > { %v10508_v38 = vand.u32 4294901760, %v10507_v9 }
 0x7bf   : > { %18448 = vmatmul.mubr.f32.gmra.mrb[66].mxu1 %v10468_v44 }
 0x7c0   : > { %18450 = vmatprep.mubr.f32.mxu1 %v10478_v50  ;;  %20371 = vmatpush3.bf16.msra.mxu1 %v20368_v30  ;;  %v20384_v50 = vpack.c.bf16 %v25099_v35, %v25097_v60  ;;  %v20412_v30 = vpack.c.bf16 %v10524_v59, %v10517_v2  ;;  %v20420_v2 = vpack.c.bf16 %v26325_v37, %v26324_v49  ;;  %v26326_v59 = vand.u32 4294901760, %v25139_v61 }
 0x7c1   : > { %20373 = vmatprep.subr.bf16.mxu1 %v20372_v51  ;;  %v26327_v60 = vand.u32 4294901760, %v25166_v28  ;;  %v26328_v35 = vand.u32 4294901760, %v25168_v26  ;;  %v12188_v28 = vand.u32 4294901760, %v12151_v3  ;;  %v12176_v49 = vsel %vm9474_vm1, %v24911_v41, 0 }
 0x7c3   : > { %18451 = vmatmul.mubr.f32.gmra.mrb[68].mxu1 %v10488_v23  ;;  %v25337_v19 = vsub.f32 %v12151_v3, %v12188_v28 }
 0x7c4   : > { %18453 = vmatprep.mubr.f32.mxu1 %v10498_v7  ;;  %20375 = vmatpush3.bf16.msra.mxu1 %v20372_v51  ;;  %v12170_v51 = vsel %vm9474_vm1, %v24907_v6, 0 }
 0x7c5   : > { %20377 = vmatprep.subr.bf16.mxu1 %v20376_v17 }
 0x7c7   : > { %18454 = vmatmul.mubr.f32.gmra.mrb[70].mxu1 %v10508_v38 }
 0x7c8   : > { %20379 = vmatpush3.bf16.msra.mxu1 %v20376_v17  ;;  %18472 = vmatprep.mubr.f32.mxu1 %v25086_v18 }
 0x7c9   : > { %20381 = vmatprep.subr.bf16.mxu1 %v20380_v24 }
 0x7cb   : > { %18473 = vmatmul.mubr.f32.vlgmr.msra.gmra.mrb[64].mxu1 %v25081_v32 }
 0x7cc   : > { %18475 = vmatprep.mubr.f32.mxu1 %v25112_v8  ;;  %20383 = vmatpush3.bf16.msra.mxu1 %v20380_v24 }
 0x7cd   : > { %20385 = vmatprep.subr.bf16.mxu1 %v20384_v50 }
 0x7cf   : > { %18476 = vmatmul.mubr.f32.gmra.mrb[66].mxu1 %v25110_v33 }
 0x7d0   : > { %18478 = vmatprep.mubr.f32.mxu1 %v25144_v42  ;;  %20387 = vmatpush3.bf16.msra.mxu1 %v20384_v50 }
 0x7d1   : > { %20389 = vmatprep.subr.bf16.mxu1 %v20388_v36 }
 0x7d3   : > { %18479 = vmatmul.mubr.f32.gmra.mrb[68].mxu1 %v25146_v34 }
 0x7d4   : > { %18481 = vmatprep.mubr.f32.mxu1 %v25174_v1  ;;  %20391 = vmatpush3.bf16.msra.mxu1 %v20388_v36 }
 0x7d5   : > { %20393 = vmatprep.subr.bf16.mxu1 %v20392_v40 }
 0x7d7   : > { %18482 = vmatmul.mubr.f32.gmra.mrb[70].mxu1 %v25187_v4 }
 0x7d8   : > { %20395 = vmatpush3.bf16.msra.mxu1 %v20392_v40  ;;  %18500 = vmatprep.mubr.f32.mxu1 %v25108_v53  ;;  %v12149_v53 = vld [vmem:[#allocation2 + $0x2d8] sm:$0xff]  ;;  %v25384_v40 = vand.u32 4294901760, %v12170_v51 }
 0x7d9   : > { %20397 = vmatprep.subr.bf16.mxu1 %v25084_v5  ;;  %v12182_v48 = vand.u32 4294901760, %v12149_v53 }
 0x7db   : > { %18501 = vmatmul.mubr.f32.vlgmr.msra.gmra.mrb[64].mxu1 %v25102_v14  ;;  %v20424_v14 = vpack.c.bf16 %v26328_v35, %v26327_v60 }
 0x7dc   : > { %18503 = vmatprep.mubr.f32.mxu1 %v25142_v16  ;;  %20399 = vmatpush3.bf16.msra.mxu1 %v25084_v5  ;;  %v25321_v16 = vand.u32 4294901760, %v12161_v20 }
 0x7dd   : > { %20401 = vmatprep.subr.bf16.mxu1 %v25105_v62 }
 0x7df   : > { %18504 = vmatmul.mubr.f32.gmra.mrb[66].mxu1 %v25139_v61  ;;  %v25317_v61 = vsub.f32 %v12149_v53, %v12182_v48  ;;  %v25412_v53 = vsub.f32 %v12170_v51, %v25384_v40 }
 0x7e0   : > { %18506 = vmatprep.mubr.f32.mxu1 %v25172_v13  ;;  %20403 = vmatpush3.bf16.msra.mxu1 %v25105_v62  ;;  %v12154_v13 = vld [vmem:[#allocation2 + $0x300] sm:$0xff] }
 0x7e1   : > { %20405 = vmatprep.subr.bf16.mxu1 %v25131_v56  ;;  %v12197_v10 = vand.u32 4294901760, %v12154_v13 }
 0x7e3   : > { %18507 = vmatmul.mubr.f32.gmra.mrb[68].mxu1 %v25184_v31  ;;  %v12167_v31 = vsel %vm9474_vm1, %v24901_v45, 0  ;;  %v25342_v45 = vsub.f32 %v12161_v20, %v25321_v16  ;;  %v25375_v38 = vsub.f32 %v12154_v13, %v12197_v10 }
 0x7e4   : > { %18509 = vmatprep.mubr.f32.mxu1 %v25202_v12  ;;  %20407 = vmatpush3.bf16.msra.mxu1 %v25131_v56  ;;  %v12156_v12 = vld [vmem:[#allocation2 + $0x310] sm:$0xff]  ;;  %v25350_v44 = vand.u32 4294901760, %v12167_v31 }
 0x7e5   : > { %20409 = vmatprep.subr.bf16.mxu1 %v25153_v58  ;;  %v12203_v23 = vand.u32 4294901760, %v12156_v12 }
 0x7e6   : > { %v25379_v50 = vsub.f32 %v12167_v31, %v25350_v44 }
 0x7e7   : > { %18510 = vmatmul.mubr.f32.gmra.mrb[70].mxu1 %v25210_v46 }
 0x7e8   : > { %20411 = vmatpush3.bf16.msra.mxu1 %v25153_v58  ;;  %18528 = vmatprep.mubr.f32.mxu1 %v10436_v27  ;;  %v12152_v27 = vld [vmem:[#allocation2 + $0x2f0] sm:$0xff]  ;;  %v12286_v20 = vand.u32 4294901760, %v25379_v50 }
 0x7e9   : > { %20413 = vmatprep.subr.bf16.mxu1 %v20412_v30  ;;  %v12191_v26 = vand.u32 4294901760, %v12152_v27 }
 0x7ea   : > { %v12287_v51 = vsub.f32 %v25379_v50, %v12286_v20 }
 0x7eb   : > { %18529 = vmatmul.mubr.f32.vlgmr.msra.gmra.mrb[64].mxu1 %v10446_v43  ;;  %v12185_v43 = vand.u32 4294901760, %v12150_v57 }
 0x7ec   : > { %18531 = vmatprep.mubr.f32.mxu1 %v10456_v25  ;;  %20415 = vmatpush3.bf16.msra.mxu1 %v20412_v30 }
 0x7ed   : > { %20417 = vmatprep.subr.bf16.mxu1 %v20416_v0  ;;  %v25324_v22 = vpack.c.bf16 %v12185_v43, %v12182_v48 }
 0x7ef   : > { %18532 = vmatmul.mubr.f32.gmra.mrb[66].mxu1 %v26326_v59 }
 0x7f0   : > { %18534 = vmatprep.mubr.f32.mxu1 %v10476_v54  ;;  %20419 = vmatpush3.bf16.msra.mxu1 %v20416_v0  ;;  %v12155_v54 = vld [vmem:[#allocation2 + $0x308] sm:$0xff]  ;;  %v12179_v0 = vsel %vm9474_vm1, %v24909_v47, 0 }
 0x7f1   : > { %20421 = vmatprep.subr.bf16.mxu1 %v20420_v2  ;;  %v12200_v29 = vand.u32 4294901760, %v12155_v54 }
 0x7f3   : > { %18535 = vmatmul.mubr.f32.gmra.mrb[68].mxu1 %v10486_v11  ;;  %v12337_v11 = vand.u32 4294901760, %v25317_v61  ;;  %v25393_v37 = vpack.c.bf16 %v12203_v23, %v12200_v29  ;;  %v25406_v35 = vsub.f32 %v12155_v54, %v12200_v29 }
 0x7f4   : > { %18537 = vmatprep.mubr.f32.mxu1 %v10496_v15  ;;  %20423 = vmatpush3.bf16.msra.mxu1 %v20420_v2  ;;  %v25339_v15 = vsub.f32 %v12152_v27, %v12191_v26  ;;  %v25427_v27 = vand.u32 4294901760, %v12179_v0 }
 0x7f5   : > { %20425 = vmatprep.subr.bf16.mxu1 %v20424_v14  ;;  %v12338_v9 = vsub.f32 %v25317_v61, %v12337_v11 }
 0x7f6   : > { %v12358_v6 = vand.u32 4294901760, %v25339_v15 }
 0x7f7   : > { %18538 = vmatmul.mubr.f32.gmra.mrb[70].mxu1 %v10506_v52  ;;  %v12173_v52 = vsel %vm9474_vm1, %v24905_v21, 0  ;;  %v12351_v21 = vand.u32 4294901760, %v25337_v19  ;;  %v12339_v2 = vand.u32 4294901760, %v12338_v9 }
 0x7f8   : > { %20427 = vmatpush3.bf16.msra.mxu1 %v20424_v14  ;;  %18556 = vmatprep.mubr.f32.mxu1 %v25086_v18  ;;  %v25386_v30 = vand.u32 4294901760, %v12173_v52  ;;  %v12359_v47 = vsub.f32 %v25339_v15, %v12358_v6 }
 0x7f9   : > { %20429 = vmatprep.subr.bf16.mxu1 %v25084_v5  ;;  %v12352_v60 = vsub.f32 %v25337_v19, %v12351_v21 }
 0x7fa   : > { %v25424_v3 = vsub.f32 %v12173_v52, %v25386_v30  ;;  %v25450_v52 = vsub.f32 %v12179_v0, %v25427_v27 }
 0x7fb   : > { %18557 = vmatmul.mubr.f32.vlgmr.msra.gmra.mrb[64].mxu1 %v25081_v32 }
 0x7fc   : > { %18559 = vmatprep.mubr.f32.mxu1 %v25112_v8  ;;  %20431 = vmatpush3.bf16.msra.mxu1 %v25084_v5  ;;  %v12158_v5 = vsel %vm9474_vm1, %v24893_v55, 0  ;;  %v12153_v55 = vld [vmem:[#allocation2 + $0x2f8] sm:$0xff] }
 0x7fd   : > { %20433 = vmatprep.subr.bf16.mxu1 %v25105_v62  ;;  %v25326_v25 = vand.u32 4294901760, %v12158_v5 }
 0x7ff   : > { %18560 = vmatmul.mubr.f32.gmra.mrb[66].mxu1 %v25110_v33 }
 0x800   : > { %18562 = vmatprep.mubr.f32.mxu1 %v25144_v42  ;;  %20435 = vmatpush3.bf16.msra.mxu1 %v25105_v62  ;;  %v25319_v62 = vsub.f32 %v12150_v57, %v12185_v43  ;;  %v25414_v57 = vand.u32 4294901760, %v12176_v49 }
 0x801   : > { %20437 = vmatprep.subr.bf16.mxu1 %v25131_v56 }
 0x802   : > { %v12344_v46 = vand.u32 4294901760, %v25319_v62 }
 0x803   : > { %18563 = vmatmul.mubr.f32.gmra.mrb[68].mxu1 %v25146_v34 }
 0x804   : > { %18565 = vmatprep.mubr.f32.mxu1 %v25174_v1  ;;  %20439 = vmatpush3.bf16.msra.mxu1 %v25131_v56  ;;  %v12164_v56 = vsel %vm9474_vm1, %v24903_v63, 0  ;;  %v25345_v63 = vpack.c.bf16 %v12191_v26, %v12188_v28  ;;  %v12345_v17 = vsub.f32 %v25319_v62, %v12344_v46  ;;  %v12353_v28 = vand.u32 4294901760, %v12352_v60 }
 0x805   : > { %20441 = vmatprep.subr.bf16.mxu1 %v25153_v58  ;;  %v25352_v39 = vand.u32 4294901760, %v12164_v56  ;;  %v12360_v26 = vand.u32 4294901760, %v12359_v47  ;;  %v12288_v60 = vand.u32 4294901760, %v12287_v51  ;;  %v20668_v51 = vpack.c.bf16 %v25319_v62, %v25317_v61 }
 0x806   : > { %v12346_v59 = vand.u32 4294901760, %v12345_v17 }
 0x807   : > { %18566 = vmatmul.mubr.f32.gmra.mrb[70].mxu1 %v25187_v4  ;;  %v25382_v36 = vsub.f32 %v12164_v56, %v25352_v39  ;;  %v25442_v56 = vsub.f32 %v12176_v49, %v25414_v57  ;;  %v20656_v29 = vpack.c.bf16 %v12360_v26, %v12353_v28 }
 0x808   : > { %20443 = vmatpush3.bf16.msra.mxu1 %v25153_v58  ;;  %18584 = vmatprep.mubr.f32.mxu1 %v25086_v18  ;;  %v12194_v58 = vand.u32 4294901760, %v12153_v55  ;;  %v25348_v18 = vsub.f32 %v12158_v5, %v25326_v25  ;;  %v20652_v5 = vpack.c.bf16 %v12346_v59, %v12339_v2  ;;  %v12326_v59 = vand.u32 4294901760, %v25450_v52 }
 0x809   : > { %20637 = vmatprep.subr.bf16.mxu1 %v25324_v22  ;;  %v12276_v14 = vand.u32 4294901760, %v25382_v36  ;;  %v12316_v0 = vand.u32 4294901760, %v25442_v56 }
 0x80a   : > { %v25371_v7 = vpack.c.bf16 %v12197_v10, %v12194_v58  ;;  %v12256_v24 = vand.u32 4294901760, %v25348_v18  ;;  %v12306_v10 = vand.u32 4294901760, %v25424_v3 }
 0x80b   : > { %18585 = vmatmul.mubr.f32.vlgmr.msra.gmra.mrb[64].mxu1 %v25081_v32  ;;  %v12266_v32 = vand.u32 4294901760, %v25342_v45 }
 0x80c   : > { %18587 = vmatprep.mubr.f32.mxu1 %v25112_v8  ;;  %20639 = vmatpush3.bf16.msra.mxu1 %v25324_v22  ;;  %v25373_v8 = vsub.f32 %v12153_v55, %v12194_v58  ;;  %v12257_v48 = vsub.f32 %v25348_v18, %v12256_v24  ;;  %v12307_v47 = vsub.f32 %v25424_v3, %v12306_v10 }
 0x80d   : > { %20641 = vmatprep.subr.bf16.mxu1 %v25345_v63  ;;  %v12267_v43 = vsub.f32 %v25342_v45, %v12266_v32 }
 0x80e   : > { %v12365_v41 = vand.u32 4294901760, %v25373_v8  ;;  %v12258_v54 = vand.u32 4294901760, %v12257_v48 }
 0x80f   : > { %18588 = vmatmul.mubr.f32.gmra.mrb[66].mxu1 %v25110_v33  ;;  %v12372_v33 = vand.u32 4294901760, %v25375_v38  ;;  %v12268_v58 = vand.u32 4294901760, %v12267_v43 }
 0x810   : > { %18590 = vmatprep.mubr.f32.mxu1 %v25144_v42  ;;  %20643 = vmatpush3.bf16.msra.mxu1 %v25345_v63  ;;  %v25408_v42 = vsub.f32 %v12156_v12, %v12203_v23  ;;  %v12366_v55 = vsub.f32 %v25373_v8, %v12365_v41  ;;  %v12277_v12 = vsub.f32 %v25382_v36, %v12276_v14 }
 0x811   : > { %20645 = vmatprep.subr.bf16.mxu1 %v25371_v7  ;;  %v12373_v13 = vsub.f32 %v25375_v38, %v12372_v33  ;;  %v20708_v61 = vpack.c.bf16 %v12372_v33, %v12365_v41 }
 0x812   : > { %v12386_v31 = vand.u32 4294901760, %v25408_v42  ;;  %v12367_v23 = vand.u32 4294901760, %v12366_v55  ;;  %v12278_v49 = vand.u32 4294901760, %v12277_v12  ;;  %v12317_v55 = vsub.f32 %v25442_v56, %v12316_v0 }
 0x813   : > { %18591 = vmatmul.mubr.f32.gmra.mrb[68].mxu1 %v25146_v34  ;;  %v12379_v34 = vand.u32 4294901760, %v25406_v35  ;;  %v12374_v9 = vand.u32 4294901760, %v12373_v13  ;;  %v12308_v13 = vand.u32 4294901760, %v12307_v47 }
 0x814   : > { %18593 = vmatprep.mubr.f32.mxu1 %v25174_v1  ;;  %20647 = vmatpush3.bf16.msra.mxu1 %v25371_v7  ;;  %v12296_v1 = vand.u32 4294901760, %v25412_v53  ;;  %v12387_v17 = vsub.f32 %v25408_v42, %v12386_v31  ;;  %v12318_v12 = vand.u32 4294901760, %v12317_v55 }
 0x815   : > { %20649 = vmatprep.subr.bf16.mxu1 %v25393_v37  ;;  %v20660_v48 = vpack.c.bf16 %v12374_v9, %v12367_v23  ;;  %v20676_v23 = vpack.c.bf16 %v25375_v38, %v25373_v8  ;;  %v20680_v9 = vpack.c.bf16 %v25408_v42, %v25406_v35  ;;  %v20712_v62 = vpack.c.bf16 %v12386_v31, %v12379_v34 }
 0x816   : > { %v12297_v2 = vsub.f32 %v25412_v53, %v12296_v1  ;;  %v12388_v28 = vand.u32 4294901760, %v12387_v17  ;;  %v20704_v17 = vpack.c.bf16 %v12358_v6, %v12351_v21 }
 0x817   : > { %18594 = vmatmul.mubr.f32.gmra.mrb[70].mxu1 %v25187_v4  ;;  %v12380_v4 = vsub.f32 %v25406_v35, %v12379_v34 }
 0x818   : > { %20651 = vmatpush3.bf16.msra.mxu1 %v25393_v37  ;;  %18876 = vmatprep.mubr.f32.mxu1 %v12258_v54  ;;  %v12298_v26 = vand.u32 4294901760, %v12297_v2 }
 0x819   : > { %20653 = vmatprep.subr.bf16.mxu1 %v20652_v5  ;;  %v12381_v43 = vand.u32 4294901760, %v12380_v4  ;;  %v20700_v4 = vpack.c.bf16 %v12344_v46, %v12337_v11 }
 0x81b   : > { %18877 = vmatmul.mubr.f32.vlgmr.msra.gmra.mrb[64].mxu1 %v12268_v58  ;;  %v20664_v54 = vpack.c.bf16 %v12388_v28, %v12381_v43 }
 0x81c   : > { %18879 = vmatprep.mubr.f32.mxu1 %v12278_v49  ;;  %20655 = vmatpush3.bf16.msra.mxu1 %v20652_v5  ;;  %v12327_v5 = vsub.f32 %v25450_v52, %v12326_v59 }
 0x81d   : > { %20657 = vmatprep.subr.bf16.mxu1 %v20656_v29 }
 0x81e   : > { %v12328_v58 = vand.u32 4294901760, %v12327_v5 }
 0x81f   : > { %18880 = vmatmul.mubr.f32.gmra.mrb[66].mxu1 %v12288_v60 }
 0x820   : > { %18882 = vmatprep.mubr.f32.mxu1 %v12298_v26  ;;  %20659 = vmatpush3.bf16.msra.mxu1 %v20656_v29  ;;  %v20672_v29 = vpack.c.bf16 %v25339_v15, %v25337_v19 }
 0x821   : > { %20661 = vmatprep.subr.bf16.mxu1 %v20660_v48 }
 0x823   : > { %18883 = vmatmul.mubr.f32.gmra.mrb[68].mxu1 %v12308_v13 }
 0x824   : > { %18885 = vmatprep.mubr.f32.mxu1 %v12318_v12  ;;  %20663 = vmatpush3.bf16.msra.mxu1 %v20660_v48 }
 0x825   : > { %20665 = vmatprep.subr.bf16.mxu1 %v20664_v54 }
 0x827   : > { %18886 = vmatmul.mubr.f32.gmra.mrb[70].mxu1 %v12328_v58 }
 0x828   : > { %20667 = vmatpush3.bf16.msra.mxu1 %v20664_v54  ;;  %18904 = vmatprep.mubr.f32.mxu1 %v25326_v25 }
 0x829   : > { %20669 = vmatprep.subr.bf16.mxu1 %v20668_v51 }
 0x82b   : > { %18905 = vmatmul.mubr.f32.vlgmr.msra.gmra.mrb[64].mxu1 %v25321_v16 }
 0x82c   : > { %18907 = vmatprep.mubr.f32.mxu1 %v25352_v39  ;;  %20671 = vmatpush3.bf16.msra.mxu1 %v20668_v51 }
 0x82d   : > { %20673 = vmatprep.subr.bf16.mxu1 %v20672_v29 }
 0x82f   : > { %18908 = vmatmul.mubr.f32.gmra.mrb[66].mxu1 %v25350_v44 }
 0x830   : > { %18910 = vmatprep.mubr.f32.mxu1 %v25384_v40  ;;  %20675 = vmatpush3.bf16.msra.mxu1 %v20672_v29 }
 0x831   : > { %20677 = vmatprep.subr.bf16.mxu1 %v20676_v23 }
 0x833   : > { %18911 = vmatmul.mubr.f32.gmra.mrb[68].mxu1 %v25386_v30 }
 0x834   : > { %18913 = vmatprep.mubr.f32.mxu1 %v25414_v57  ;;  %20679 = vmatpush3.bf16.msra.mxu1 %v20676_v23 }
 0x835   : > { %20681 = vmatprep.subr.bf16.mxu1 %v20680_v9 }
 0x837   : > { %18914 = vmatmul.mubr.f32.gmra.mrb[70].mxu1 %v25427_v27 }
 0x838   : > { %20683 = vmatpush3.bf16.msra.mxu1 %v20680_v9  ;;  %18932 = vmatprep.mubr.f32.mxu1 %v25348_v18  ;;  %v14506_v18 = vld [vmem:[#allocation2 + $0x380] ss:$0 sm:$0xff] }
 0x839   : > { %20685 = vmatprep.subr.bf16.mxu1 %v25324_v22 }
 0x83b   : > { %18933 = vmatmul.mubr.f32.vlgmr.msra.gmra.mrb[64].mxu1 %v25342_v45  ;;  %v13049_v45 = vld [vmem:[#allocation2 + $0x320] sm:$0xff] }
 0x83c   : > { %18935 = vmatprep.mubr.f32.mxu1 %v25382_v36  ;;  %20687 = vmatpush3.bf16.msra.mxu1 %v25324_v22  ;;  %v13056_v21 = vsel %vm9474_vm1, %v13049_v45, 0 }
 0x83d   : > { %20689 = vmatprep.subr.bf16.mxu1 %v25345_v63 }
 0x83f   : > { %18936 = vmatmul.mubr.f32.gmra.mrb[66].mxu1 %v25379_v50  ;;  %v25578_v50 = vand.u32 4294901760, %v13056_v21 }
 0x840   : > { %18938 = vmatprep.mubr.f32.mxu1 %v25412_v53  ;;  %20691 = vmatpush3.bf16.msra.mxu1 %v25345_v63 }
 0x841   : > { %20693 = vmatprep.subr.bf16.mxu1 %v25371_v7  ;;  %v25585_v42 = vsub.f32 %v13056_v21, %v25578_v50 }
 0x843   : > { %18939 = vmatmul.mubr.f32.gmra.mrb[68].mxu1 %v25424_v3  ;;  %v13149_v34 = vand.u32 4294901760, %v25585_v42 }
 0x844   : > { %18941 = vmatprep.mubr.f32.mxu1 %v25442_v56  ;;  %20695 = vmatpush3.bf16.msra.mxu1 %v25371_v7 }
 0x845   : > { %20697 = vmatprep.subr.bf16.mxu1 %v25393_v37  ;;  %v25601_v47 = vsub.f32 %v25585_v42, %v13149_v34 }
 0x847   : > { %18942 = vmatmul.mubr.f32.gmra.mrb[70].mxu1 %v25450_v52 }
 0x848   : > { %20699 = vmatpush3.bf16.msra.mxu1 %v25393_v37  ;;  %18960 = vmatprep.mubr.f32.mxu1 %v12256_v24 }
 0x849   : > { %20701 = vmatprep.subr.bf16.mxu1 %v20700_v4 }
 0x84b   : > { %18961 = vmatmul.mubr.f32.vlgmr.msra.gmra.mrb[64].mxu1 %v12266_v32 }
 0x84c   : > { %18963 = vmatprep.mubr.f32.mxu1 %v12276_v14  ;;  %20703 = vmatpush3.bf16.msra.mxu1 %v20700_v4 }
 0x84d   : > { %20705 = vmatprep.subr.bf16.mxu1 %v20704_v17 }
 0x84f   : > { %18964 = vmatmul.mubr.f32.gmra.mrb[66].mxu1 %v12286_v20 }
 0x850   : > { %18966 = vmatprep.mubr.f32.mxu1 %v12296_v1  ;;  %20707 = vmatpush3.bf16.msra.mxu1 %v20704_v17 }
 0x851   : > { %20709 = vmatprep.subr.bf16.mxu1 %v20708_v61 }
 0x853   : > { %18967 = vmatmul.mubr.f32.gmra.mrb[68].mxu1 %v12306_v10 }
 0x854   : > { %18969 = vmatprep.mubr.f32.mxu1 %v12316_v0  ;;  %20711 = vmatpush3.bf16.msra.mxu1 %v20708_v61 }
 0x855   : > { %20713 = vmatprep.subr.bf16.mxu1 %v20712_v62 }
 0x857   : > { %18970 = vmatmul.mubr.f32.gmra.mrb[70].mxu1 %v12326_v59 }
 0x858   : > { %20715 = vmatpush3.bf16.msra.mxu1 %v20712_v62  ;;  %18988 = vmatprep.mubr.f32.mxu1 %v25326_v25 }
 0x859   : > { %20717 = vmatprep.subr.bf16.mxu1 %v25324_v22 }
 0x85b   : > { %18989 = vmatmul.mubr.f32.vlgmr.msra.gmra.mrb[64].mxu1 %v25321_v16 }
 0x85c   : > { %18991 = vmatprep.mubr.f32.mxu1 %v25352_v39  ;;  %20719 = vmatpush3.bf16.msra.mxu1 %v25324_v22  ;;  %v13048_v22 = vld [vmem:[#allocation2 + $0x318] sm:$0xff] }
 0x85d   : > { %20721 = vmatprep.subr.bf16.mxu1 %v25345_v63  ;;  %v13053_v11 = vsel %vm9474_vm1, %v13048_v22, 0 }
 0x85e   : > { %v25565_v46 = vand.u32 4294901760, %v13053_v11 }
 0x85f   : > { %18992 = vmatmul.mubr.f32.gmra.mrb[66].mxu1 %v25350_v44 }
 0x860   : > { %18994 = vmatprep.mubr.f32.mxu1 %v25384_v40  ;;  %20723 = vmatpush3.bf16.msra.mxu1 %v25345_v63  ;;  %v13050_v63 = vld [vmem:[#allocation2 + $0x328] sm:$0xff] }
 0x861   : > { %20725 = vmatprep.subr.bf16.mxu1 %v25371_v7  ;;  %19066 = vmatprep.mubr.f32.mxu0 %v25565_v46  ;;  %v13059_v6 = vsel %vm9474_vm1, %v13050_v63, 0 }
 0x862   : > { %v25580_v36 = vand.u32 4294901760, %v13059_v6 }
 0x863   : > { %18995 = vmatmul.mubr.f32.gmra.mrb[68].mxu1 %v25386_v30 }
 0x864   : > { %18997 = vmatprep.mubr.f32.mxu1 %v25414_v57  ;;  %20727 = vmatpush3.bf16.msra.mxu1 %v25371_v7  ;;  %v25588_v14 = vsub.f32 %v13059_v6, %v25580_v36 }
 0x865   : > { %20729 = vmatprep.subr.bf16.mxu1 %v25393_v37 }
 0x866   : > { %v13159_v31 = vand.u32 4294901760, %v25588_v14 }
 0x867   : > { %18998 = vmatmul.mubr.f32.gmra.mrb[70].mxu1 %v25427_v27 }
 0x868   : > { %20731 = vmatpush3.bf16.msra.mxu1 %v25393_v37  ;;  %19016 = vmatprep.mubr.f32.mxu1 %v25326_v25  ;;  %v25610_v54 = vsub.f32 %v25588_v14, %v13159_v31 }
 0x86b   : > { %19017 = vmatmul.mubr.f32.vlgmr.msra.gmra.mrb[64].mxu1 %v25321_v16  ;;  %v25569_v16 = vsub.f32 %v13053_v11, %v25565_v46 }
 0x86c   : > { %19019 = vmatprep.mubr.f32.mxu1 %v25352_v39 }
 0x86d   : > { %v13139_v25 = vand.u32 4294901760, %v25569_v16 }
 0x86f   : > { %19020 = vmatmul.mubr.f32.gmra.mrb[66].mxu1 %v25350_v44  ;;  %v13140_v19 = vsub.f32 %v25569_v16, %v13139_v25  ;;  %v13051_v44 = vld [vmem:[#allocation2 + $0x330] sm:$0xff] }
 0x870   : > { %19022 = vmatprep.mubr.f32.mxu1 %v25384_v40  ;;  %v13062_v8 = vsel %vm9474_vm1, %v13051_v44, 0 }
 0x871   : > { %v13141_v15 = vand.u32 4294901760, %v13140_v19  ;;  %v25582_v37 = vand.u32 4294901760, %v13062_v8 }
 0x873   : > { %19023 = vmatmul.mubr.f32.gmra.mrb[68].mxu1 %v25386_v30  ;;  %v25591_v20 = vsub.f32 %v13062_v8, %v25582_v37 }
 0x874   : > { %19025 = vmatprep.mubr.f32.mxu1 %v25414_v57 }
 0x875   : > { %v13169_v0 = vand.u32 4294901760, %v25591_v20 }
 0x877   : > { %19026 = vmatmul.mubr.f32.gmra.mrb[70].mxu1 %v25427_v27 }
 0x878   : > { %19044 = vmatprep.mubr.f32.mxu1 %v13141_v15 }
 0x93e   : > { %v19018_v39 = vpop.f32.mrb[64].mxu1 }
 0x93f   : > { %v13033_v32 = vadd.f32 %v19018_v39, %v14506_v18  ;;  %v12973_v7 = vpop.f32.mrb[65].mxu1 }
 0x940   : > { %v13032_v38 = vadd.f32 %v14506_v18, %v12973_v7 }
 0x941   : > { %v13041_v24 = vmax.f32 %v13033_v32, 0.0 }
 0x942   : > { %v13040_v40 = vmax.f32 %v13032_v38, 0.0  ;;  %v19021_v30 = vpop.f32.mrb[66].mxu1 }
 0x943   : > { %v13068_v41 = vand.u32 4294901760, %v13041_v24  ;;  %v13035_v33 = vadd.f32 %v19021_v30, %v14506_v18  ;;  %v12985_v35 = vpop.f32.mrb[67].mxu1 }
 0x944   : > { %v13065_v53 = vand.u32 4294901760, %v13040_v40  ;;  %v13034_v57 = vadd.f32 %v14506_v18, %v12985_v35 }
 0x945   : > { %v13186_v3 = vsub.f32 %v13041_v24, %v13068_v41  ;;  %v13043_v27 = vmax.f32 %v13035_v33, 0.0 }
 0x946   : > { %v25595_v1 = vpack.c.bf16 %v13068_v41, %v13065_v53  ;;  %v13179_v56 = vsub.f32 %v13040_v40, %v13065_v53  ;;  %v13042_v10 = vmax.f32 %v13034_v57, 0.0  ;;  %v19024_v52 = vpop.f32.mrb[68].mxu1 }
 0x947   : > { %v13187_v49 = vand.u32 4294901760, %v13186_v3  ;;  %v13074_v2 = vand.u32 4294901760, %v13043_v27  ;;  %v13037_v59 = vadd.f32 %v19024_v52, %v14506_v18  ;;  %v12997_v60 = vpop.f32.mrb[69].mxu1 }
 0x948   : > { %v13180_v48 = vand.u32 4294901760, %v13179_v56  ;;  %v13071_v43 = vand.u32 4294901760, %v13042_v10  ;;  %v13036_v28 = vadd.f32 %v14506_v18, %v12997_v60  ;;  %20733 = vmatprep.subr.bf16.mxu1 %v25595_v1  ;;  %v25604_v26 = vpack.c.bf16 %v13186_v3, %v13179_v56 }
 0x949   : > { %v13200_v55 = vsub.f32 %v13043_v27, %v13074_v2  ;;  %v13045_v13 = vmax.f32 %v13037_v59, 0.0  ;;  %20735 = vmatpush3.bf16.msra.mxu1 %v25595_v1  ;;  %v13188_v5 = vsub.f32 %v13186_v3, %v13187_v49 }
 0x94a   : > { %v25612_v12 = vpack.c.bf16 %v13074_v2, %v13071_v43  ;;  %v13193_v58 = vsub.f32 %v13042_v10, %v13071_v43  ;;  %v13044_v51 = vmax.f32 %v13036_v28, 0.0  ;;  %v19027_v29 = vpop.f32.mrb[70].mxu1  ;;  %v13181_v23 = vsub.f32 %v13179_v56, %v13180_v48 }
 0x94b   : > { %v13201_v9 = vand.u32 4294901760, %v13200_v55  ;;  %v13080_v4 = vand.u32 4294901760, %v13045_v13  ;;  %v13039_v17 = vadd.f32 %v19027_v29, %v14506_v18  ;;  %v13009_v61 = vpop.f32.mrb[71].mxu1  ;;  %v13189_v62 = vand.u32 4294901760, %v13188_v5 }
 0x94c   : > { %v13194_v22 = vand.u32 4294901760, %v13193_v58  ;;  %v13077_v11 = vand.u32 4294901760, %v13044_v51  ;;  %v13038_v19 = vadd.f32 %v14506_v18, %v13009_v61  ;;  %20737 = vmatprep.subr.bf16.mxu1 %v25612_v12  ;;  %v13182_v15 = vand.u32 4294901760, %v13181_v23 }
 0x94d   : > { %v13214_v45 = vsub.f32 %v13045_v13, %v13080_v4  ;;  %v13047_v63 = vmax.f32 %v13039_v17, 0.0  ;;  %20739 = vmatpush3.bf16.msra.mxu1 %v25612_v12  ;;  %v13202_v44 = vsub.f32 %v13200_v55, %v13201_v9  ;;  %v20768_v39 = vpack.c.bf16 %v13200_v55, %v13193_v58 }
 0x94e   : > { %v25616_v21 = vpack.c.bf16 %v13080_v4, %v13077_v11  ;;  %v13207_v6 = vsub.f32 %v13044_v51, %v13077_v11  ;;  %v13046_v32 = vmax.f32 %v13038_v19, 0.0  ;;  %v20748_v7 = vpack.c.bf16 %v13189_v62, %v13182_v15  ;;  %v13736_v62 = vld [vmem:[#allocation2 + $0x368] sm:$0xff] }
 0x94f   : > { %v13215_v8 = vand.u32 4294901760, %v13214_v45  ;;  %v13086_v38 = vand.u32 4294901760, %v13047_v63  ;;  %v13195_v24 = vsub.f32 %v13193_v58, %v13194_v22  ;;  %v13203_v40 = vand.u32 4294901760, %v13202_v44 }
 0x950   : > { %v13208_v30 = vand.u32 4294901760, %v13207_v6  ;;  %v13083_v18 = vand.u32 4294901760, %v13046_v32  ;;  %20741 = vmatprep.subr.bf16.mxu1 %v25616_v21  ;;  %20749 = vmatprep.subr.bf16.mxu0 %v20748_v7  ;;  %v20772_v41 = vpack.c.bf16 %v13214_v45, %v13207_v6  ;;  %v25619_v33 = vpack.c.bf16 %v13187_v49, %v13180_v48 }
 0x951   : > { %v13228_v35 = vsub.f32 %v13047_v63, %v13086_v38  ;;  %20743 = vmatpush3.bf16.msra.mxu1 %v25616_v21  ;;  %20751 = vmatpush3.bf16.msra.mxu0 %v20748_v7  ;;  %v13196_v53 = vand.u32 4294901760, %v13195_v24  ;;  %v13216_v57 = vsub.f32 %v13214_v45, %v13215_v8  ;;  %v20800_v3 = vpack.c.bf16 %v13201_v9, %v13194_v22 }
 0x952   : > { %v25622_v27 = vpack.c.bf16 %v13086_v38, %v13083_v18  ;;  %v13221_v56 = vsub.f32 %v13046_v32, %v13083_v18  ;;  %v13209_v10 = vsub.f32 %v13207_v6, %v13208_v30  ;;  %v20804_v52 = vpack.c.bf16 %v13215_v8, %v13208_v30 }
 0x953   : > { %v13229_v2 = vand.u32 4294901760, %v13228_v35  ;;  %v20752_v59 = vpack.c.bf16 %v13203_v40, %v13196_v53  ;;  %v13217_v60 = vand.u32 4294901760, %v13216_v57  ;;  %v13151_v43 = vand.u32 4294901760, %v25601_v47 }
 0x954   : > { %v13222_v28 = vand.u32 4294901760, %v13221_v56  ;;  %20745 = vmatprep.subr.bf16.mxu1 %v25622_v27  ;;  %v13210_v49 = vand.u32 4294901760, %v13209_v10  ;;  %v20776_v48 = vpack.c.bf16 %v13228_v35, %v13221_v56  ;;  %v13170_v55 = vsub.f32 %v25591_v20, %v13169_v0 }
 0x955   : > { %20753 = vmatprep.subr.bf16.mxu0 %v20752_v59  ;;  %20747 = vmatpush3.bf16.msra.mxu1 %v25622_v27  ;;  %v13230_v13 = vsub.f32 %v13228_v35, %v13229_v2  ;;  %v13161_v5 = vand.u32 4294901760, %v25610_v54  ;;  %v13735_v54 = vld [vmem:[#allocation2 + $0x360] sm:$0xff]  ;;  %v13774_v22 = vand.u32 4294901760, %v13736_v62 }
 0x956   : > { %20755 = vmatpush3.bf16.msra.mxu0 %v20752_v59  ;;  %v20756_v58 = vpack.c.bf16 %v13217_v60, %v13210_v49  ;;  %v13223_v51 = vsub.f32 %v13221_v56, %v13222_v28  ;;  %v20808_v29 = vpack.c.bf16 %v13229_v2, %v13222_v28  ;;  %v13171_v9 = vand.u32 4294901760, %v13170_v55 }
 0x957   : > { %v13231_v47 = vand.u32 4294901760, %v13230_v13  ;;  %v13771_v17 = vand.u32 4294901760, %v13735_v54 }
 0x958   : > { %20757 = vmatprep.subr.bf16.mxu0 %v20756_v58  ;;  %v13224_v23 = vand.u32 4294901760, %v13223_v51  ;;  %19045 = vmatmul.mubr.f32.vlgmr.msra.gmra.mrb[72].mxu1 %v13151_v43 }
 0x959   : > { %19047 = vmatprep.mubr.f32.mxu1 %v13161_v5  ;;  %v13905_v30 = vsub.f32 %v13735_v54, %v13771_v17 }
 0x95a   : > { %20759 = vmatpush3.bf16.msra.mxu0 %v20756_v58  ;;  %v20760_v4 = vpack.c.bf16 %v13231_v47, %v13224_v23 }
 0x95b   : > { %v13906_v35 = vand.u32 4294901760, %v13905_v30 }
 0x95c   : > { %20761 = vmatprep.subr.bf16.mxu0 %v20760_v4  ;;  %19048 = vmatmul.mubr.f32.gmra.mrb[74].mxu1 %v13171_v9 }
 0x95e   : > { %20763 = vmatpush3.bf16.msra.mxu0 %v20760_v4 }
 0x95f   : > { %20765 = vmatprep.subr.bf16.mxu0 %v25604_v26 }
 0x961   : > { %19067 = vmatmul.mubr.f32.vlgmr.msra.gmra.mrb[40].mxu0 %v25578_v50 }
 0x962   : > { %20767 = vmatpush3.bf16.msra.mxu0 %v25604_v26  ;;  %19069 = vmatprep.mubr.f32.mxu0 %v25580_v36  ;;  %v13734_v26 = vld [vmem:[#allocation2 + $0x358] sm:$0xff] }
 0x963   : > { %20769 = vmatprep.subr.bf16.mxu0 %v20768_v39 }
 0x965   : > { %19070 = vmatmul.mubr.f32.gmra.mrb[42].mxu0 %v25582_v37 }
 0x966   : > { %20771 = vmatpush3.bf16.msra.mxu0 %v20768_v39  ;;  %19088 = vmatprep.mubr.f32.mxu0 %v25569_v16  ;;  %v13730_v16 = vld [vmem:[#allocation2 + $0x338] sm:$0xff] }
 0x967   : > { %20773 = vmatprep.subr.bf16.mxu0 %v20772_v41 }
 0x96a   : > { %20775 = vmatpush3.bf16.msra.mxu0 %v20772_v41 }
 0x96b   : > { %20777 = vmatprep.subr.bf16.mxu0 %v20776_v48 }
 0x96e   : > { %20779 = vmatpush3.bf16.msra.mxu0 %v20776_v48 }
 0x96f   : > { %20781 = vmatprep.subr.bf16.mxu0 %v25595_v1 }
 0x971   : > { %19089 = vmatmul.mubr.f32.vlgmr.msra.gmra.mrb[40].mxu0 %v25585_v42  ;;  %v13756_v42 = vand.u32 4294901760, %v13730_v16 }
 0x972   : > { %20783 = vmatpush3.bf16.msra.mxu0 %v25595_v1  ;;  %19091 = vmatprep.mubr.f32.mxu0 %v25588_v14 }
 0x973   : > { %20785 = vmatprep.subr.bf16.mxu0 %v25612_v12 }
 0x975   : > { %19092 = vmatmul.mubr.f32.gmra.mrb[42].mxu0 %v25591_v20 }
 0x976   : > { %20787 = vmatpush3.bf16.msra.mxu0 %v25612_v12  ;;  %19110 = vmatprep.mubr.f32.mxu0 %v13139_v25  ;;  %v13731_v25 = vld [vmem:[#allocation2 + $0x340] sm:$0xff] }
 0x977   : > { %20789 = vmatprep.subr.bf16.mxu0 %v25616_v21  ;;  %v13759_v14 = vand.u32 4294901760, %v13731_v25 }
 0x979   : > { %v25670_v20 = vpack.c.bf16 %v13759_v14, %v13756_v42  ;;  %v13877_v61 = vsub.f32 %v13731_v25, %v13759_v14 }
 0x97a   : > { %20791 = vmatpush3.bf16.msra.mxu0 %v25616_v21 }
 0x97b   : > { %20793 = vmatprep.subr.bf16.mxu0 %v25622_v27  ;;  %v13878_v15 = vand.u32 4294901760, %v13877_v61 }
 0x97d   : > { %v13879_v44 = vsub.f32 %v13877_v61, %v13878_v15 }
 0x97e   : > { %20795 = vmatpush3.bf16.msra.mxu0 %v25622_v27 }
 0x97f   : > { %20797 = vmatprep.subr.bf16.mxu0 %v25619_v33  ;;  %v13880_v32 = vand.u32 4294901760, %v13879_v44 }
 0x981   : > { %19111 = vmatmul.mubr.f32.vlgmr.msra.gmra.mrb[40].mxu0 %v13149_v34  ;;  %v13733_v34 = vld [vmem:[#allocation2 + $0x350] sm:$0xff] }
 0x982   : > { %20799 = vmatpush3.bf16.msra.mxu0 %v25619_v33  ;;  %19113 = vmatprep.mubr.f32.mxu0 %v13159_v31 }
 0x983   : > { %20801 = vmatprep.subr.bf16.mxu0 %v20800_v3 }
 0x985   : > { %19114 = vmatmul.mubr.f32.gmra.mrb[42].mxu0 %v13169_v0 }
 0x986   : > { %20803 = vmatpush3.bf16.msra.mxu0 %v20800_v3  ;;  %19132 = vmatprep.mubr.f32.mxu0 %v25565_v46  ;;  %v13907_v3 = vsub.f32 %v13905_v30, %v13906_v35 }
 0x987   : > { %20805 = vmatprep.subr.bf16.mxu0 %v20804_v52 }
 0x988   : > { %v13908_v2 = vand.u32 4294901760, %v13907_v3 }
 0x98a   : > { %20807 = vmatpush3.bf16.msra.mxu0 %v20804_v52 }
 0x98b   : > { %20809 = vmatprep.subr.bf16.mxu0 %v20808_v29 }
 0x98e   : > { %20811 = vmatpush3.bf16.msra.mxu0 %v20808_v29 }
 0x98f   : > { %20813 = vmatprep.subr.bf16.mxu0 %v25595_v1 }
 0x991   : > { %19133 = vmatmul.mubr.f32.vlgmr.msra.gmra.mrb[40].mxu0 %v25578_v50 }
 0x992   : > { %20815 = vmatpush3.bf16.msra.mxu0 %v25595_v1  ;;  %19135 = vmatprep.mubr.f32.mxu0 %v25580_v36  ;;  %v13765_v1 = vand.u32 4294901760, %v13733_v34 }
 0x993   : > { %20817 = vmatprep.subr.bf16.mxu0 %v25612_v12 }
 0x995   : > { %19136 = vmatmul.mubr.f32.gmra.mrb[42].mxu0 %v25582_v37 }
 0x996   : > { %20819 = vmatpush3.bf16.msra.mxu0 %v25612_v12  ;;  %19154 = vmatprep.mubr.f32.mxu0 %v25565_v46  ;;  %v13732_v46 = vld [vmem:[#allocation2 + $0x348] sm:$0xff]  ;;  %v13768_v12 = vand.u32 4294901760, %v13734_v26 }
 0x997   : > { %20821 = vmatprep.subr.bf16.mxu0 %v25616_v21  ;;  %v13762_v31 = vand.u32 4294901760, %v13732_v46 }
 0x998   : > { %v13898_v40 = vsub.f32 %v13734_v26, %v13768_v12 }
 0x999   : > { %v25678_v0 = vpack.c.bf16 %v13765_v1, %v13762_v31  ;;  %v13884_v39 = vsub.f32 %v13732_v46, %v13762_v31 }
 0x99a   : > { %20823 = vmatpush3.bf16.msra.mxu0 %v25616_v21  ;;  %v13891_v21 = vsub.f32 %v13733_v34, %v13765_v1  ;;  %v13899_v33 = vand.u32 4294901760, %v13898_v40  ;;  %v20868_v51 = vpack.c.bf16 %v13905_v30, %v13898_v40 }
 0x99b   : > { %20825 = vmatprep.subr.bf16.mxu0 %v25622_v27  ;;  %v13885_v7 = vand.u32 4294901760, %v13884_v39 }
 0x99c   : > { %v13892_v8 = vand.u32 4294901760, %v13891_v21  ;;  %v13900_v57 = vsub.f32 %v13898_v40, %v13899_v33  ;;  %v20864_v58 = vpack.c.bf16 %v13891_v21, %v13884_v39 }
 0x99d   : > { %v13886_v24 = vsub.f32 %v13884_v39, %v13885_v7 }
 0x99e   : > { %20827 = vmatpush3.bf16.msra.mxu0 %v25622_v27  ;;  %v13893_v18 = vsub.f32 %v13891_v21, %v13892_v8  ;;  %v13912_v27 = vsub.f32 %v13736_v62, %v13774_v22  ;;  %v13901_v52 = vand.u32 4294901760, %v13900_v57  ;;  %v25697_v25 = vpack.c.bf16 %v13892_v8, %v13885_v7 }
 0x99f   : > { %20829 = vmatprep.subr.bf16.mxu0 %v25670_v20  ;;  %v13887_v41 = vand.u32 4294901760, %v13886_v24 }
 0x9a0   : > { %v13894_v53 = vand.u32 4294901760, %v13893_v18  ;;  %v13913_v59 = vand.u32 4294901760, %v13912_v27  ;;  %v20852_v43 = vpack.c.bf16 %v13908_v2, %v13901_v52 }
 0x9a1   : > { %19155 = vmatmul.mubr.f32.vlgmr.msra.gmra.mrb[40].mxu0 %v25578_v50  ;;  %v25682_v50 = vpack.c.bf16 %v13771_v17, %v13768_v12 }
 0x9a2   : > { %19157 = vmatprep.mubr.f32.mxu0 %v25580_v36  ;;  %20831 = vmatpush3.bf16.msra.mxu0 %v25670_v20  ;;  %v13870_v36 = vsub.f32 %v13730_v16, %v13756_v42  ;;  %v20848_v10 = vpack.c.bf16 %v13894_v53, %v13887_v41  ;;  %v13914_v28 = vsub.f32 %v13912_v27, %v13913_v59 }
 0x9a3   : > { %20833 = vmatprep.subr.bf16.mxu0 %v25678_v0  ;;  %v25699_v42 = vpack.c.bf16 %v13906_v35, %v13899_v33 }
 0x9a4   : > { %v13871_v19 = vand.u32 4294901760, %v13870_v36  ;;  %v13915_v48 = vand.u32 4294901760, %v13914_v28  ;;  %v20860_v5 = vpack.c.bf16 %v13877_v61, %v13870_v36 }
 0x9a5   : > { %19158 = vmatmul.mubr.f32.gmra.mrb[42].mxu0 %v25582_v37  ;;  %v13737_v37 = vld [vmem:[#allocation2 + $0x370] sm:$0xff] }
 0x9a6   : > { %20835 = vmatpush3.bf16.msra.mxu0 %v25678_v0  ;;  %v13777_v11 = vand.u32 4294901760, %v13737_v37  ;;  %v13872_v63 = vsub.f32 %v13870_v36, %v13871_v19  ;;  %v25695_v16 = vpack.c.bf16 %v13878_v15, %v13871_v19 }
 0x9a7   : > { %20837 = vmatprep.subr.bf16.mxu0 %v25682_v50 }
 0x9a8   : > { %v25686_v45 = vpack.c.bf16 %v13777_v11, %v13774_v22  ;;  %v13873_v6 = vand.u32 4294901760, %v13872_v63  ;;  %v13919_v56 = vsub.f32 %v13737_v37, %v13777_v11 }
 0x9aa   : > { %20839 = vmatpush3.bf16.msra.mxu0 %v25682_v50  ;;  %v25690_v38 = vpack.c.bf16 %v13880_v32, %v13873_v6  ;;  %v13920_v60 = vand.u32 4294901760, %v13919_v56  ;;  %v25693_v29 = vpack.c.bf16 %v13919_v56, %v13912_v27 }
 0x9ab   : > { %20841 = vmatprep.subr.bf16.mxu0 %v25686_v45 }
 0x9ac   : > { %v13921_v49 = vsub.f32 %v13919_v56, %v13920_v60  ;;  %v25701_v14 = vpack.c.bf16 %v13920_v60, %v13913_v59 }
 0x9ae   : > { %20843 = vmatpush3.bf16.msra.mxu0 %v25686_v45  ;;  %v13922_v55 = vand.u32 4294901760, %v13921_v49 }
 0x9af   : > { %20845 = vmatprep.subr.bf16.mxu0 %v25690_v38 }
 0x9b0   : > { %v20856_v13 = vpack.c.bf16 %v13922_v55, %v13915_v48 }
 0xa2b   : > { %v19046_v47 = vpop.f32.mrb[72].mxu1 }
 0xa2c   : > { %v13143_v23 = vpop.f32.mrb[73].mxu1 }
 0xa2f   : > { %v19049_v9 = vpop.f32.mrb[74].mxu1 }
 0xa30   : > { %v13163_v4 = vpop.f32.mrb[75].mxu1 }
 0xa74   : > { %v19156_v46 = vpop.f32.mrb[40].mxu0 }
 0xa75   : > { %v20940_v34 = vadd.f32 %v19156_v46, %v19046_v47  ;;  %v13708_v31 = vpop.f32.mrb[41].mxu0 }
 0xa76   : > { %v20941_v1 = vadd.f32 %v13708_v31, %v13143_v23 }
 0xa77   : > { %v13747_v26 = vsel %vm9474_vm1, %v20940_v34, 0 }
 0xa78   : > { %v25704_v54 = vand.u32 4294901760, %v13747_v26  ;;  %v13744_v12 = vsel %vm9474_vm1, %v20941_v1, 0  ;;  %v19159_v17 = vpop.f32.mrb[42].mxu0 }
 0xa79   : > { %v25707_v36 = vand.u32 4294901760, %v13744_v12  ;;  %v20942_v61 = vadd.f32 %v19159_v17, %v19049_v9  ;;  %v13720_v62 = vpop.f32.mrb[43].mxu0 }
 0xa7a   : > { %v13839_v37 = vsub.f32 %v13747_v26, %v25704_v54  ;;  %v20943_v22 = vadd.f32 %v13720_v62, %v13163_v4 }
 0xa7b   : > { %v13829_v11 = vsub.f32 %v13744_v12, %v25707_v36  ;;  %v13753_v19 = vsel %vm9474_vm1, %v20942_v61, 0 }
 0xa7c   : > { %v13840_v15 = vand.u32 4294901760, %v13839_v37  ;;  %v25712_v63 = vand.u32 4294901760, %v13753_v19  ;;  %v13750_v44 = vsel %vm9474_vm1, %v20943_v22, 0 }
 0xa7d   : > { %v25715_v39 = vand.u32 4294901760, %v13750_v44  ;;  %v13830_v21 = vand.u32 4294901760, %v13829_v11 }
 0xa7e   : > { %v13841_v6 = vsub.f32 %v13839_v37, %v13840_v15  ;;  %v13859_v32 = vsub.f32 %v13753_v19, %v25712_v63 }
 0xa7f   : > { %v13849_v7 = vsub.f32 %v13750_v44, %v25715_v39  ;;  %v13831_v8 = vsub.f32 %v13829_v11, %v13830_v21 }
 0xa80   : > { %v13860_v24 = vand.u32 4294901760, %v13859_v32  ;;  %v13842_v18 = vand.u32 4294901760, %v13841_v6 }
 0xa81   : > { %v13832_v40 = vand.u32 4294901760, %v13831_v8  ;;  %v13850_v30 = vand.u32 4294901760, %v13849_v7 }
 0xa82   : > { %v13861_v41 = vsub.f32 %v13859_v32, %v13860_v24 }
 0xa83   : > { %19176 = vmatprep.mubr.f32.mxu0 %v13832_v40  ;;  %v13851_v33 = vsub.f32 %v13849_v7, %v13850_v30 }
 0xa84   : > { %19177 = vmatmul.mubr.f32.vlgmr.msra.gmra.mrb[44].mxu0 %v13842_v18  ;;  %v13862_v53 = vand.u32 4294901760, %v13861_v41 }
 0xa85   : > { %20847 = vmatpush3.bf16.msra.mxu0 %v25690_v38  ;;  %v13852_v35 = vand.u32 4294901760, %v13851_v33 }
 0xa86   : > { %20849 = vmatprep.subr.bf16.mxu0 %v20848_v10 }
 0xa87   : > { %19179 = vmatprep.mubr.f32.mxu0 %v13852_v35 }
 0xa88   : > { %19180 = vmatmul.mubr.f32.gmra.mrb[46].mxu0 %v13862_v53 }
 0xa89   : > { %20851 = vmatpush3.bf16.msra.mxu0 %v20848_v10  ;;  %19198 = vmatprep.mubr.f32.mxu0 %v25707_v36 }
 0xa8a   : > { %20853 = vmatprep.subr.bf16.mxu0 %v20852_v43 }
 0xa8d   : > { %20855 = vmatpush3.bf16.msra.mxu0 %v20852_v43 }
 0xa8e   : > { %20857 = vmatprep.subr.bf16.mxu0 %v20856_v13 }
 0xa91   : > { %20859 = vmatpush3.bf16.msra.mxu0 %v20856_v13 }
 0xa92   : > { %20861 = vmatprep.subr.bf16.mxu0 %v20860_v5 }
 0xa94   : > { %19199 = vmatmul.mubr.f32.vlgmr.msra.gmra.mrb[44].mxu0 %v25704_v54 }
 0xa95   : > { %19201 = vmatprep.mubr.f32.mxu0 %v25715_v39  ;;  %20863 = vmatpush3.bf16.msra.mxu0 %v20860_v5 }
 0xa96   : > { %20865 = vmatprep.subr.bf16.mxu0 %v20864_v58 }
 0xa98   : > { %19202 = vmatmul.mubr.f32.gmra.mrb[46].mxu0 %v25712_v63 }
 0xa99   : > { %20867 = vmatpush3.bf16.msra.mxu0 %v20864_v58  ;;  %19220 = vmatprep.mubr.f32.mxu0 %v13829_v11 }
 0xa9a   : > { %20869 = vmatprep.subr.bf16.mxu0 %v20868_v51 }
 0xa9d   : > { %20871 = vmatpush3.bf16.msra.mxu0 %v20868_v51 }
 0xa9e   : > { %20873 = vmatprep.subr.bf16.mxu0 %v25693_v29 }
 0xaa1   : > { %20875 = vmatpush3.bf16.msra.mxu0 %v25693_v29 }
 0xaa2   : > { %20877 = vmatprep.subr.bf16.mxu0 %v25670_v20 }
 0xaa4   : > { %19221 = vmatmul.mubr.f32.vlgmr.msra.gmra.mrb[44].mxu0 %v13839_v37 }
 0xaa5   : > { %19223 = vmatprep.mubr.f32.mxu0 %v13849_v7  ;;  %20879 = vmatpush3.bf16.msra.mxu0 %v25670_v20 }
 0xaa6   : > { %20881 = vmatprep.subr.bf16.mxu0 %v25678_v0 }
 0xaa8   : > { %19224 = vmatmul.mubr.f32.gmra.mrb[46].mxu0 %v13859_v32 }
 0xaa9   : > { %20883 = vmatpush3.bf16.msra.mxu0 %v25678_v0  ;;  %19242 = vmatprep.mubr.f32.mxu0 %v13830_v21 }
 0xaaa   : > { %20885 = vmatprep.subr.bf16.mxu0 %v25682_v50 }
 0xaad   : > { %20887 = vmatpush3.bf16.msra.mxu0 %v25682_v50 }
 0xaae   : > { %20889 = vmatprep.subr.bf16.mxu0 %v25686_v45 }
 0xab1   : > { %20891 = vmatpush3.bf16.msra.mxu0 %v25686_v45 }
 0xab2   : > { %20893 = vmatprep.subr.bf16.mxu0 %v25695_v16 }
 0xab4   : > { %19243 = vmatmul.mubr.f32.vlgmr.msra.gmra.mrb[44].mxu0 %v13840_v15 }
 0xab5   : > { %19245 = vmatprep.mubr.f32.mxu0 %v13850_v30  ;;  %20895 = vmatpush3.bf16.msra.mxu0 %v25695_v16 }
 0xab6   : > { %20897 = vmatprep.subr.bf16.mxu0 %v25697_v25 }
 0xab8   : > { %19246 = vmatmul.mubr.f32.gmra.mrb[46].mxu0 %v13860_v24 }
 0xab9   : > { %20899 = vmatpush3.bf16.msra.mxu0 %v25697_v25  ;;  %19264 = vmatprep.mubr.f32.mxu0 %v25707_v36 }
 0xaba   : > { %20901 = vmatprep.subr.bf16.mxu0 %v25699_v42 }
 0xabd   : > { %20903 = vmatpush3.bf16.msra.mxu0 %v25699_v42 }
 0xabe   : > { %20905 = vmatprep.subr.bf16.mxu0 %v25701_v14 }
 0xac1   : > { %20907 = vmatpush3.bf16.msra.mxu0 %v25701_v14 }
 0xac2   : > { %20909 = vmatprep.subr.bf16.mxu0 %v25670_v20 }
 0xac4   : > { %19265 = vmatmul.mubr.f32.vlgmr.msra.gmra.mrb[44].mxu0 %v25704_v54 }
 0xac5   : > { %19267 = vmatprep.mubr.f32.mxu0 %v25715_v39  ;;  %20911 = vmatpush3.bf16.msra.mxu0 %v25670_v20  ;;  %v14507_v20 = vld [vmem:[#allocation2 + $0x388] ss:$0 sm:$0xff] }
 0xac6   : > { %20913 = vmatprep.subr.bf16.mxu0 %v25678_v0 }
 0xac8   : > { %19268 = vmatmul.mubr.f32.gmra.mrb[46].mxu0 %v25712_v63 }
 0xac9   : > { %20915 = vmatpush3.bf16.msra.mxu0 %v25678_v0  ;;  %19286 = vmatprep.mubr.f32.mxu0 %v25707_v36 }
 0xaca   : > { %20917 = vmatprep.subr.bf16.mxu0 %v25682_v50 }
 0xacd   : > { %20919 = vmatpush3.bf16.msra.mxu0 %v25682_v50 }
 0xace   : > { %20921 = vmatprep.subr.bf16.mxu0 %v25686_v45 }
 0xad1   : > { %20923 = vmatpush3.bf16.msra.mxu0 %v25686_v45 }
 0xad4   : > { %19287 = vmatmul.mubr.f32.vlgmr.msra.gmra.mrb[44].mxu0 %v25704_v54 }
 0xad5   : > { %19289 = vmatprep.mubr.f32.mxu0 %v25715_v39 }
 0xad8   : > { %19290 = vmatmul.mubr.f32.gmra.mrb[46].mxu0 %v25712_v63 }
 0xba7   : > { %v19288_v0 = vpop.f32.mrb[44].mxu0 }
 0xba8   : > { %v14399_v50 = vpop.f32.mrb[45].mxu0  ;;  %v20944_v45 = vadd.f32 %v19288_v0, %v14507_v20 }
 0xba9   : > { %v20945_v38 = vadd.f32 %v14507_v20, %v14399_v50 }
 0xbaa   : > { %14423 = vst.msk [vmem:[%s160_s8 + $0x8] sm:$0xff] %vm14421_vm2, %v20944_v45 }
 0xbab   : > { %14422 = vst.msk [vmem:[%s160_s8] sm:$0xff] %vm14421_vm2, %v20945_v38  ;;  %v19291_v57 = vpop.f32.mrb[46].mxu0 }
 0xbac   : > { %v14411_v3 = vpop.f32.mrb[47].mxu0  ;;  %v20946_v56 = vadd.f32 %v19291_v57, %v14507_v20 }
 0xbad   : > { %v20947_v27 = vadd.f32 %v14507_v20, %v14411_v3 }
 0xbae   : > { %14425 = vst.msk [vmem:[%s160_s8 + $0x18] sm:$0xff] %vm14421_vm2, %v20946_v56 }
 0xbaf   : > { %14424 = vst.msk [vmem:[%s160_s8 + $0x10] sm:$0xff] %vm14421_vm2, %v20947_v27 }
 0xbb0 PF: > { %s13_s9 = sadd.s32 1, %s21795_s9  }
 0xbb1   : > { %p10_p5 = scmp.ge.s32.totalorder %s13_s9, 4  }
 0xbb3   :  { %12 = sbr.rel (!%p10_p5) target bundleno = 1 (0x1), region = 63 }
 0xbba   :  { %14448 = vsyncpa [#allocation3], 1 }
 0xbbb   :  { %14450 = vsyncpa [#allocation3 + $0x1], 1 }

</bundles_post_ra>
